<compile_context>
chip_gen: v5e
topology: v5e:2x2
jax: 0.10.0
libtpu: 0.0.40
codegen_flags: <defaults>
</compile_context>

<pallas_src>
import functools
import math

import jax
import jax.numpy as jnp
from jax.experimental import pallas as pl
from jax.experimental.pallas import tpu as pltpu

# -------- scaled-down hyper-parameters (ViT-Base / torch defaults shrunk) -----
VOCAB_SIZE = 64
VOCAB_PAD = 128          # vocab projection padded to a lane-dense 128 columns
D_MODEL = 32
NHEAD = 4
HEAD_DIM = D_MODEL // NHEAD
MAX_SEQ_LEN = 16
PAD_ID = 0

IMG_SIZE = 32
PATCH = 8
CPP = 3 * PATCH * PATCH                      # im2col patch row width = 192
NUM_PATCHES = (IMG_SIZE // PATCH) ** 2       # 16
SEQ_ENC = NUM_PATCHES + 1                    # patches + CLS = 17
ENC_DEPTH = 2                                # (12 in vit_base, scaled down)
ENC_MLP = 4 * D_MODEL                        # ViT mlp_ratio = 4  -> 128
DEC_LAYERS = 2                               # (6 in the reference, scaled down)
DEC_FFN = 64                                 # (2048 default, scaled down)
DEC_FFN_PAD = 128                            # zero-padded for lane-dense FFN
LN_EPS = 1e-5
NEG_INF = -1e9

# lane offsets inside the packed per-layer weight slabs
# encoder w1 [Le, D, 256]:  fc1 | wqkv | wo
E_FC1, E_QKV, E_WO = 0, ENC_MLP, ENC_MLP + 3 * D_MODEL
# decoder w1 [Ld, D, 288]:  fc1 | wqkv | wo | cross
D_FC1 = 0
D_QKV = DEC_FFN_PAD
D_WOF = DEC_FFN_PAD + 3 * D_MODEL
D_XW = DEC_FFN_PAD + 4 * D_MODEL


# ------------------------------ in-kernel helpers ------------------------------
def _erf(x):
    # Abramowitz & Stegun 7.1.26 polynomial (|err| < 1.5e-7): keeps timm's
    # exact-GELU semantics using only ops guaranteed to lower in Mosaic.
    t = 1.0 / (1.0 + 0.3275911 * jnp.abs(x))
    poly = t * (0.254829592 + t * (-0.284496736 + t * (1.421413741
               + t * (-1.453152027 + t * 1.061405429))))
    y = 1.0 - poly * jnp.exp(-(x * x))
    return jnp.where(x >= 0.0, y, -y)


def _gelu(x):
    return 0.5 * x * (1.0 + _erf(x * 0.7071067811865476))


def _layernorm(x, g, b):
    mu = jnp.mean(x, axis=-1, keepdims=True)
    xc = x - mu
    var = jnp.mean(xc * xc, axis=-1, keepdims=True)
    return xc * jax.lax.rsqrt(var + LN_EPS) * g + b


def _mha(x, wqkv, bqkv, wo, bo, mask):
    """Per-batch multi-head self-attention on [S, D] rows.

    One packed QKV matmul (the 1/sqrt(head_dim) scale is pre-folded into the Q
    columns of wqkv at init).  Per-head PV outputs are concatenated along the
    lane axis into one [S, D] tile so the output projection is a single
    [S, D] x [D, D] matmul instead of four K=8 matmuls.  `mask` is an additive
    [S, S] mask (None for the encoder: nothing is masked).
    """
    f32 = jnp.float32
    qkv = jnp.dot(x, wqkv, preferred_element_type=f32) + bqkv        # [S, 3D]
    heads = []
    for h in range(NHEAD):
        lo = h * HEAD_DIM
        q = qkv[:, lo:lo + HEAD_DIM]
        k = qkv[:, D_MODEL + lo:D_MODEL + lo + HEAD_DIM]
        v = qkv[:, 2 * D_MODEL + lo:2 * D_MODEL + lo + HEAD_DIM]
        s = jax.lax.dot_general(q, k, (((1,), (1,)), ((), ())),
                                preferred_element_type=f32)          # [S, S]
        if mask is not None:
            s = s + mask
        s = s - jnp.max(s, axis=-1, keepdims=True)
        e = jnp.exp(s)
        p = e * pl.reciprocal(jnp.sum(e, axis=-1, keepdims=True), approx=True)
        heads.append(jnp.dot(p, v, preferred_element_type=f32))      # [S, Dh]
    o = jnp.concatenate(heads, axis=-1)                              # [S, D]
    return jnp.dot(o, wo, preferred_element_type=f32) + bo


# ------------------------------ fused model kernel ------------------------------
def _vit_seq2seq_kernel(ids_ref,                        # SMEM [B, Sd] (scalar prefetch)
                        patches_ref, patch_w_ref, add_base_ref,
                        e_w1_ref, e_w2_ref, e_vecs_ref, e_norm_ref,
                        tok_emb_ref, dec_pos_ref,
                        d_w1_ref, d_w2_ref, d_vecs_ref, d_final_ref,
                        out_w_ref, out_b_ref,
                        out_ref, *, seq_len):
    f32 = jnp.float32
    b = pl.program_id(0)
    D = D_MODEL

    # ---------------- ViT encoder (pre-norm timm blocks) ----------------
    # Patch embedding: the CLS token, positional embedding and conv bias are
    # folded into `add_base`; the CLS row of `patches` is zero.
    x = jnp.dot(patches_ref[...], patch_w_ref[...], preferred_element_type=f32)
    x = x + add_base_ref[...]                                        # [Se, D]
    for l in range(ENC_DEPTH):
        w1 = e_w1_ref[l]                       # [D, 256]  fc1 | wqkv | wo
        vec = e_vecs_ref[l]                    # [8, 128]  packed per-layer vectors
        h = _layernorm(x, vec[0:1, :D], vec[1:2, :D])
        x = x + _mha(h, w1[:, E_QKV:E_QKV + 3 * D], vec[2:3, :3 * D],
                     w1[:, E_WO:E_WO + D], vec[3:4, :D], None)
        h = _layernorm(x, vec[4:5, :D], vec[5:6, :D])
        h = _gelu(jnp.dot(h, w1[:, E_FC1:E_FC1 + ENC_MLP],
                          preferred_element_type=f32) + vec[6:7, :])
        x = x + jnp.dot(h, e_w2_ref[l], preferred_element_type=f32) + vec[7:8, :D]
    en = e_norm_ref[...]
    x = _layernorm(x, en[0:1, :], en[1:2, :])
    mem = x[0:1, :]                            # CLS feature -> decoder memory [1, D]

    # -------- decoder inputs built in-kernel from the SMEM token ids --------
    Sd = seq_len
    vocab_iota = jax.lax.broadcasted_iota(jnp.int32, (1, VOCAB_SIZE), 1)
    lane = jax.lax.broadcasted_iota(jnp.int32, (1, Sd), 1)
    rows = []
    keypad = jnp.zeros((1, Sd), f32)
    for i in range(Sd):
        tok = ids_ref[b, i]
        rows.append((vocab_iota == tok).astype(f32))
        keypad = keypad + jnp.where(lane == i,
                                    jnp.where(tok == PAD_ID, NEG_INF, 0.0), 0.0)
    onehot = jnp.concatenate(rows, axis=0)                           # [Sd, V]
    qpos = jax.lax.broadcasted_iota(jnp.int32, (Sd, Sd), 0)
    kpos = jax.lax.broadcasted_iota(jnp.int32, (Sd, Sd), 1)
    dec_mask = jnp.where(kpos <= qpos, 0.0, NEG_INF).astype(f32) + keypad

    y = jnp.dot(onehot, tok_emb_ref[...],
                preferred_element_type=f32) * math.sqrt(float(D))
    y = y + dec_pos_ref[0:Sd, :]

    # ---------------- Transformer decoder (post-norm torch layers) ----------------
    for l in range(DEC_LAYERS):
        w1 = d_w1_ref[l]                       # [D, 288]  fc1 | wqkv | wo | cross
        vec = d_vecs_ref[l]                    # [16, 128] packed per-layer vectors
        sa = _mha(y, w1[:, D_QKV:D_QKV + 3 * D], vec[0:1, :3 * D],
                  w1[:, D_WOF:D_WOF + D], vec[1:2, :D], dec_mask)
        y = _layernorm(y + sa, vec[3:4, :D], vec[4:5, :D])
        # Cross-attention over a single memory token (softmax == 1), folded at
        # init to one matmul: mem @ (Wv@Wo) + (bv@Wo + bo), broadcast over rows.
        ca = (jnp.dot(mem, w1[:, D_XW:D_XW + D], preferred_element_type=f32)
              + vec[2:3, :D])
        y = _layernorm(y + ca, vec[5:6, :D], vec[6:7, :D])
        ff = jnp.maximum(jnp.dot(y, w1[:, D_FC1:D_FC1 + DEC_FFN_PAD],
                                 preferred_element_type=f32) + vec[7:8, :], 0.0)
        ff = jnp.dot(ff, d_w2_ref[l], preferred_element_type=f32) + vec[8:9, :D]
        y = _layernorm(y + ff, vec[9:10, :D], vec[10:11, :D])

    dn = d_final_ref[...]
    y = _layernorm(y, dn[0:1, :], dn[1:2, :])                        # module-level self.ln
    out_ref[...] = (jnp.dot(y, out_w_ref[...], preferred_element_type=f32)
                    + out_b_ref[...]).astype(out_ref.dtype)          # lane-dense [Sd, 128]


# ------------------------------ host-side wrapper ------------------------------
@jax.jit
def vit_seq2seq_forward(params, images, tgt_ids):
    kern = params["kern"]
    B = images.shape[0]
    Sd = tgt_ids.shape[1]
    nh = IMG_SIZE // PATCH

    # im2col patch extraction (conv with kernel == stride); one zero row per
    # batch is reserved for the CLS position (its embedding lives in add_base).
    patches = images.astype(jnp.float32).reshape(B, 3, nh, PATCH, nh, PATCH)
    patches = patches.transpose(0, 2, 4, 1, 3, 5).reshape(B, NUM_PATCHES, CPP)
    patches_ex = jnp.concatenate(
        [jnp.zeros((B, 1, CPP), jnp.float32), patches], axis=1)      # [B, Se, CPP]

    ids = tgt_ids.astype(jnp.int32)                                  # scalar prefetch

    def wspec(arr):   # whole-array block, constant index -> loaded once
        nd = arr.ndim
        return pl.BlockSpec(arr.shape, lambda b, ids_ref, _nd=nd: (0,) * _nd)

    weight_names = ("patch_w", "add_base", "e_w1", "e_w2", "e_vecs", "e_norm",
                    "tok_emb", "dec_pos", "d_w1", "d_w2", "d_vecs", "d_final",
                    "out_w", "out_b")
    weights = [kern[n] for n in weight_names]

    grid_spec = pltpu.PrefetchScalarGridSpec(
        num_scalar_prefetch=1,
        grid=(B,),
        in_specs=[pl.BlockSpec((None, SEQ_ENC, CPP), lambda b, ids_ref: (b, 0, 0))]
                + [wspec(w) for w in weights],
        out_specs=pl.BlockSpec((None, Sd, VOCAB_PAD), lambda b, ids_ref: (b, 0, 0)),
    )

    logits_pad = pl.pallas_call(
        functools.partial(_vit_seq2seq_kernel, seq_len=Sd),
        out_shape=jax.ShapeDtypeStruct((B, Sd, VOCAB_PAD), jnp.float32),
        grid_spec=grid_spec,
        compiler_params=pltpu.CompilerParams(
            dimension_semantics=("parallel",),           # both TCs on v7x
            vmem_limit_bytes=32 * 1024 * 1024),
    )(ids, patches_ex, *weights)
    return logits_pad[:, :, :VOCAB_SIZE]


# ------------------------------ parameter init --------------------------------
def init_params(key):
    keys = iter(jax.random.split(key, 64))

    def nrm(shape, scale=0.02):
        return (scale * jax.random.normal(next(keys), shape)).astype(jnp.float32)

    D = D_MODEL
    q_scale = 1.0 / math.sqrt(HEAD_DIM)    # folded into the Q columns of wqkv

    def enc_layer():
        wqkv = nrm((D, 3 * D)).at[:, :D].multiply(q_scale)
        wo = nrm((D, D))
        fc1 = nrm((D, ENC_MLP))
        fc2 = nrm((ENC_MLP, D))
        w1 = jnp.concatenate([fc1, wqkv, wo], axis=1)                # [D, 256]
        vec = jnp.zeros((8, 128), jnp.float32)
        vec = vec.at[0, :D].set(1.0)       # ln1 gamma
        vec = vec.at[4, :D].set(1.0)       # ln2 gamma
        # rows: 1 ln1_b, 2 bqkv (Q part would also be q_scaled), 3 bo,
        #       5 ln2_b, 6 fc1_b, 7 fc2_b -- all zero-initialized here.
        return w1, fc2, vec

    def dec_layer():
        wqkv = nrm((D, 3 * D)).at[:, :D].multiply(q_scale)
        wo = nrm((D, D))
        cross_w = nrm((D, D)) @ nrm((D, D))   # Wv @ Wo folded (single-token memory)
        fc1 = jnp.zeros((D, DEC_FFN_PAD), jnp.float32).at[:, :DEC_FFN].set(
            nrm((D, DEC_FFN)))
        fc2 = jnp.zeros((DEC_FFN_PAD, D), jnp.float32).at[:DEC_FFN, :].set(
            nrm((DEC_FFN, D)))
        w1 = jnp.concatenate([fc1, wqkv, wo, cross_w], axis=1)       # [D, 288]
        vec = jnp.zeros((16, 128), jnp.float32)
        vec = vec.at[3, :D].set(1.0)       # ln1 gamma
        vec = vec.at[5, :D].set(1.0)       # ln2 gamma
        vec = vec.at[9, :D].set(1.0)       # ln3 gamma
        # rows: 0 bqkv, 1 bo, 2 cross_b (= bv@Wo + bo), 4/6/10 ln betas,
        #       7 fc1_b (padded to 128), 8 fc2_b -- all zero-initialized here.
        return w1, fc2, vec

    e = [enc_layer() for _ in range(ENC_DEPTH)]
    d = [dec_layer() for _ in range(DEC_LAYERS)]

    tok_emb = nrm((VOCAB_SIZE, D)).at[PAD_ID].set(0.0)    # nn.Embedding(padding_idx)
    out_w = jnp.zeros((D, VOCAB_PAD), jnp.float32).at[:, :VOCAB_SIZE].set(
        nrm((D, VOCAB_SIZE)))

    cls = nrm((1, D))
    pos = nrm((SEQ_ENC, D))
    patch_b = jnp.zeros((D,), jnp.float32)
    add_base = jnp.concatenate([cls + pos[0:1], pos[1:] + patch_b[None, :]], axis=0)

    ln_pair = jnp.stack([jnp.ones((D,), jnp.float32), jnp.zeros((D,), jnp.float32)])

    kern = dict(
        patch_w=nrm((CPP, D)),
        add_base=add_base,                                  # [Se, D]
        e_w1=jnp.stack([t[0] for t in e]),                  # [Le, D, 256]
        e_w2=jnp.stack([t[1] for t in e]),                  # [Le, 128, D]
        e_vecs=jnp.stack([t[2] for t in e]),                # [Le, 8, 128]
        e_norm=ln_pair,                                     # [2, D]
        tok_emb=tok_emb,                                    # [V, D]
        dec_pos=jax.random.normal(next(keys), (MAX_SEQ_LEN, D)).astype(jnp.float32),
        d_w1=jnp.stack([t[0] for t in d]),                  # [Ld, D, 288]
        d_w2=jnp.stack([t[1] for t in d]),                  # [Ld, 128, D]
        d_vecs=jnp.stack([t[2] for t in d]),                # [Ld, 16, 128]
        d_final=ln_pair,                                    # [2, D]
        out_w=out_w,                                        # [D, 128]
        out_b=jnp.zeros((1, VOCAB_PAD), jnp.float32),
    )
    # TODO(synk): pretrained timm vit_base_patch16_224 weights are not loadable
    # here; parameters are deterministic synthetic initializations with matching
    # shapes/semantics.
    return dict(kern=kern)


# ------------------------------------ main ------------------------------------
if __name__ == "__main__":
    key = jax.random.PRNGKey(0)
    k_img, k_ids, k_par = jax.random.split(key, 3)

    batch, seq_len = 2, 8
    images = jax.random.normal(k_img, (batch, 3, IMG_SIZE, IMG_SIZE), jnp.float32)
    tgt_ids = jax.random.randint(k_ids, (batch, seq_len), 1, VOCAB_SIZE)
    tgt_ids = tgt_ids.at[:, -1].set(PAD_ID)        # exercise the key-padding mask

    params = init_params(k_par)
    logits = vit_seq2seq_forward(params, images, tgt_ids)
    logits = jax.block_until_ready(logits)

    assert logits.shape == (batch, seq_len, VOCAB_SIZE), logits.shape
    assert bool(jnp.all(jnp.isfinite(logits)))
    print("KERNEL_OK")
</pallas_src>

<mosaic_0001>
module attributes {stable_mosaic.version = 11 : i64} {
  func.func @_vit_seq2seq_kernel(%arg0: i32, %arg1: memref<2x8xi32, #tpu.memory_space<smem>>, %arg2: memref<1x17x192xf32, #tpu.memory_space<vmem>>, %arg3: memref<192x32xf32, #tpu.memory_space<vmem>>, %arg4: memref<17x32xf32, #tpu.memory_space<vmem>>, %arg5: memref<2x32x256xf32, #tpu.memory_space<vmem>>, %arg6: memref<2x128x32xf32, #tpu.memory_space<vmem>>, %arg7: memref<2x8x128xf32, #tpu.memory_space<vmem>>, %arg8: memref<2x32xf32, #tpu.memory_space<vmem>>, %arg9: memref<64x32xf32, #tpu.memory_space<vmem>>, %arg10: memref<16x32xf32, #tpu.memory_space<vmem>>, %arg11: memref<2x32x288xf32, #tpu.memory_space<vmem>>, %arg12: memref<2x128x32xf32, #tpu.memory_space<vmem>>, %arg13: memref<2x16x128xf32, #tpu.memory_space<vmem>>, %arg14: memref<2x32xf32, #tpu.memory_space<vmem>>, %arg15: memref<32x128xf32, #tpu.memory_space<vmem>>, %arg16: memref<1x128xf32, #tpu.memory_space<vmem>>, %arg17: memref<1x8x128xf32, #tpu.memory_space<vmem>>) attributes {dimension_semantics = [#tpu.dimension_semantics<parallel>], iteration_bounds = array<i64: 2>, scalar_prefetch = 1 : i64, scratch_operands = 0 : i64, tpu.core_type = #tpu.core_type<tc>, window_params = [{transform_indices = @transform_0, window_bounds = array<i64: 1, 17, 192>}, {pipeline_mode = #tpu.pipeline_mode<synchronous>, transform_indices = @transform_1, window_bounds = array<i64: 192, 32>}, {pipeline_mode = #tpu.pipeline_mode<synchronous>, transform_indices = @transform_2, window_bounds = array<i64: 17, 32>}, {pipeline_mode = #tpu.pipeline_mode<synchronous>, transform_indices = @transform_3, window_bounds = array<i64: 2, 32, 256>}, {pipeline_mode = #tpu.pipeline_mode<synchronous>, transform_indices = @transform_4, window_bounds = array<i64: 2, 128, 32>}, {pipeline_mode = #tpu.pipeline_mode<synchronous>, transform_indices = @transform_5, window_bounds = array<i64: 2, 8, 128>}, {pipeline_mode = #tpu.pipeline_mode<synchronous>, transform_indices = @transform_6, window_bounds = array<i64: 2, 32>}, {pipeline_mode = #tpu.pipeline_mode<synchronous>, transform_indices = @transform_7, window_bounds = array<i64: 64, 32>}, {pipeline_mode = #tpu.pipeline_mode<synchronous>, transform_indices = @transform_8, window_bounds = array<i64: 16, 32>}, {pipeline_mode = #tpu.pipeline_mode<synchronous>, transform_indices = @transform_9, window_bounds = array<i64: 2, 32, 288>}, {pipeline_mode = #tpu.pipeline_mode<synchronous>, transform_indices = @transform_10, window_bounds = array<i64: 2, 128, 32>}, {pipeline_mode = #tpu.pipeline_mode<synchronous>, transform_indices = @transform_11, window_bounds = array<i64: 2, 16, 128>}, {pipeline_mode = #tpu.pipeline_mode<synchronous>, transform_indices = @transform_12, window_bounds = array<i64: 2, 32>}, {pipeline_mode = #tpu.pipeline_mode<synchronous>, transform_indices = @transform_13, window_bounds = array<i64: 32, 128>}, {pipeline_mode = #tpu.pipeline_mode<synchronous>, transform_indices = @transform_14, window_bounds = array<i64: 1, 128>}, {transform_indices = @transform_15, window_bounds = array<i64: 1, 8, 128>}]} {
    %c0 = arith.constant 0 : index
    %c0_0 = arith.constant 0 : index
    %c0_1 = arith.constant 0 : index
    %0 = vector.load %arg2[%c0, %c0_0, %c0_1] : memref<1x17x192xf32, #tpu.memory_space<vmem>>, vector<1x17x192xf32>
    %1 = vector.shape_cast %0 : vector<1x17x192xf32> to vector<17x192xf32>
    %c0_2 = arith.constant 0 : index
    %c0_3 = arith.constant 0 : index
    %2 = vector.load %arg3[%c0_2, %c0_3] : memref<192x32xf32, #tpu.memory_space<vmem>>, vector<192x32xf32>
    %cst = arith.constant dense<0.000000e+00> : vector<17x32xf32>
    %3 = tpu.matmul %1, %2, %cst {dimension_numbers = #tpu.dot_dimension_numbers<[1], [0], [0], [1], [0, 0, 1, 1], [], []>} : vector<17x192xf32>, vector<192x32xf32>, vector<17x32xf32> -> vector<17x32xf32>
    %c0_4 = arith.constant 0 : index
    %c0_5 = arith.constant 0 : index
    %4 = vector.load %arg4[%c0_4, %c0_5] : memref<17x32xf32, #tpu.memory_space<vmem>>, vector<17x32xf32>
    %5 = arith.addf %3, %4 : vector<17x32xf32>
    %c0_6 = arith.constant 0 : index
    %c0_7 = arith.constant 0 : index
    %c0_8 = arith.constant 0 : index
    %6 = vector.load %arg5[%c0_6, %c0_7, %c0_8] : memref<2x32x256xf32, #tpu.memory_space<vmem>>, vector<1x32x256xf32>
    %7 = vector.shape_cast %6 : vector<1x32x256xf32> to vector<32x256xf32>
    %c0_9 = arith.constant 0 : index
    %c0_10 = arith.constant 0 : index
    %c0_11 = arith.constant 0 : index
    %8 = vector.load %arg7[%c0_9, %c0_10, %c0_11] : memref<2x8x128xf32, #tpu.memory_space<vmem>>, vector<1x8x128xf32>
    %9 = vector.shape_cast %8 : vector<1x8x128xf32> to vector<8x128xf32>
    %10 = vector.extract_strided_slice %9 {offsets = [0, 0], sizes = [1, 32], strides = [1, 1]} : vector<8x128xf32> to vector<1x32xf32>
    %11 = vector.extract_strided_slice %9 {offsets = [1, 0], sizes = [1, 32], strides = [1, 1]} : vector<8x128xf32> to vector<1x32xf32>
    %cst_12 = arith.constant dense<0.000000e+00> : vector<17xf32>
    %12 = vector.multi_reduction <add>, %5, %cst_12 [1] : vector<17x32xf32> to vector<17xf32>
    %13 = vector.shape_cast %12 : vector<17xf32> to vector<17x1xf32>
    %cst_13 = arith.constant 3.200000e+01 : f32
    %14 = vector.broadcast %cst_13 : f32 to vector<17x1xf32>
    %15 = arith.divf %13, %14 : vector<17x1xf32>
    %16 = vector.broadcast %15 : vector<17x1xf32> to vector<17x32xf32>
    %17 = arith.subf %5, %16 : vector<17x32xf32>
    %18 = arith.mulf %17, %17 : vector<17x32xf32>
    %cst_14 = arith.constant dense<0.000000e+00> : vector<17xf32>
    %19 = vector.multi_reduction <add>, %18, %cst_14 [1] : vector<17x32xf32> to vector<17xf32>
    %20 = vector.shape_cast %19 : vector<17xf32> to vector<17x1xf32>
    %cst_15 = arith.constant 3.200000e+01 : f32
    %21 = vector.broadcast %cst_15 : f32 to vector<17x1xf32>
    %22 = arith.divf %20, %21 : vector<17x1xf32>
    %cst_16 = arith.constant 9.99999974E-6 : f32
    %23 = vector.broadcast %cst_16 : f32 to vector<17x1xf32>
    %24 = arith.addf %22, %23 : vector<17x1xf32>
    %25 = math.rsqrt %24 : vector<17x1xf32>
    %26 = vector.broadcast %25 : vector<17x1xf32> to vector<17x32xf32>
    %27 = arith.mulf %17, %26 : vector<17x32xf32>
    %28 = vector.broadcast %10 : vector<1x32xf32> to vector<17x32xf32>
    %29 = arith.mulf %27, %28 : vector<17x32xf32>
    %30 = vector.broadcast %11 : vector<1x32xf32> to vector<17x32xf32>
    %31 = arith.addf %29, %30 : vector<17x32xf32>
    %32 = vector.extract_strided_slice %7 {offsets = [0, 128], sizes = [32, 96], strides = [1, 1]} : vector<32x256xf32> to vector<32x96xf32>
    %33 = vector.extract_strided_slice %9 {offsets = [2, 0], sizes = [1, 96], strides = [1, 1]} : vector<8x128xf32> to vector<1x96xf32>
    %34 = vector.extract_strided_slice %7 {offsets = [0, 224], sizes = [32, 32], strides = [1, 1]} : vector<32x256xf32> to vector<32x32xf32>
    %35 = vector.extract_strided_slice %9 {offsets = [3, 0], sizes = [1, 32], strides = [1, 1]} : vector<8x128xf32> to vector<1x32xf32>
    %cst_17 = arith.constant dense<0.000000e+00> : vector<17x96xf32>
    %36 = tpu.matmul %31, %32, %cst_17 {dimension_numbers = #tpu.dot_dimension_numbers<[1], [0], [0], [1], [0, 0, 1, 1], [], []>} : vector<17x32xf32>, vector<32x96xf32>, vector<17x96xf32> -> vector<17x96xf32>
    %37 = vector.broadcast %33 : vector<1x96xf32> to vector<17x96xf32>
    %38 = arith.addf %36, %37 : vector<17x96xf32>
    %39 = vector.extract_strided_slice %38 {offsets = [0, 0], sizes = [17, 8], strides = [1, 1]} : vector<17x96xf32> to vector<17x8xf32>
    %40 = vector.extract_strided_slice %38 {offsets = [0, 32], sizes = [17, 8], strides = [1, 1]} : vector<17x96xf32> to vector<17x8xf32>
    %41 = vector.extract_strided_slice %38 {offsets = [0, 64], sizes = [17, 8], strides = [1, 1]} : vector<17x96xf32> to vector<17x8xf32>
    %cst_18 = arith.constant dense<0.000000e+00> : vector<17x17xf32>
    %42 = tpu.matmul %39, %40, %cst_18 {dimension_numbers = #tpu.dot_dimension_numbers<[1], [1], [0], [0], [0, 0, 1, 0], [], []>} : vector<17x8xf32>, vector<17x8xf32>, vector<17x17xf32> -> vector<17x17xf32>
    %cst_19 = arith.constant dense<0xFF800000> : vector<17xf32>
    %43 = vector.multi_reduction <maximumf>, %42, %cst_19 [1] : vector<17x17xf32> to vector<17xf32>
    %44 = vector.shape_cast %43 : vector<17xf32> to vector<17x1xf32>
    %45 = vector.broadcast %44 : vector<17x1xf32> to vector<17x17xf32>
    %46 = arith.subf %42, %45 : vector<17x17xf32>
    %47 = math.exp %46 : vector<17x17xf32>
    %cst_20 = arith.constant dense<0.000000e+00> : vector<17xf32>
    %48 = vector.multi_reduction <add>, %47, %cst_20 [1] : vector<17x17xf32> to vector<17xf32>
    %49 = vector.shape_cast %48 : vector<17xf32> to vector<17x1xf32>
    %50 = tpu.reciprocal %49 {approx = true} : vector<17x1xf32> -> vector<17x1xf32>
    %51 = vector.broadcast %50 : vector<17x1xf32> to vector<17x17xf32>
    %52 = arith.mulf %47, %51 : vector<17x17xf32>
    %cst_21 = arith.constant dense<0.000000e+00> : vector<17x8xf32>
    %53 = tpu.matmul %52, %41, %cst_21 {dimension_numbers = #tpu.dot_dimension_numbers<[1], [0], [0], [1], [0, 0, 1, 1], [], []>} : vector<17x17xf32>, vector<17x8xf32>, vector<17x8xf32> -> vector<17x8xf32>
    %54 = vector.extract_strided_slice %38 {offsets = [0, 8], sizes = [17, 8], strides = [1, 1]} : vector<17x96xf32> to vector<17x8xf32>
    %55 = vector.extract_strided_slice %38 {offsets = [0, 40], sizes = [17, 8], strides = [1, 1]} : vector<17x96xf32> to vector<17x8xf32>
    %56 = vector.extract_strided_slice %38 {offsets = [0, 72], sizes = [17, 8], strides = [1, 1]} : vector<17x96xf32> to vector<17x8xf32>
    %cst_22 = arith.constant dense<0.000000e+00> : vector<17x17xf32>
    %57 = tpu.matmul %54, %55, %cst_22 {dimension_numbers = #tpu.dot_dimension_numbers<[1], [1], [0], [0], [0, 0, 1, 0], [], []>} : vector<17x8xf32>, vector<17x8xf32>, vector<17x17xf32> -> vector<17x17xf32>
    %cst_23 = arith.constant dense<0xFF800000> : vector<17xf32>
    %58 = vector.multi_reduction <maximumf>, %57, %cst_23 [1] : vector<17x17xf32> to vector<17xf32>
    %59 = vector.shape_cast %58 : vector<17xf32> to vector<17x1xf32>
    %60 = vector.broadcast %59 : vector<17x1xf32> to vector<17x17xf32>
    %61 = arith.subf %57, %60 : vector<17x17xf32>
    %62 = math.exp %61 : vector<17x17xf32>
    %cst_24 = arith.constant dense<0.000000e+00> : vector<17xf32>
    %63 = vector.multi_reduction <add>, %62, %cst_24 [1] : vector<17x17xf32> to vector<17xf32>
    %64 = vector.shape_cast %63 : vector<17xf32> to vector<17x1xf32>
    %65 = tpu.reciprocal %64 {approx = true} : vector<17x1xf32> -> vector<17x1xf32>
    %66 = vector.broadcast %65 : vector<17x1xf32> to vector<17x17xf32>
    %67 = arith.mulf %62, %66 : vector<17x17xf32>
    %cst_25 = arith.constant dense<0.000000e+00> : vector<17x8xf32>
    %68 = tpu.matmul %67, %56, %cst_25 {dimension_numbers = #tpu.dot_dimension_numbers<[1], [0], [0], [1], [0, 0, 1, 1], [], []>} : vector<17x17xf32>, vector<17x8xf32>, vector<17x8xf32> -> vector<17x8xf32>
    %69 = vector.extract_strided_slice %38 {offsets = [0, 16], sizes = [17, 8], strides = [1, 1]} : vector<17x96xf32> to vector<17x8xf32>
    %70 = vector.extract_strided_slice %38 {offsets = [0, 48], sizes = [17, 8], strides = [1, 1]} : vector<17x96xf32> to vector<17x8xf32>
    %71 = vector.extract_strided_slice %38 {offsets = [0, 80], sizes = [17, 8], strides = [1, 1]} : vector<17x96xf32> to vector<17x8xf32>
    %cst_26 = arith.constant dense<0.000000e+00> : vector<17x17xf32>
    %72 = tpu.matmul %69, %70, %cst_26 {dimension_numbers = #tpu.dot_dimension_numbers<[1], [1], [0], [0], [0, 0, 1, 0], [], []>} : vector<17x8xf32>, vector<17x8xf32>, vector<17x17xf32> -> vector<17x17xf32>
    %cst_27 = arith.constant dense<0xFF800000> : vector<17xf32>
    %73 = vector.multi_reduction <maximumf>, %72, %cst_27 [1] : vector<17x17xf32> to vector<17xf32>
    %74 = vector.shape_cast %73 : vector<17xf32> to vector<17x1xf32>
    %75 = vector.broadcast %74 : vector<17x1xf32> to vector<17x17xf32>
    %76 = arith.subf %72, %75 : vector<17x17xf32>
    %77 = math.exp %76 : vector<17x17xf32>
    %cst_28 = arith.constant dense<0.000000e+00> : vector<17xf32>
    %78 = vector.multi_reduction <add>, %77, %cst_28 [1] : vector<17x17xf32> to vector<17xf32>
    %79 = vector.shape_cast %78 : vector<17xf32> to vector<17x1xf32>
    %80 = tpu.reciprocal %79 {approx = true} : vector<17x1xf32> -> vector<17x1xf32>
    %81 = vector.broadcast %80 : vector<17x1xf32> to vector<17x17xf32>
    %82 = arith.mulf %77, %81 : vector<17x17xf32>
    %cst_29 = arith.constant dense<0.000000e+00> : vector<17x8xf32>
    %83 = tpu.matmul %82, %71, %cst_29 {dimension_numbers = #tpu.dot_dimension_numbers<[1], [0], [0], [1], [0, 0, 1, 1], [], []>} : vector<17x17xf32>, vector<17x8xf32>, vector<17x8xf32> -> vector<17x8xf32>
    %84 = vector.extract_strided_slice %38 {offsets = [0, 24], sizes = [17, 8], strides = [1, 1]} : vector<17x96xf32> to vector<17x8xf32>
    %85 = vector.extract_strided_slice %38 {offsets = [0, 56], sizes = [17, 8], strides = [1, 1]} : vector<17x96xf32> to vector<17x8xf32>
    %86 = vector.extract_strided_slice %38 {offsets = [0, 88], sizes = [17, 8], strides = [1, 1]} : vector<17x96xf32> to vector<17x8xf32>
    %cst_30 = arith.constant dense<0.000000e+00> : vector<17x17xf32>
    %87 = tpu.matmul %84, %85, %cst_30 {dimension_numbers = #tpu.dot_dimension_numbers<[1], [1], [0], [0], [0, 0, 1, 0], [], []>} : vector<17x8xf32>, vector<17x8xf32>, vector<17x17xf32> -> vector<17x17xf32>
    %cst_31 = arith.constant dense<0xFF800000> : vector<17xf32>
    %88 = vector.multi_reduction <maximumf>, %87, %cst_31 [1] : vector<17x17xf32> to vector<17xf32>
    %89 = vector.shape_cast %88 : vector<17xf32> to vector<17x1xf32>
    %90 = vector.broadcast %89 : vector<17x1xf32> to vector<17x17xf32>
    %91 = arith.subf %87, %90 : vector<17x17xf32>
    %92 = math.exp %91 : vector<17x17xf32>
    %cst_32 = arith.constant dense<0.000000e+00> : vector<17xf32>
    %93 = vector.multi_reduction <add>, %92, %cst_32 [1] : vector<17x17xf32> to vector<17xf32>
    %94 = vector.shape_cast %93 : vector<17xf32> to vector<17x1xf32>
    %95 = tpu.reciprocal %94 {approx = true} : vector<17x1xf32> -> vector<17x1xf32>
    %96 = vector.broadcast %95 : vector<17x1xf32> to vector<17x17xf32>
    %97 = arith.mulf %92, %96 : vector<17x17xf32>
    %cst_33 = arith.constant dense<0.000000e+00> : vector<17x8xf32>
    %98 = tpu.matmul %97, %86, %cst_33 {dimension_numbers = #tpu.dot_dimension_numbers<[1], [0], [0], [1], [0, 0, 1, 1], [], []>} : vector<17x17xf32>, vector<17x8xf32>, vector<17x8xf32> -> vector<17x8xf32>
    %99 = tpu.concatenate %53, %68, %83, %98 in 1 : vector<17x8xf32>, vector<17x8xf32>, vector<17x8xf32>, vector<17x8xf32> -> vector<17x32xf32>
    %cst_34 = arith.constant dense<0.000000e+00> : vector<17x32xf32>
    %100 = tpu.matmul %99, %34, %cst_34 {dimension_numbers = #tpu.dot_dimension_numbers<[1], [0], [0], [1], [0, 0, 1, 1], [], []>} : vector<17x32xf32>, vector<32x32xf32>, vector<17x32xf32> -> vector<17x32xf32>
    %101 = vector.broadcast %35 : vector<1x32xf32> to vector<17x32xf32>
    %102 = arith.addf %100, %101 : vector<17x32xf32>
    %103 = arith.addf %5, %102 : vector<17x32xf32>
    %104 = vector.extract_strided_slice %9 {offsets = [4, 0], sizes = [1, 32], strides = [1, 1]} : vector<8x128xf32> to vector<1x32xf32>
    %105 = vector.extract_strided_slice %9 {offsets = [5, 0], sizes = [1, 32], strides = [1, 1]} : vector<8x128xf32> to vector<1x32xf32>
    %cst_35 = arith.constant dense<0.000000e+00> : vector<17xf32>
    %106 = vector.multi_reduction <add>, %103, %cst_35 [1] : vector<17x32xf32> to vector<17xf32>
    %107 = vector.shape_cast %106 : vector<17xf32> to vector<17x1xf32>
    %cst_36 = arith.constant 3.200000e+01 : f32
    %108 = vector.broadcast %cst_36 : f32 to vector<17x1xf32>
    %109 = arith.divf %107, %108 : vector<17x1xf32>
    %110 = vector.broadcast %109 : vector<17x1xf32> to vector<17x32xf32>
    %111 = arith.subf %103, %110 : vector<17x32xf32>
    %112 = arith.mulf %111, %111 : vector<17x32xf32>
    %cst_37 = arith.constant dense<0.000000e+00> : vector<17xf32>
    %113 = vector.multi_reduction <add>, %112, %cst_37 [1] : vector<17x32xf32> to vector<17xf32>
    %114 = vector.shape_cast %113 : vector<17xf32> to vector<17x1xf32>
    %cst_38 = arith.constant 3.200000e+01 : f32
    %115 = vector.broadcast %cst_38 : f32 to vector<17x1xf32>
    %116 = arith.divf %114, %115 : vector<17x1xf32>
    %cst_39 = arith.constant 9.99999974E-6 : f32
    %117 = vector.broadcast %cst_39 : f32 to vector<17x1xf32>
    %118 = arith.addf %116, %117 : vector<17x1xf32>
    %119 = math.rsqrt %118 : vector<17x1xf32>
    %120 = vector.broadcast %119 : vector<17x1xf32> to vector<17x32xf32>
    %121 = arith.mulf %111, %120 : vector<17x32xf32>
    %122 = vector.broadcast %104 : vector<1x32xf32> to vector<17x32xf32>
    %123 = arith.mulf %121, %122 : vector<17x32xf32>
    %124 = vector.broadcast %105 : vector<1x32xf32> to vector<17x32xf32>
    %125 = arith.addf %123, %124 : vector<17x32xf32>
    %126 = vector.extract_strided_slice %7 {offsets = [0, 0], sizes = [32, 128], strides = [1, 1]} : vector<32x256xf32> to vector<32x128xf32>
    %cst_40 = arith.constant dense<0.000000e+00> : vector<17x128xf32>
    %127 = tpu.matmul %125, %126, %cst_40 {dimension_numbers = #tpu.dot_dimension_numbers<[1], [0], [0], [1], [0, 0, 1, 1], [], []>} : vector<17x32xf32>, vector<32x128xf32>, vector<17x128xf32> -> vector<17x128xf32>
    %128 = vector.extract_strided_slice %9 {offsets = [6, 0], sizes = [1, 128], strides = [1, 1]} : vector<8x128xf32> to vector<1x128xf32>
    %129 = vector.broadcast %128 : vector<1x128xf32> to vector<17x128xf32>
    %130 = arith.addf %127, %129 : vector<17x128xf32>
    %cst_41 = arith.constant 5.000000e-01 : f32
    %131 = vector.broadcast %cst_41 : f32 to vector<17x128xf32>
    %132 = arith.mulf %131, %130 : vector<17x128xf32>
    %cst_42 = arith.constant 0.707106769 : f32
    %133 = vector.broadcast %cst_42 : f32 to vector<17x128xf32>
    %134 = arith.mulf %130, %133 : vector<17x128xf32>
    %135 = math.absf %134 : vector<17x128xf32>
    %cst_43 = arith.constant 0.327591091 : f32
    %136 = vector.broadcast %cst_43 : f32 to vector<17x128xf32>
    %137 = arith.mulf %136, %135 : vector<17x128xf32>
    %cst_44 = arith.constant 1.000000e+00 : f32
    %138 = vector.broadcast %cst_44 : f32 to vector<17x128xf32>
    %139 = arith.addf %138, %137 : vector<17x128xf32>
    %cst_45 = arith.constant 1.000000e+00 : f32
    %140 = vector.broadcast %cst_45 : f32 to vector<17x128xf32>
    %141 = arith.divf %140, %139 : vector<17x128xf32>
    %cst_46 = arith.constant 1.06140542 : f32
    %142 = vector.broadcast %cst_46 : f32 to vector<17x128xf32>
    %143 = arith.mulf %141, %142 : vector<17x128xf32>
    %cst_47 = arith.constant -1.45315206 : f32
    %144 = vector.broadcast %cst_47 : f32 to vector<17x128xf32>
    %145 = arith.addf %144, %143 : vector<17x128xf32>
    %146 = arith.mulf %141, %145 : vector<17x128xf32>
    %cst_48 = arith.constant 1.42141378 : f32
    %147 = vector.broadcast %cst_48 : f32 to vector<17x128xf32>
    %148 = arith.addf %147, %146 : vector<17x128xf32>
    %149 = arith.mulf %141, %148 : vector<17x128xf32>
    %cst_49 = arith.constant -0.284496725 : f32
    %150 = vector.broadcast %cst_49 : f32 to vector<17x128xf32>
    %151 = arith.addf %150, %149 : vector<17x128xf32>
    %152 = arith.mulf %141, %151 : vector<17x128xf32>
    %cst_50 = arith.constant 0.254829586 : f32
    %153 = vector.broadcast %cst_50 : f32 to vector<17x128xf32>
    %154 = arith.addf %153, %152 : vector<17x128xf32>
    %155 = arith.mulf %141, %154 : vector<17x128xf32>
    %156 = arith.mulf %134, %134 : vector<17x128xf32>
    %cst_51 = arith.constant 0.000000e+00 : f32
    %157 = vector.broadcast %cst_51 : f32 to vector<17x128xf32>
    %158 = arith.subf %157, %156 : vector<17x128xf32>
    %159 = math.exp %158 : vector<17x128xf32>
    %160 = arith.mulf %155, %159 : vector<17x128xf32>
    %cst_52 = arith.constant 1.000000e+00 : f32
    %161 = vector.broadcast %cst_52 : f32 to vector<17x128xf32>
    %162 = arith.subf %161, %160 : vector<17x128xf32>
    %cst_53 = arith.constant 0.000000e+00 : f32
    %163 = vector.broadcast %cst_53 : f32 to vector<17x128xf32>
    %164 = arith.cmpf oge, %134, %163 : vector<17x128xf32>
    %cst_54 = arith.constant 0.000000e+00 : f32
    %165 = vector.broadcast %cst_54 : f32 to vector<17x128xf32>
    %166 = arith.subf %165, %162 : vector<17x128xf32>
    %167 = arith.select %164, %162, %166 : vector<17x128xi1>, vector<17x128xf32>
    %cst_55 = arith.constant 1.000000e+00 : f32
    %168 = vector.broadcast %cst_55 : f32 to vector<17x128xf32>
    %169 = arith.addf %168, %167 : vector<17x128xf32>
    %170 = arith.mulf %132, %169 : vector<17x128xf32>
    %c0_56 = arith.constant 0 : index
    %c0_57 = arith.constant 0 : index
    %c0_58 = arith.constant 0 : index
    %171 = vector.load %arg6[%c0_56, %c0_57, %c0_58] : memref<2x128x32xf32, #tpu.memory_space<vmem>>, vector<1x128x32xf32>
    %172 = vector.shape_cast %171 : vector<1x128x32xf32> to vector<128x32xf32>
    %cst_59 = arith.constant dense<0.000000e+00> : vector<17x32xf32>
    %173 = tpu.matmul %170, %172, %cst_59 {dimension_numbers = #tpu.dot_dimension_numbers<[1], [0], [0], [1], [0, 0, 1, 1], [], []>} : vector<17x128xf32>, vector<128x32xf32>, vector<17x32xf32> -> vector<17x32xf32>
    %174 = arith.addf %103, %173 : vector<17x32xf32>
    %175 = vector.extract_strided_slice %9 {offsets = [7, 0], sizes = [1, 32], strides = [1, 1]} : vector<8x128xf32> to vector<1x32xf32>
    %176 = vector.broadcast %175 : vector<1x32xf32> to vector<17x32xf32>
    %177 = arith.addf %174, %176 : vector<17x32xf32>
    %c1 = arith.constant 1 : index
    %c0_60 = arith.constant 0 : index
    %c0_61 = arith.constant 0 : index
    %178 = vector.load %arg5[%c1, %c0_60, %c0_61] : memref<2x32x256xf32, #tpu.memory_space<vmem>>, vector<1x32x256xf32>
    %179 = vector.shape_cast %178 : vector<1x32x256xf32> to vector<32x256xf32>
    %c1_62 = arith.constant 1 : index
    %c0_63 = arith.constant 0 : index
    %c0_64 = arith.constant 0 : index
    %180 = vector.load %arg7[%c1_62, %c0_63, %c0_64] : memref<2x8x128xf32, #tpu.memory_space<vmem>>, vector<1x8x128xf32>
    %181 = vector.shape_cast %180 : vector<1x8x128xf32> to vector<8x128xf32>
    %182 = vector.extract_strided_slice %181 {offsets = [0, 0], sizes = [1, 32], strides = [1, 1]} : vector<8x128xf32> to vector<1x32xf32>
    %183 = vector.extract_strided_slice %181 {offsets = [1, 0], sizes = [1, 32], strides = [1, 1]} : vector<8x128xf32> to vector<1x32xf32>
    %cst_65 = arith.constant dense<0.000000e+00> : vector<17xf32>
    %184 = vector.multi_reduction <add>, %177, %cst_65 [1] : vector<17x32xf32> to vector<17xf32>
    %185 = vector.shape_cast %184 : vector<17xf32> to vector<17x1xf32>
    %cst_66 = arith.constant 3.200000e+01 : f32
    %186 = vector.broadcast %cst_66 : f32 to vector<17x1xf32>
    %187 = arith.divf %185, %186 : vector<17x1xf32>
    %188 = vector.broadcast %187 : vector<17x1xf32> to vector<17x32xf32>
    %189 = arith.subf %177, %188 : vector<17x32xf32>
    %190 = arith.mulf %189, %189 : vector<17x32xf32>
    %cst_67 = arith.constant dense<0.000000e+00> : vector<17xf32>
    %191 = vector.multi_reduction <add>, %190, %cst_67 [1] : vector<17x32xf32> to vector<17xf32>
    %192 = vector.shape_cast %191 : vector<17xf32> to vector<17x1xf32>
    %cst_68 = arith.constant 3.200000e+01 : f32
    %193 = vector.broadcast %cst_68 : f32 to vector<17x1xf32>
    %194 = arith.divf %192, %193 : vector<17x1xf32>
    %cst_69 = arith.constant 9.99999974E-6 : f32
    %195 = vector.broadcast %cst_69 : f32 to vector<17x1xf32>
    %196 = arith.addf %194, %195 : vector<17x1xf32>
    %197 = math.rsqrt %196 : vector<17x1xf32>
    %198 = vector.broadcast %197 : vector<17x1xf32> to vector<17x32xf32>
    %199 = arith.mulf %189, %198 : vector<17x32xf32>
    %200 = vector.broadcast %182 : vector<1x32xf32> to vector<17x32xf32>
    %201 = arith.mulf %199, %200 : vector<17x32xf32>
    %202 = vector.broadcast %183 : vector<1x32xf32> to vector<17x32xf32>
    %203 = arith.addf %201, %202 : vector<17x32xf32>
    %204 = vector.extract_strided_slice %179 {offsets = [0, 128], sizes = [32, 96], strides = [1, 1]} : vector<32x256xf32> to vector<32x96xf32>
    %205 = vector.extract_strided_slice %181 {offsets = [2, 0], sizes = [1, 96], strides = [1, 1]} : vector<8x128xf32> to vector<1x96xf32>
    %206 = vector.extract_strided_slice %179 {offsets = [0, 224], sizes = [32, 32], strides = [1, 1]} : vector<32x256xf32> to vector<32x32xf32>
    %207 = vector.extract_strided_slice %181 {offsets = [3, 0], sizes = [1, 32], strides = [1, 1]} : vector<8x128xf32> to vector<1x32xf32>
    %cst_70 = arith.constant dense<0.000000e+00> : vector<17x96xf32>
    %208 = tpu.matmul %203, %204, %cst_70 {dimension_numbers = #tpu.dot_dimension_numbers<[1], [0], [0], [1], [0, 0, 1, 1], [], []>} : vector<17x32xf32>, vector<32x96xf32>, vector<17x96xf32> -> vector<17x96xf32>
    %209 = vector.broadcast %205 : vector<1x96xf32> to vector<17x96xf32>
    %210 = arith.addf %208, %209 : vector<17x96xf32>
    %211 = vector.extract_strided_slice %210 {offsets = [0, 0], sizes = [17, 8], strides = [1, 1]} : vector<17x96xf32> to vector<17x8xf32>
    %212 = vector.extract_strided_slice %210 {offsets = [0, 32], sizes = [17, 8], strides = [1, 1]} : vector<17x96xf32> to vector<17x8xf32>
    %213 = vector.extract_strided_slice %210 {offsets = [0, 64], sizes = [17, 8], strides = [1, 1]} : vector<17x96xf32> to vector<17x8xf32>
    %cst_71 = arith.constant dense<0.000000e+00> : vector<17x17xf32>
    %214 = tpu.matmul %211, %212, %cst_71 {dimension_numbers = #tpu.dot_dimension_numbers<[1], [1], [0], [0], [0, 0, 1, 0], [], []>} : vector<17x8xf32>, vector<17x8xf32>, vector<17x17xf32> -> vector<17x17xf32>
    %cst_72 = arith.constant dense<0xFF800000> : vector<17xf32>
    %215 = vector.multi_reduction <maximumf>, %214, %cst_72 [1] : vector<17x17xf32> to vector<17xf32>
    %216 = vector.shape_cast %215 : vector<17xf32> to vector<17x1xf32>
    %217 = vector.broadcast %216 : vector<17x1xf32> to vector<17x17xf32>
    %218 = arith.subf %214, %217 : vector<17x17xf32>
    %219 = math.exp %218 : vector<17x17xf32>
    %cst_73 = arith.constant dense<0.000000e+00> : vector<17xf32>
    %220 = vector.multi_reduction <add>, %219, %cst_73 [1] : vector<17x17xf32> to vector<17xf32>
    %221 = vector.shape_cast %220 : vector<17xf32> to vector<17x1xf32>
    %222 = tpu.reciprocal %221 {approx = true} : vector<17x1xf32> -> vector<17x1xf32>
    %223 = vector.broadcast %222 : vector<17x1xf32> to vector<17x17xf32>
    %224 = arith.mulf %219, %223 : vector<17x17xf32>
    %cst_74 = arith.constant dense<0.000000e+00> : vector<17x8xf32>
    %225 = tpu.matmul %224, %213, %cst_74 {dimension_numbers = #tpu.dot_dimension_numbers<[1], [0], [0], [1], [0, 0, 1, 1], [], []>} : vector<17x17xf32>, vector<17x8xf32>, vector<17x8xf32> -> vector<17x8xf32>
    %226 = vector.extract_strided_slice %210 {offsets = [0, 8], sizes = [17, 8], strides = [1, 1]} : vector<17x96xf32> to vector<17x8xf32>
    %227 = vector.extract_strided_slice %210 {offsets = [0, 40], sizes = [17, 8], strides = [1, 1]} : vector<17x96xf32> to vector<17x8xf32>
    %228 = vector.extract_strided_slice %210 {offsets = [0, 72], sizes = [17, 8], strides = [1, 1]} : vector<17x96xf32> to vector<17x8xf32>
    %cst_75 = arith.constant dense<0.000000e+00> : vector<17x17xf32>
    %229 = tpu.matmul %226, %227, %cst_75 {dimension_numbers = #tpu.dot_dimension_numbers<[1], [1], [0], [0], [0, 0, 1, 0], [], []>} : vector<17x8xf32>, vector<17x8xf32>, vector<17x17xf32> -> vector<17x17xf32>
    %cst_76 = arith.constant dense<0xFF800000> : vector<17xf32>
    %230 = vector.multi_reduction <maximumf>, %229, %cst_76 [1] : vector<17x17xf32> to vector<17xf32>
    %231 = vector.shape_cast %230 : vector<17xf32> to vector<17x1xf32>
    %232 = vector.broadcast %231 : vector<17x1xf32> to vector<17x17xf32>
    %233 = arith.subf %229, %232 : vector<17x17xf32>
    %234 = math.exp %233 : vector<17x17xf32>
    %cst_77 = arith.constant dense<0.000000e+00> : vector<17xf32>
    %235 = vector.multi_reduction <add>, %234, %cst_77 [1] : vector<17x17xf32> to vector<17xf32>
    %236 = vector.shape_cast %235 : vector<17xf32> to vector<17x1xf32>
    %237 = tpu.reciprocal %236 {approx = true} : vector<17x1xf32> -> vector<17x1xf32>
    %238 = vector.broadcast %237 : vector<17x1xf32> to vector<17x17xf32>
    %239 = arith.mulf %234, %238 : vector<17x17xf32>
    %cst_78 = arith.constant dense<0.000000e+00> : vector<17x8xf32>
    %240 = tpu.matmul %239, %228, %cst_78 {dimension_numbers = #tpu.dot_dimension_numbers<[1], [0], [0], [1], [0, 0, 1, 1], [], []>} : vector<17x17xf32>, vector<17x8xf32>, vector<17x8xf32> -> vector<17x8xf32>
    %241 = vector.extract_strided_slice %210 {offsets = [0, 16], sizes = [17, 8], strides = [1, 1]} : vector<17x96xf32> to vector<17x8xf32>
    %242 = vector.extract_strided_slice %210 {offsets = [0, 48], sizes = [17, 8], strides = [1, 1]} : vector<17x96xf32> to vector<17x8xf32>
    %243 = vector.extract_strided_slice %210 {offsets = [0, 80], sizes = [17, 8], strides = [1, 1]} : vector<17x96xf32> to vector<17x8xf32>
    %cst_79 = arith.constant dense<0.000000e+00> : vector<17x17xf32>
    %244 = tpu.matmul %241, %242, %cst_79 {dimension_numbers = #tpu.dot_dimension_numbers<[1], [1], [0], [0], [0, 0, 1, 0], [], []>} : vector<17x8xf32>, vector<17x8xf32>, vector<17x17xf32> -> vector<17x17xf32>
    %cst_80 = arith.constant dense<0xFF800000> : vector<17xf32>
    %245 = vector.multi_reduction <maximumf>, %244, %cst_80 [1] : vector<17x17xf32> to vector<17xf32>
    %246 = vector.shape_cast %245 : vector<17xf32> to vector<17x1xf32>
    %247 = vector.broadcast %246 : vector<17x1xf32> to vector<17x17xf32>
    %248 = arith.subf %244, %247 : vector<17x17xf32>
    %249 = math.exp %248 : vector<17x17xf32>
    %cst_81 = arith.constant dense<0.000000e+00> : vector<17xf32>
    %250 = vector.multi_reduction <add>, %249, %cst_81 [1] : vector<17x17xf32> to vector<17xf32>
    %251 = vector.shape_cast %250 : vector<17xf32> to vector<17x1xf32>
    %252 = tpu.reciprocal %251 {approx = true} : vector<17x1xf32> -> vector<17x1xf32>
    %253 = vector.broadcast %252 : vector<17x1xf32> to vector<17x17xf32>
    %254 = arith.mulf %249, %253 : vector<17x17xf32>
    %cst_82 = arith.constant dense<0.000000e+00> : vector<17x8xf32>
    %255 = tpu.matmul %254, %243, %cst_82 {dimension_numbers = #tpu.dot_dimension_numbers<[1], [0], [0], [1], [0, 0, 1, 1], [], []>} : vector<17x17xf32>, vector<17x8xf32>, vector<17x8xf32> -> vector<17x8xf32>
    %256 = vector.extract_strided_slice %210 {offsets = [0, 24], sizes = [17, 8], strides = [1, 1]} : vector<17x96xf32> to vector<17x8xf32>
    %257 = vector.extract_strided_slice %210 {offsets = [0, 56], sizes = [17, 8], strides = [1, 1]} : vector<17x96xf32> to vector<17x8xf32>
    %258 = vector.extract_strided_slice %210 {offsets = [0, 88], sizes = [17, 8], strides = [1, 1]} : vector<17x96xf32> to vector<17x8xf32>
    %cst_83 = arith.constant dense<0.000000e+00> : vector<17x17xf32>
    %259 = tpu.matmul %256, %257, %cst_83 {dimension_numbers = #tpu.dot_dimension_numbers<[1], [1], [0], [0], [0, 0, 1, 0], [], []>} : vector<17x8xf32>, vector<17x8xf32>, vector<17x17xf32> -> vector<17x17xf32>
    %cst_84 = arith.constant dense<0xFF800000> : vector<17xf32>
    %260 = vector.multi_reduction <maximumf>, %259, %cst_84 [1] : vector<17x17xf32> to vector<17xf32>
    %261 = vector.shape_cast %260 : vector<17xf32> to vector<17x1xf32>
    %262 = vector.broadcast %261 : vector<17x1xf32> to vector<17x17xf32>
    %263 = arith.subf %259, %262 : vector<17x17xf32>
    %264 = math.exp %263 : vector<17x17xf32>
    %cst_85 = arith.constant dense<0.000000e+00> : vector<17xf32>
    %265 = vector.multi_reduction <add>, %264, %cst_85 [1] : vector<17x17xf32> to vector<17xf32>
    %266 = vector.shape_cast %265 : vector<17xf32> to vector<17x1xf32>
    %267 = tpu.reciprocal %266 {approx = true} : vector<17x1xf32> -> vector<17x1xf32>
    %268 = vector.broadcast %267 : vector<17x1xf32> to vector<17x17xf32>
    %269 = arith.mulf %264, %268 : vector<17x17xf32>
    %cst_86 = arith.constant dense<0.000000e+00> : vector<17x8xf32>
    %270 = tpu.matmul %269, %258, %cst_86 {dimension_numbers = #tpu.dot_dimension_numbers<[1], [0], [0], [1], [0, 0, 1, 1], [], []>} : vector<17x17xf32>, vector<17x8xf32>, vector<17x8xf32> -> vector<17x8xf32>
    %271 = tpu.concatenate %225, %240, %255, %270 in 1 : vector<17x8xf32>, vector<17x8xf32>, vector<17x8xf32>, vector<17x8xf32> -> vector<17x32xf32>
    %cst_87 = arith.constant dense<0.000000e+00> : vector<17x32xf32>
    %272 = tpu.matmul %271, %206, %cst_87 {dimension_numbers = #tpu.dot_dimension_numbers<[1], [0], [0], [1], [0, 0, 1, 1], [], []>} : vector<17x32xf32>, vector<32x32xf32>, vector<17x32xf32> -> vector<17x32xf32>
    %273 = vector.broadcast %207 : vector<1x32xf32> to vector<17x32xf32>
    %274 = arith.addf %272, %273 : vector<17x32xf32>
    %275 = arith.addf %177, %274 : vector<17x32xf32>
    %276 = vector.extract_strided_slice %181 {offsets = [4, 0], sizes = [1, 32], strides = [1, 1]} : vector<8x128xf32> to vector<1x32xf32>
    %277 = vector.extract_strided_slice %181 {offsets = [5, 0], sizes = [1, 32], strides = [1, 1]} : vector<8x128xf32> to vector<1x32xf32>
    %cst_88 = arith.constant dense<0.000000e+00> : vector<17xf32>
    %278 = vector.multi_reduction <add>, %275, %cst_88 [1] : vector<17x32xf32> to vector<17xf32>
    %279 = vector.shape_cast %278 : vector<17xf32> to vector<17x1xf32>
    %cst_89 = arith.constant 3.200000e+01 : f32
    %280 = vector.broadcast %cst_89 : f32 to vector<17x1xf32>
    %281 = arith.divf %279, %280 : vector<17x1xf32>
    %282 = vector.broadcast %281 : vector<17x1xf32> to vector<17x32xf32>
    %283 = arith.subf %275, %282 : vector<17x32xf32>
    %284 = arith.mulf %283, %283 : vector<17x32xf32>
    %cst_90 = arith.constant dense<0.000000e+00> : vector<17xf32>
    %285 = vector.multi_reduction <add>, %284, %cst_90 [1] : vector<17x32xf32> to vector<17xf32>
    %286 = vector.shape_cast %285 : vector<17xf32> to vector<17x1xf32>
    %cst_91 = arith.constant 3.200000e+01 : f32
    %287 = vector.broadcast %cst_91 : f32 to vector<17x1xf32>
    %288 = arith.divf %286, %287 : vector<17x1xf32>
    %cst_92 = arith.constant 9.99999974E-6 : f32
    %289 = vector.broadcast %cst_92 : f32 to vector<17x1xf32>
    %290 = arith.addf %288, %289 : vector<17x1xf32>
    %291 = math.rsqrt %290 : vector<17x1xf32>
    %292 = vector.broadcast %291 : vector<17x1xf32> to vector<17x32xf32>
    %293 = arith.mulf %283, %292 : vector<17x32xf32>
    %294 = vector.broadcast %276 : vector<1x32xf32> to vector<17x32xf32>
    %295 = arith.mulf %293, %294 : vector<17x32xf32>
    %296 = vector.broadcast %277 : vector<1x32xf32> to vector<17x32xf32>
    %297 = arith.addf %295, %296 : vector<17x32xf32>
    %298 = vector.extract_strided_slice %179 {offsets = [0, 0], sizes = [32, 128], strides = [1, 1]} : vector<32x256xf32> to vector<32x128xf32>
    %cst_93 = arith.constant dense<0.000000e+00> : vector<17x128xf32>
    %299 = tpu.matmul %297, %298, %cst_93 {dimension_numbers = #tpu.dot_dimension_numbers<[1], [0], [0], [1], [0, 0, 1, 1], [], []>} : vector<17x32xf32>, vector<32x128xf32>, vector<17x128xf32> -> vector<17x128xf32>
    %300 = vector.extract_strided_slice %181 {offsets = [6, 0], sizes = [1, 128], strides = [1, 1]} : vector<8x128xf32> to vector<1x128xf32>
    %301 = vector.broadcast %300 : vector<1x128xf32> to vector<17x128xf32>
    %302 = arith.addf %299, %301 : vector<17x128xf32>
    %cst_94 = arith.constant 5.000000e-01 : f32
    %303 = vector.broadcast %cst_94 : f32 to vector<17x128xf32>
    %304 = arith.mulf %303, %302 : vector<17x128xf32>
    %cst_95 = arith.constant 0.707106769 : f32
    %305 = vector.broadcast %cst_95 : f32 to vector<17x128xf32>
    %306 = arith.mulf %302, %305 : vector<17x128xf32>
    %307 = math.absf %306 : vector<17x128xf32>
    %cst_96 = arith.constant 0.327591091 : f32
    %308 = vector.broadcast %cst_96 : f32 to vector<17x128xf32>
    %309 = arith.mulf %308, %307 : vector<17x128xf32>
    %cst_97 = arith.constant 1.000000e+00 : f32
    %310 = vector.broadcast %cst_97 : f32 to vector<17x128xf32>
    %311 = arith.addf %310, %309 : vector<17x128xf32>
    %cst_98 = arith.constant 1.000000e+00 : f32
    %312 = vector.broadcast %cst_98 : f32 to vector<17x128xf32>
    %313 = arith.divf %312, %311 : vector<17x128xf32>
    %cst_99 = arith.constant 1.06140542 : f32
    %314 = vector.broadcast %cst_99 : f32 to vector<17x128xf32>
    %315 = arith.mulf %313, %314 : vector<17x128xf32>
    %cst_100 = arith.constant -1.45315206 : f32
    %316 = vector.broadcast %cst_100 : f32 to vector<17x128xf32>
    %317 = arith.addf %316, %315 : vector<17x128xf32>
    %318 = arith.mulf %313, %317 : vector<17x128xf32>
    %cst_101 = arith.constant 1.42141378 : f32
    %319 = vector.broadcast %cst_101 : f32 to vector<17x128xf32>
    %320 = arith.addf %319, %318 : vector<17x128xf32>
    %321 = arith.mulf %313, %320 : vector<17x128xf32>
    %cst_102 = arith.constant -0.284496725 : f32
    %322 = vector.broadcast %cst_102 : f32 to vector<17x128xf32>
    %323 = arith.addf %322, %321 : vector<17x128xf32>
    %324 = arith.mulf %313, %323 : vector<17x128xf32>
    %cst_103 = arith.constant 0.254829586 : f32
    %325 = vector.broadcast %cst_103 : f32 to vector<17x128xf32>
    %326 = arith.addf %325, %324 : vector<17x128xf32>
    %327 = arith.mulf %313, %326 : vector<17x128xf32>
    %328 = arith.mulf %306, %306 : vector<17x128xf32>
    %cst_104 = arith.constant 0.000000e+00 : f32
    %329 = vector.broadcast %cst_104 : f32 to vector<17x128xf32>
    %330 = arith.subf %329, %328 : vector<17x128xf32>
    %331 = math.exp %330 : vector<17x128xf32>
    %332 = arith.mulf %327, %331 : vector<17x128xf32>
    %cst_105 = arith.constant 1.000000e+00 : f32
    %333 = vector.broadcast %cst_105 : f32 to vector<17x128xf32>
    %334 = arith.subf %333, %332 : vector<17x128xf32>
    %cst_106 = arith.constant 0.000000e+00 : f32
    %335 = vector.broadcast %cst_106 : f32 to vector<17x128xf32>
    %336 = arith.cmpf oge, %306, %335 : vector<17x128xf32>
    %cst_107 = arith.constant 0.000000e+00 : f32
    %337 = vector.broadcast %cst_107 : f32 to vector<17x128xf32>
    %338 = arith.subf %337, %334 : vector<17x128xf32>
    %339 = arith.select %336, %334, %338 : vector<17x128xi1>, vector<17x128xf32>
    %cst_108 = arith.constant 1.000000e+00 : f32
    %340 = vector.broadcast %cst_108 : f32 to vector<17x128xf32>
    %341 = arith.addf %340, %339 : vector<17x128xf32>
    %342 = arith.mulf %304, %341 : vector<17x128xf32>
    %c1_109 = arith.constant 1 : index
    %c0_110 = arith.constant 0 : index
    %c0_111 = arith.constant 0 : index
    %343 = vector.load %arg6[%c1_109, %c0_110, %c0_111] : memref<2x128x32xf32, #tpu.memory_space<vmem>>, vector<1x128x32xf32>
    %344 = vector.shape_cast %343 : vector<1x128x32xf32> to vector<128x32xf32>
    %cst_112 = arith.constant dense<0.000000e+00> : vector<17x32xf32>
    %345 = tpu.matmul %342, %344, %cst_112 {dimension_numbers = #tpu.dot_dimension_numbers<[1], [0], [0], [1], [0, 0, 1, 1], [], []>} : vector<17x128xf32>, vector<128x32xf32>, vector<17x32xf32> -> vector<17x32xf32>
    %346 = arith.addf %275, %345 : vector<17x32xf32>
    %347 = vector.extract_strided_slice %181 {offsets = [7, 0], sizes = [1, 32], strides = [1, 1]} : vector<8x128xf32> to vector<1x32xf32>
    %348 = vector.broadcast %347 : vector<1x32xf32> to vector<17x32xf32>
    %349 = arith.addf %346, %348 : vector<17x32xf32>
    %c0_113 = arith.constant 0 : index
    %c0_114 = arith.constant 0 : index
    %350 = vector.load %arg8[%c0_113, %c0_114] : memref<2x32xf32, #tpu.memory_space<vmem>>, vector<2x32xf32>
    %351 = vector.extract_strided_slice %350 {offsets = [0, 0], sizes = [1, 32], strides = [1, 1]} : vector<2x32xf32> to vector<1x32xf32>
    %352 = vector.extract_strided_slice %350 {offsets = [1, 0], sizes = [1, 32], strides = [1, 1]} : vector<2x32xf32> to vector<1x32xf32>
    %cst_115 = arith.constant dense<0.000000e+00> : vector<17xf32>
    %353 = vector.multi_reduction <add>, %349, %cst_115 [1] : vector<17x32xf32> to vector<17xf32>
    %354 = vector.shape_cast %353 : vector<17xf32> to vector<17x1xf32>
    %cst_116 = arith.constant 3.200000e+01 : f32
    %355 = vector.broadcast %cst_116 : f32 to vector<17x1xf32>
    %356 = arith.divf %354, %355 : vector<17x1xf32>
    %357 = vector.broadcast %356 : vector<17x1xf32> to vector<17x32xf32>
    %358 = arith.subf %349, %357 : vector<17x32xf32>
    %359 = arith.mulf %358, %358 : vector<17x32xf32>
    %cst_117 = arith.constant dense<0.000000e+00> : vector<17xf32>
    %360 = vector.multi_reduction <add>, %359, %cst_117 [1] : vector<17x32xf32> to vector<17xf32>
    %361 = vector.shape_cast %360 : vector<17xf32> to vector<17x1xf32>
    %cst_118 = arith.constant 3.200000e+01 : f32
    %362 = vector.broadcast %cst_118 : f32 to vector<17x1xf32>
    %363 = arith.divf %361, %362 : vector<17x1xf32>
    %cst_119 = arith.constant 9.99999974E-6 : f32
    %364 = vector.broadcast %cst_119 : f32 to vector<17x1xf32>
    %365 = arith.addf %363, %364 : vector<17x1xf32>
    %366 = math.rsqrt %365 : vector<17x1xf32>
    %367 = vector.broadcast %366 : vector<17x1xf32> to vector<17x32xf32>
    %368 = arith.mulf %358, %367 : vector<17x32xf32>
    %369 = vector.broadcast %351 : vector<1x32xf32> to vector<17x32xf32>
    %370 = arith.mulf %368, %369 : vector<17x32xf32>
    %371 = vector.broadcast %352 : vector<1x32xf32> to vector<17x32xf32>
    %372 = arith.addf %370, %371 : vector<17x32xf32>
    %373 = vector.extract_strided_slice %372 {offsets = [0, 0], sizes = [1, 32], strides = [1, 1]} : vector<17x32xf32> to vector<1x32xf32>
    %374 = tpu.iota {dimensions = array<i32: 1>} : vector<1x64xi32>
    %375 = tpu.iota {dimensions = array<i32: 1>} : vector<1x8xi32>
    %cst_120 = arith.constant 0.000000e+00 : f32
    %376 = vector.broadcast %cst_120 : f32 to vector<1x8xf32>
    %377 = arith.index_cast %arg0 : i32 to index
    %c0_121 = arith.constant 0 : index
    %378 = memref.load %arg1[%377, %c0_121] : memref<2x8xi32, #tpu.memory_space<smem>>
    %379 = vector.broadcast %378 : i32 to vector<1x64xi32>
    %380 = arith.cmpi eq, %374, %379 : vector<1x64xi32>
    %381 = arith.extui %380 : vector<1x64xi1> to vector<1x64xi32>
    %382 = arith.sitofp %381 : vector<1x64xi32> to vector<1x64xf32>
    %c0_i32 = arith.constant 0 : i32
    %383 = vector.broadcast %c0_i32 : i32 to vector<1x8xi32>
    %384 = arith.cmpi eq, %375, %383 : vector<1x8xi32>
    %c0_i32_122 = arith.constant 0 : i32
    %385 = arith.cmpi eq, %378, %c0_i32_122 : i32
    %cst_123 = arith.constant -1.000000e+09 : f32
    %cst_124 = arith.constant 0.000000e+00 : f32
    %386 = arith.select %385, %cst_123, %cst_124 : f32
    %cst_125 = arith.constant 0.000000e+00 : f32
    %387 = vector.broadcast %386 : f32 to vector<1x8xf32>
    %388 = vector.broadcast %cst_125 : f32 to vector<1x8xf32>
    %389 = arith.select %384, %387, %388 : vector<1x8xi1>, vector<1x8xf32>
    %390 = arith.addf %376, %389 : vector<1x8xf32>
    %391 = arith.index_cast %arg0 : i32 to index
    %c1_126 = arith.constant 1 : index
    %392 = memref.load %arg1[%391, %c1_126] : memref<2x8xi32, #tpu.memory_space<smem>>
    %393 = vector.broadcast %392 : i32 to vector<1x64xi32>
    %394 = arith.cmpi eq, %374, %393 : vector<1x64xi32>
    %395 = arith.extui %394 : vector<1x64xi1> to vector<1x64xi32>
    %396 = arith.sitofp %395 : vector<1x64xi32> to vector<1x64xf32>
    %c1_i32 = arith.constant 1 : i32
    %397 = vector.broadcast %c1_i32 : i32 to vector<1x8xi32>
    %398 = arith.cmpi eq, %375, %397 : vector<1x8xi32>
    %c0_i32_127 = arith.constant 0 : i32
    %399 = arith.cmpi eq, %392, %c0_i32_127 : i32
    %cst_128 = arith.constant -1.000000e+09 : f32
    %cst_129 = arith.constant 0.000000e+00 : f32
    %400 = arith.select %399, %cst_128, %cst_129 : f32
    %cst_130 = arith.constant 0.000000e+00 : f32
    %401 = vector.broadcast %400 : f32 to vector<1x8xf32>
    %402 = vector.broadcast %cst_130 : f32 to vector<1x8xf32>
    %403 = arith.select %398, %401, %402 : vector<1x8xi1>, vector<1x8xf32>
    %404 = arith.addf %390, %403 : vector<1x8xf32>
    %405 = arith.index_cast %arg0 : i32 to index
    %c2 = arith.constant 2 : index
    %406 = memref.load %arg1[%405, %c2] : memref<2x8xi32, #tpu.memory_space<smem>>
    %407 = vector.broadcast %406 : i32 to vector<1x64xi32>
    %408 = arith.cmpi eq, %374, %407 : vector<1x64xi32>
    %409 = arith.extui %408 : vector<1x64xi1> to vector<1x64xi32>
    %410 = arith.sitofp %409 : vector<1x64xi32> to vector<1x64xf32>
    %c2_i32 = arith.constant 2 : i32
    %411 = vector.broadcast %c2_i32 : i32 to vector<1x8xi32>
    %412 = arith.cmpi eq, %375, %411 : vector<1x8xi32>
    %c0_i32_131 = arith.constant 0 : i32
    %413 = arith.cmpi eq, %406, %c0_i32_131 : i32
    %cst_132 = arith.constant -1.000000e+09 : f32
    %cst_133 = arith.constant 0.000000e+00 : f32
    %414 = arith.select %413, %cst_132, %cst_133 : f32
    %cst_134 = arith.constant 0.000000e+00 : f32
    %415 = vector.broadcast %414 : f32 to vector<1x8xf32>
    %416 = vector.broadcast %cst_134 : f32 to vector<1x8xf32>
    %417 = arith.select %412, %415, %416 : vector<1x8xi1>, vector<1x8xf32>
    %418 = arith.addf %404, %417 : vector<1x8xf32>
    %419 = arith.index_cast %arg0 : i32 to index
    %c3 = arith.constant 3 : index
    %420 = memref.load %arg1[%419, %c3] : memref<2x8xi32, #tpu.memory_space<smem>>
    %421 = vector.broadcast %420 : i32 to vector<1x64xi32>
    %422 = arith.cmpi eq, %374, %421 : vector<1x64xi32>
    %423 = arith.extui %422 : vector<1x64xi1> to vector<1x64xi32>
    %424 = arith.sitofp %423 : vector<1x64xi32> to vector<1x64xf32>
    %c3_i32 = arith.constant 3 : i32
    %425 = vector.broadcast %c3_i32 : i32 to vector<1x8xi32>
    %426 = arith.cmpi eq, %375, %425 : vector<1x8xi32>
    %c0_i32_135 = arith.constant 0 : i32
    %427 = arith.cmpi eq, %420, %c0_i32_135 : i32
    %cst_136 = arith.constant -1.000000e+09 : f32
    %cst_137 = arith.constant 0.000000e+00 : f32
    %428 = arith.select %427, %cst_136, %cst_137 : f32
    %cst_138 = arith.constant 0.000000e+00 : f32
    %429 = vector.broadcast %428 : f32 to vector<1x8xf32>
    %430 = vector.broadcast %cst_138 : f32 to vector<1x8xf32>
    %431 = arith.select %426, %429, %430 : vector<1x8xi1>, vector<1x8xf32>
    %432 = arith.addf %418, %431 : vector<1x8xf32>
    %433 = arith.index_cast %arg0 : i32 to index
    %c4 = arith.constant 4 : index
    %434 = memref.load %arg1[%433, %c4] : memref<2x8xi32, #tpu.memory_space<smem>>
    %435 = vector.broadcast %434 : i32 to vector<1x64xi32>
    %436 = arith.cmpi eq, %374, %435 : vector<1x64xi32>
    %437 = arith.extui %436 : vector<1x64xi1> to vector<1x64xi32>
    %438 = arith.sitofp %437 : vector<1x64xi32> to vector<1x64xf32>
    %c4_i32 = arith.constant 4 : i32
    %439 = vector.broadcast %c4_i32 : i32 to vector<1x8xi32>
    %440 = arith.cmpi eq, %375, %439 : vector<1x8xi32>
    %c0_i32_139 = arith.constant 0 : i32
    %441 = arith.cmpi eq, %434, %c0_i32_139 : i32
    %cst_140 = arith.constant -1.000000e+09 : f32
    %cst_141 = arith.constant 0.000000e+00 : f32
    %442 = arith.select %441, %cst_140, %cst_141 : f32
    %cst_142 = arith.constant 0.000000e+00 : f32
    %443 = vector.broadcast %442 : f32 to vector<1x8xf32>
    %444 = vector.broadcast %cst_142 : f32 to vector<1x8xf32>
    %445 = arith.select %440, %443, %444 : vector<1x8xi1>, vector<1x8xf32>
    %446 = arith.addf %432, %445 : vector<1x8xf32>
    %447 = arith.index_cast %arg0 : i32 to index
    %c5 = arith.constant 5 : index
    %448 = memref.load %arg1[%447, %c5] : memref<2x8xi32, #tpu.memory_space<smem>>
    %449 = vector.broadcast %448 : i32 to vector<1x64xi32>
    %450 = arith.cmpi eq, %374, %449 : vector<1x64xi32>
    %451 = arith.extui %450 : vector<1x64xi1> to vector<1x64xi32>
    %452 = arith.sitofp %451 : vector<1x64xi32> to vector<1x64xf32>
    %c5_i32 = arith.constant 5 : i32
    %453 = vector.broadcast %c5_i32 : i32 to vector<1x8xi32>
    %454 = arith.cmpi eq, %375, %453 : vector<1x8xi32>
    %c0_i32_143 = arith.constant 0 : i32
    %455 = arith.cmpi eq, %448, %c0_i32_143 : i32
    %cst_144 = arith.constant -1.000000e+09 : f32
    %cst_145 = arith.constant 0.000000e+00 : f32
    %456 = arith.select %455, %cst_144, %cst_145 : f32
    %cst_146 = arith.constant 0.000000e+00 : f32
    %457 = vector.broadcast %456 : f32 to vector<1x8xf32>
    %458 = vector.broadcast %cst_146 : f32 to vector<1x8xf32>
    %459 = arith.select %454, %457, %458 : vector<1x8xi1>, vector<1x8xf32>
    %460 = arith.addf %446, %459 : vector<1x8xf32>
    %461 = arith.index_cast %arg0 : i32 to index
    %c6 = arith.constant 6 : index
    %462 = memref.load %arg1[%461, %c6] : memref<2x8xi32, #tpu.memory_space<smem>>
    %463 = vector.broadcast %462 : i32 to vector<1x64xi32>
    %464 = arith.cmpi eq, %374, %463 : vector<1x64xi32>
    %465 = arith.extui %464 : vector<1x64xi1> to vector<1x64xi32>
    %466 = arith.sitofp %465 : vector<1x64xi32> to vector<1x64xf32>
    %c6_i32 = arith.constant 6 : i32
    %467 = vector.broadcast %c6_i32 : i32 to vector<1x8xi32>
    %468 = arith.cmpi eq, %375, %467 : vector<1x8xi32>
    %c0_i32_147 = arith.constant 0 : i32
    %469 = arith.cmpi eq, %462, %c0_i32_147 : i32
    %cst_148 = arith.constant -1.000000e+09 : f32
    %cst_149 = arith.constant 0.000000e+00 : f32
    %470 = arith.select %469, %cst_148, %cst_149 : f32
    %cst_150 = arith.constant 0.000000e+00 : f32
    %471 = vector.broadcast %470 : f32 to vector<1x8xf32>
    %472 = vector.broadcast %cst_150 : f32 to vector<1x8xf32>
    %473 = arith.select %468, %471, %472 : vector<1x8xi1>, vector<1x8xf32>
    %474 = arith.addf %460, %473 : vector<1x8xf32>
    %475 = arith.index_cast %arg0 : i32 to index
    %c7 = arith.constant 7 : index
    %476 = memref.load %arg1[%475, %c7] : memref<2x8xi32, #tpu.memory_space<smem>>
    %477 = vector.broadcast %476 : i32 to vector<1x64xi32>
    %478 = arith.cmpi eq, %374, %477 : vector<1x64xi32>
    %479 = arith.extui %478 : vector<1x64xi1> to vector<1x64xi32>
    %480 = arith.sitofp %479 : vector<1x64xi32> to vector<1x64xf32>
    %c7_i32 = arith.constant 7 : i32
    %481 = vector.broadcast %c7_i32 : i32 to vector<1x8xi32>
    %482 = arith.cmpi eq, %375, %481 : vector<1x8xi32>
    %c0_i32_151 = arith.constant 0 : i32
    %483 = arith.cmpi eq, %476, %c0_i32_151 : i32
    %cst_152 = arith.constant -1.000000e+09 : f32
    %cst_153 = arith.constant 0.000000e+00 : f32
    %484 = arith.select %483, %cst_152, %cst_153 : f32
    %cst_154 = arith.constant 0.000000e+00 : f32
    %485 = vector.broadcast %484 : f32 to vector<1x8xf32>
    %486 = vector.broadcast %cst_154 : f32 to vector<1x8xf32>
    %487 = arith.select %482, %485, %486 : vector<1x8xi1>, vector<1x8xf32>
    %488 = arith.addf %474, %487 : vector<1x8xf32>
    %489 = tpu.concatenate %382, %396, %410, %424, %438, %452, %466, %480 in 0 : vector<1x64xf32>, vector<1x64xf32>, vector<1x64xf32>, vector<1x64xf32>, vector<1x64xf32>, vector<1x64xf32>, vector<1x64xf32>, vector<1x64xf32> -> vector<8x64xf32>
    %490 = tpu.iota {dimensions = array<i32: 0>} : vector<8x8xi32>
    %491 = tpu.iota {dimensions = array<i32: 1>} : vector<8x8xi32>
    %492 = arith.cmpi sle, %491, %490 : vector<8x8xi32>
    %cst_155 = arith.constant 0.000000e+00 : f32
    %cst_156 = arith.constant -1.000000e+09 : f32
    %493 = vector.broadcast %cst_155 : f32 to vector<8x8xf32>
    %494 = vector.broadcast %cst_156 : f32 to vector<8x8xf32>
    %495 = arith.select %492, %493, %494 : vector<8x8xi1>, vector<8x8xf32>
    %496 = vector.broadcast %488 : vector<1x8xf32> to vector<8x8xf32>
    %497 = arith.addf %495, %496 : vector<8x8xf32>
    %c0_157 = arith.constant 0 : index
    %c0_158 = arith.constant 0 : index
    %498 = vector.load %arg9[%c0_157, %c0_158] : memref<64x32xf32, #tpu.memory_space<vmem>>, vector<64x32xf32>
    %cst_159 = arith.constant dense<0.000000e+00> : vector<8x32xf32>
    %499 = tpu.matmul %489, %498, %cst_159 {dimension_numbers = #tpu.dot_dimension_numbers<[1], [0], [0], [1], [0, 0, 1, 1], [], []>} : vector<8x64xf32>, vector<64x32xf32>, vector<8x32xf32> -> vector<8x32xf32>
    %cst_160 = arith.constant 5.65685415 : f32
    %500 = vector.broadcast %cst_160 : f32 to vector<8x32xf32>
    %501 = arith.mulf %499, %500 : vector<8x32xf32>
    %c0_161 = arith.constant 0 : index
    %c0_162 = arith.constant 0 : index
    %502 = vector.load %arg10[%c0_161, %c0_162] : memref<16x32xf32, #tpu.memory_space<vmem>>, vector<8x32xf32>
    %503 = arith.addf %501, %502 : vector<8x32xf32>
    %c0_163 = arith.constant 0 : index
    %c0_164 = arith.constant 0 : index
    %c0_165 = arith.constant 0 : index
    %504 = vector.load %arg11[%c0_163, %c0_164, %c0_165] : memref<2x32x288xf32, #tpu.memory_space<vmem>>, vector<1x32x288xf32>
    %505 = vector.shape_cast %504 : vector<1x32x288xf32> to vector<32x288xf32>
    %c0_166 = arith.constant 0 : index
    %c0_167 = arith.constant 0 : index
    %c0_168 = arith.constant 0 : index
    %506 = vector.load %arg13[%c0_166, %c0_167, %c0_168] : memref<2x16x128xf32, #tpu.memory_space<vmem>>, vector<1x16x128xf32>
    %507 = vector.shape_cast %506 : vector<1x16x128xf32> to vector<16x128xf32>
    %508 = vector.extract_strided_slice %505 {offsets = [0, 128], sizes = [32, 96], strides = [1, 1]} : vector<32x288xf32> to vector<32x96xf32>
    %509 = vector.extract_strided_slice %507 {offsets = [0, 0], sizes = [1, 96], strides = [1, 1]} : vector<16x128xf32> to vector<1x96xf32>
    %510 = vector.extract_strided_slice %505 {offsets = [0, 224], sizes = [32, 32], strides = [1, 1]} : vector<32x288xf32> to vector<32x32xf32>
    %511 = vector.extract_strided_slice %507 {offsets = [1, 0], sizes = [1, 32], strides = [1, 1]} : vector<16x128xf32> to vector<1x32xf32>
    %cst_169 = arith.constant dense<0.000000e+00> : vector<8x96xf32>
    %512 = tpu.matmul %503, %508, %cst_169 {dimension_numbers = #tpu.dot_dimension_numbers<[1], [0], [0], [1], [0, 0, 1, 1], [], []>} : vector<8x32xf32>, vector<32x96xf32>, vector<8x96xf32> -> vector<8x96xf32>
    %513 = vector.broadcast %509 : vector<1x96xf32> to vector<8x96xf32>
    %514 = arith.addf %512, %513 : vector<8x96xf32>
    %515 = vector.extract_strided_slice %514 {offsets = [0, 0], sizes = [8, 8], strides = [1, 1]} : vector<8x96xf32> to vector<8x8xf32>
    %516 = vector.extract_strided_slice %514 {offsets = [0, 32], sizes = [8, 8], strides = [1, 1]} : vector<8x96xf32> to vector<8x8xf32>
    %517 = vector.extract_strided_slice %514 {offsets = [0, 64], sizes = [8, 8], strides = [1, 1]} : vector<8x96xf32> to vector<8x8xf32>
    %cst_170 = arith.constant dense<0.000000e+00> : vector<8x8xf32>
    %518 = tpu.matmul %515, %516, %cst_170 {dimension_numbers = #tpu.dot_dimension_numbers<[1], [1], [0], [0], [0, 0, 1, 0], [], []>} : vector<8x8xf32>, vector<8x8xf32>, vector<8x8xf32> -> vector<8x8xf32>
    %519 = arith.addf %518, %497 : vector<8x8xf32>
    %cst_171 = arith.constant dense<0xFF800000> : vector<8xf32>
    %520 = vector.multi_reduction <maximumf>, %519, %cst_171 [1] : vector<8x8xf32> to vector<8xf32>
    %521 = vector.shape_cast %520 : vector<8xf32> to vector<8x1xf32>
    %522 = vector.broadcast %521 : vector<8x1xf32> to vector<8x8xf32>
    %523 = arith.subf %519, %522 : vector<8x8xf32>
    %524 = math.exp %523 : vector<8x8xf32>
    %cst_172 = arith.constant dense<0.000000e+00> : vector<8xf32>
    %525 = vector.multi_reduction <add>, %524, %cst_172 [1] : vector<8x8xf32> to vector<8xf32>
    %526 = vector.shape_cast %525 : vector<8xf32> to vector<8x1xf32>
    %527 = tpu.reciprocal %526 {approx = true} : vector<8x1xf32> -> vector<8x1xf32>
    %528 = vector.broadcast %527 : vector<8x1xf32> to vector<8x8xf32>
    %529 = arith.mulf %524, %528 : vector<8x8xf32>
    %cst_173 = arith.constant dense<0.000000e+00> : vector<8x8xf32>
    %530 = tpu.matmul %529, %517, %cst_173 {dimension_numbers = #tpu.dot_dimension_numbers<[1], [0], [0], [1], [0, 0, 1, 1], [], []>} : vector<8x8xf32>, vector<8x8xf32>, vector<8x8xf32> -> vector<8x8xf32>
    %531 = vector.extract_strided_slice %514 {offsets = [0, 8], sizes = [8, 8], strides = [1, 1]} : vector<8x96xf32> to vector<8x8xf32>
    %532 = vector.extract_strided_slice %514 {offsets = [0, 40], sizes = [8, 8], strides = [1, 1]} : vector<8x96xf32> to vector<8x8xf32>
    %533 = vector.extract_strided_slice %514 {offsets = [0, 72], sizes = [8, 8], strides = [1, 1]} : vector<8x96xf32> to vector<8x8xf32>
    %cst_174 = arith.constant dense<0.000000e+00> : vector<8x8xf32>
    %534 = tpu.matmul %531, %532, %cst_174 {dimension_numbers = #tpu.dot_dimension_numbers<[1], [1], [0], [0], [0, 0, 1, 0], [], []>} : vector<8x8xf32>, vector<8x8xf32>, vector<8x8xf32> -> vector<8x8xf32>
    %535 = arith.addf %534, %497 : vector<8x8xf32>
    %cst_175 = arith.constant dense<0xFF800000> : vector<8xf32>
    %536 = vector.multi_reduction <maximumf>, %535, %cst_175 [1] : vector<8x8xf32> to vector<8xf32>
    %537 = vector.shape_cast %536 : vector<8xf32> to vector<8x1xf32>
    %538 = vector.broadcast %537 : vector<8x1xf32> to vector<8x8xf32>
    %539 = arith.subf %535, %538 : vector<8x8xf32>
    %540 = math.exp %539 : vector<8x8xf32>
    %cst_176 = arith.constant dense<0.000000e+00> : vector<8xf32>
    %541 = vector.multi_reduction <add>, %540, %cst_176 [1] : vector<8x8xf32> to vector<8xf32>
    %542 = vector.shape_cast %541 : vector<8xf32> to vector<8x1xf32>
    %543 = tpu.reciprocal %542 {approx = true} : vector<8x1xf32> -> vector<8x1xf32>
    %544 = vector.broadcast %543 : vector<8x1xf32> to vector<8x8xf32>
    %545 = arith.mulf %540, %544 : vector<8x8xf32>
    %cst_177 = arith.constant dense<0.000000e+00> : vector<8x8xf32>
    %546 = tpu.matmul %545, %533, %cst_177 {dimension_numbers = #tpu.dot_dimension_numbers<[1], [0], [0], [1], [0, 0, 1, 1], [], []>} : vector<8x8xf32>, vector<8x8xf32>, vector<8x8xf32> -> vector<8x8xf32>
    %547 = vector.extract_strided_slice %514 {offsets = [0, 16], sizes = [8, 8], strides = [1, 1]} : vector<8x96xf32> to vector<8x8xf32>
    %548 = vector.extract_strided_slice %514 {offsets = [0, 48], sizes = [8, 8], strides = [1, 1]} : vector<8x96xf32> to vector<8x8xf32>
    %549 = vector.extract_strided_slice %514 {offsets = [0, 80], sizes = [8, 8], strides = [1, 1]} : vector<8x96xf32> to vector<8x8xf32>
    %cst_178 = arith.constant dense<0.000000e+00> : vector<8x8xf32>
    %550 = tpu.matmul %547, %548, %cst_178 {dimension_numbers = #tpu.dot_dimension_numbers<[1], [1], [0], [0], [0, 0, 1, 0], [], []>} : vector<8x8xf32>, vector<8x8xf32>, vector<8x8xf32> -> vector<8x8xf32>
    %551 = arith.addf %550, %497 : vector<8x8xf32>
    %cst_179 = arith.constant dense<0xFF800000> : vector<8xf32>
    %552 = vector.multi_reduction <maximumf>, %551, %cst_179 [1] : vector<8x8xf32> to vector<8xf32>
    %553 = vector.shape_cast %552 : vector<8xf32> to vector<8x1xf32>
    %554 = vector.broadcast %553 : vector<8x1xf32> to vector<8x8xf32>
    %555 = arith.subf %551, %554 : vector<8x8xf32>
    %556 = math.exp %555 : vector<8x8xf32>
    %cst_180 = arith.constant dense<0.000000e+00> : vector<8xf32>
    %557 = vector.multi_reduction <add>, %556, %cst_180 [1] : vector<8x8xf32> to vector<8xf32>
    %558 = vector.shape_cast %557 : vector<8xf32> to vector<8x1xf32>
    %559 = tpu.reciprocal %558 {approx = true} : vector<8x1xf32> -> vector<8x1xf32>
    %560 = vector.broadcast %559 : vector<8x1xf32> to vector<8x8xf32>
    %561 = arith.mulf %556, %560 : vector<8x8xf32>
    %cst_181 = arith.constant dense<0.000000e+00> : vector<8x8xf32>
    %562 = tpu.matmul %561, %549, %cst_181 {dimension_numbers = #tpu.dot_dimension_numbers<[1], [0], [0], [1], [0, 0, 1, 1], [], []>} : vector<8x8xf32>, vector<8x8xf32>, vector<8x8xf32> -> vector<8x8xf32>
    %563 = vector.extract_strided_slice %514 {offsets = [0, 24], sizes = [8, 8], strides = [1, 1]} : vector<8x96xf32> to vector<8x8xf32>
    %564 = vector.extract_strided_slice %514 {offsets = [0, 56], sizes = [8, 8], strides = [1, 1]} : vector<8x96xf32> to vector<8x8xf32>
    %565 = vector.extract_strided_slice %514 {offsets = [0, 88], sizes = [8, 8], strides = [1, 1]} : vector<8x96xf32> to vector<8x8xf32>
    %cst_182 = arith.constant dense<0.000000e+00> : vector<8x8xf32>
    %566 = tpu.matmul %563, %564, %cst_182 {dimension_numbers = #tpu.dot_dimension_numbers<[1], [1], [0], [0], [0, 0, 1, 0], [], []>} : vector<8x8xf32>, vector<8x8xf32>, vector<8x8xf32> -> vector<8x8xf32>
    %567 = arith.addf %566, %497 : vector<8x8xf32>
    %cst_183 = arith.constant dense<0xFF800000> : vector<8xf32>
    %568 = vector.multi_reduction <maximumf>, %567, %cst_183 [1] : vector<8x8xf32> to vector<8xf32>
    %569 = vector.shape_cast %568 : vector<8xf32> to vector<8x1xf32>
    %570 = vector.broadcast %569 : vector<8x1xf32> to vector<8x8xf32>
    %571 = arith.subf %567, %570 : vector<8x8xf32>
    %572 = math.exp %571 : vector<8x8xf32>
    %cst_184 = arith.constant dense<0.000000e+00> : vector<8xf32>
    %573 = vector.multi_reduction <add>, %572, %cst_184 [1] : vector<8x8xf32> to vector<8xf32>
    %574 = vector.shape_cast %573 : vector<8xf32> to vector<8x1xf32>
    %575 = tpu.reciprocal %574 {approx = true} : vector<8x1xf32> -> vector<8x1xf32>
    %576 = vector.broadcast %575 : vector<8x1xf32> to vector<8x8xf32>
    %577 = arith.mulf %572, %576 : vector<8x8xf32>
    %cst_185 = arith.constant dense<0.000000e+00> : vector<8x8xf32>
    %578 = tpu.matmul %577, %565, %cst_185 {dimension_numbers = #tpu.dot_dimension_numbers<[1], [0], [0], [1], [0, 0, 1, 1], [], []>} : vector<8x8xf32>, vector<8x8xf32>, vector<8x8xf32> -> vector<8x8xf32>
    %579 = tpu.concatenate %530, %546, %562, %578 in 1 : vector<8x8xf32>, vector<8x8xf32>, vector<8x8xf32>, vector<8x8xf32> -> vector<8x32xf32>
    %cst_186 = arith.constant dense<0.000000e+00> : vector<8x32xf32>
    %580 = tpu.matmul %579, %510, %cst_186 {dimension_numbers = #tpu.dot_dimension_numbers<[1], [0], [0], [1], [0, 0, 1, 1], [], []>} : vector<8x32xf32>, vector<32x32xf32>, vector<8x32xf32> -> vector<8x32xf32>
    %581 = vector.broadcast %511 : vector<1x32xf32> to vector<8x32xf32>
    %582 = arith.addf %580, %581 : vector<8x32xf32>
    %583 = arith.addf %503, %582 : vector<8x32xf32>
    %584 = vector.extract_strided_slice %507 {offsets = [3, 0], sizes = [1, 32], strides = [1, 1]} : vector<16x128xf32> to vector<1x32xf32>
    %585 = vector.extract_strided_slice %507 {offsets = [4, 0], sizes = [1, 32], strides = [1, 1]} : vector<16x128xf32> to vector<1x32xf32>
    %cst_187 = arith.constant dense<0.000000e+00> : vector<8xf32>
    %586 = vector.multi_reduction <add>, %583, %cst_187 [1] : vector<8x32xf32> to vector<8xf32>
    %587 = vector.shape_cast %586 : vector<8xf32> to vector<8x1xf32>
    %cst_188 = arith.constant 3.200000e+01 : f32
    %588 = vector.broadcast %cst_188 : f32 to vector<8x1xf32>
    %589 = arith.divf %587, %588 : vector<8x1xf32>
    %590 = vector.broadcast %589 : vector<8x1xf32> to vector<8x32xf32>
    %591 = arith.subf %583, %590 : vector<8x32xf32>
    %592 = arith.mulf %591, %591 : vector<8x32xf32>
    %cst_189 = arith.constant dense<0.000000e+00> : vector<8xf32>
    %593 = vector.multi_reduction <add>, %592, %cst_189 [1] : vector<8x32xf32> to vector<8xf32>
    %594 = vector.shape_cast %593 : vector<8xf32> to vector<8x1xf32>
    %cst_190 = arith.constant 3.200000e+01 : f32
    %595 = vector.broadcast %cst_190 : f32 to vector<8x1xf32>
    %596 = arith.divf %594, %595 : vector<8x1xf32>
    %cst_191 = arith.constant 9.99999974E-6 : f32
    %597 = vector.broadcast %cst_191 : f32 to vector<8x1xf32>
    %598 = arith.addf %596, %597 : vector<8x1xf32>
    %599 = math.rsqrt %598 : vector<8x1xf32>
    %600 = vector.broadcast %599 : vector<8x1xf32> to vector<8x32xf32>
    %601 = arith.mulf %591, %600 : vector<8x32xf32>
    %602 = vector.broadcast %584 : vector<1x32xf32> to vector<8x32xf32>
    %603 = arith.mulf %601, %602 : vector<8x32xf32>
    %604 = vector.broadcast %585 : vector<1x32xf32> to vector<8x32xf32>
    %605 = arith.addf %603, %604 : vector<8x32xf32>
    %606 = vector.extract_strided_slice %505 {offsets = [0, 256], sizes = [32, 32], strides = [1, 1]} : vector<32x288xf32> to vector<32x32xf32>
    %cst_192 = arith.constant dense<0.000000e+00> : vector<1x32xf32>
    %607 = tpu.matmul %373, %606, %cst_192 {dimension_numbers = #tpu.dot_dimension_numbers<[1], [0], [0], [1], [0, 0, 1, 1], [], []>} : vector<1x32xf32>, vector<32x32xf32>, vector<1x32xf32> -> vector<1x32xf32>
    %608 = vector.extract_strided_slice %507 {offsets = [2, 0], sizes = [1, 32], strides = [1, 1]} : vector<16x128xf32> to vector<1x32xf32>
    %609 = arith.addf %607, %608 : vector<1x32xf32>
    %610 = vector.broadcast %609 : vector<1x32xf32> to vector<8x32xf32>
    %611 = arith.addf %605, %610 : vector<8x32xf32>
    %612 = vector.extract_strided_slice %507 {offsets = [5, 0], sizes = [1, 32], strides = [1, 1]} : vector<16x128xf32> to vector<1x32xf32>
    %613 = vector.extract_strided_slice %507 {offsets = [6, 0], sizes = [1, 32], strides = [1, 1]} : vector<16x128xf32> to vector<1x32xf32>
    %cst_193 = arith.constant dense<0.000000e+00> : vector<8xf32>
    %614 = vector.multi_reduction <add>, %611, %cst_193 [1] : vector<8x32xf32> to vector<8xf32>
    %615 = vector.shape_cast %614 : vector<8xf32> to vector<8x1xf32>
    %cst_194 = arith.constant 3.200000e+01 : f32
    %616 = vector.broadcast %cst_194 : f32 to vector<8x1xf32>
    %617 = arith.divf %615, %616 : vector<8x1xf32>
    %618 = vector.broadcast %617 : vector<8x1xf32> to vector<8x32xf32>
    %619 = arith.subf %611, %618 : vector<8x32xf32>
    %620 = arith.mulf %619, %619 : vector<8x32xf32>
    %cst_195 = arith.constant dense<0.000000e+00> : vector<8xf32>
    %621 = vector.multi_reduction <add>, %620, %cst_195 [1] : vector<8x32xf32> to vector<8xf32>
    %622 = vector.shape_cast %621 : vector<8xf32> to vector<8x1xf32>
    %cst_196 = arith.constant 3.200000e+01 : f32
    %623 = vector.broadcast %cst_196 : f32 to vector<8x1xf32>
    %624 = arith.divf %622, %623 : vector<8x1xf32>
    %cst_197 = arith.constant 9.99999974E-6 : f32
    %625 = vector.broadcast %cst_197 : f32 to vector<8x1xf32>
    %626 = arith.addf %624, %625 : vector<8x1xf32>
    %627 = math.rsqrt %626 : vector<8x1xf32>
    %628 = vector.broadcast %627 : vector<8x1xf32> to vector<8x32xf32>
    %629 = arith.mulf %619, %628 : vector<8x32xf32>
    %630 = vector.broadcast %612 : vector<1x32xf32> to vector<8x32xf32>
    %631 = arith.mulf %629, %630 : vector<8x32xf32>
    %632 = vector.broadcast %613 : vector<1x32xf32> to vector<8x32xf32>
    %633 = arith.addf %631, %632 : vector<8x32xf32>
    %634 = vector.extract_strided_slice %505 {offsets = [0, 0], sizes = [32, 128], strides = [1, 1]} : vector<32x288xf32> to vector<32x128xf32>
    %cst_198 = arith.constant dense<0.000000e+00> : vector<8x128xf32>
    %635 = tpu.matmul %633, %634, %cst_198 {dimension_numbers = #tpu.dot_dimension_numbers<[1], [0], [0], [1], [0, 0, 1, 1], [], []>} : vector<8x32xf32>, vector<32x128xf32>, vector<8x128xf32> -> vector<8x128xf32>
    %636 = vector.extract_strided_slice %507 {offsets = [7, 0], sizes = [1, 128], strides = [1, 1]} : vector<16x128xf32> to vector<1x128xf32>
    %637 = vector.broadcast %636 : vector<1x128xf32> to vector<8x128xf32>
    %638 = arith.addf %635, %637 : vector<8x128xf32>
    %cst_199 = arith.constant 0.000000e+00 : f32
    %639 = vector.broadcast %cst_199 : f32 to vector<8x128xf32>
    %640 = arith.maximumf %638, %639 : vector<8x128xf32>
    %c0_200 = arith.constant 0 : index
    %c0_201 = arith.constant 0 : index
    %c0_202 = arith.constant 0 : index
    %641 = vector.load %arg12[%c0_200, %c0_201, %c0_202] : memref<2x128x32xf32, #tpu.memory_space<vmem>>, vector<1x128x32xf32>
    %642 = vector.shape_cast %641 : vector<1x128x32xf32> to vector<128x32xf32>
    %cst_203 = arith.constant dense<0.000000e+00> : vector<8x32xf32>
    %643 = tpu.matmul %640, %642, %cst_203 {dimension_numbers = #tpu.dot_dimension_numbers<[1], [0], [0], [1], [0, 0, 1, 1], [], []>} : vector<8x128xf32>, vector<128x32xf32>, vector<8x32xf32> -> vector<8x32xf32>
    %644 = vector.extract_strided_slice %507 {offsets = [8, 0], sizes = [1, 32], strides = [1, 1]} : vector<16x128xf32> to vector<1x32xf32>
    %645 = vector.broadcast %644 : vector<1x32xf32> to vector<8x32xf32>
    %646 = arith.addf %643, %645 : vector<8x32xf32>
    %647 = arith.addf %633, %646 : vector<8x32xf32>
    %648 = vector.extract_strided_slice %507 {offsets = [9, 0], sizes = [1, 32], strides = [1, 1]} : vector<16x128xf32> to vector<1x32xf32>
    %649 = vector.extract_strided_slice %507 {offsets = [10, 0], sizes = [1, 32], strides = [1, 1]} : vector<16x128xf32> to vector<1x32xf32>
    %cst_204 = arith.constant dense<0.000000e+00> : vector<8xf32>
    %650 = vector.multi_reduction <add>, %647, %cst_204 [1] : vector<8x32xf32> to vector<8xf32>
    %651 = vector.shape_cast %650 : vector<8xf32> to vector<8x1xf32>
    %cst_205 = arith.constant 3.200000e+01 : f32
    %652 = vector.broadcast %cst_205 : f32 to vector<8x1xf32>
    %653 = arith.divf %651, %652 : vector<8x1xf32>
    %654 = vector.broadcast %653 : vector<8x1xf32> to vector<8x32xf32>
    %655 = arith.subf %647, %654 : vector<8x32xf32>
    %656 = arith.mulf %655, %655 : vector<8x32xf32>
    %cst_206 = arith.constant dense<0.000000e+00> : vector<8xf32>
    %657 = vector.multi_reduction <add>, %656, %cst_206 [1] : vector<8x32xf32> to vector<8xf32>
    %658 = vector.shape_cast %657 : vector<8xf32> to vector<8x1xf32>
    %cst_207 = arith.constant 3.200000e+01 : f32
    %659 = vector.broadcast %cst_207 : f32 to vector<8x1xf32>
    %660 = arith.divf %658, %659 : vector<8x1xf32>
    %cst_208 = arith.constant 9.99999974E-6 : f32
    %661 = vector.broadcast %cst_208 : f32 to vector<8x1xf32>
    %662 = arith.addf %660, %661 : vector<8x1xf32>
    %663 = math.rsqrt %662 : vector<8x1xf32>
    %664 = vector.broadcast %663 : vector<8x1xf32> to vector<8x32xf32>
    %665 = arith.mulf %655, %664 : vector<8x32xf32>
    %666 = vector.broadcast %648 : vector<1x32xf32> to vector<8x32xf32>
    %667 = arith.mulf %665, %666 : vector<8x32xf32>
    %668 = vector.broadcast %649 : vector<1x32xf32> to vector<8x32xf32>
    %669 = arith.addf %667, %668 : vector<8x32xf32>
    %c1_209 = arith.constant 1 : index
    %c0_210 = arith.constant 0 : index
    %c0_211 = arith.constant 0 : index
    %670 = vector.load %arg11[%c1_209, %c0_210, %c0_211] : memref<2x32x288xf32, #tpu.memory_space<vmem>>, vector<1x32x288xf32>
    %671 = vector.shape_cast %670 : vector<1x32x288xf32> to vector<32x288xf32>
    %c1_212 = arith.constant 1 : index
    %c0_213 = arith.constant 0 : index
    %c0_214 = arith.constant 0 : index
    %672 = vector.load %arg13[%c1_212, %c0_213, %c0_214] : memref<2x16x128xf32, #tpu.memory_space<vmem>>, vector<1x16x128xf32>
    %673 = vector.shape_cast %672 : vector<1x16x128xf32> to vector<16x128xf32>
    %674 = vector.extract_strided_slice %671 {offsets = [0, 128], sizes = [32, 96], strides = [1, 1]} : vector<32x288xf32> to vector<32x96xf32>
    %675 = vector.extract_strided_slice %673 {offsets = [0, 0], sizes = [1, 96], strides = [1, 1]} : vector<16x128xf32> to vector<1x96xf32>
    %676 = vector.extract_strided_slice %671 {offsets = [0, 224], sizes = [32, 32], strides = [1, 1]} : vector<32x288xf32> to vector<32x32xf32>
    %677 = vector.extract_strided_slice %673 {offsets = [1, 0], sizes = [1, 32], strides = [1, 1]} : vector<16x128xf32> to vector<1x32xf32>
    %cst_215 = arith.constant dense<0.000000e+00> : vector<8x96xf32>
    %678 = tpu.matmul %669, %674, %cst_215 {dimension_numbers = #tpu.dot_dimension_numbers<[1], [0], [0], [1], [0, 0, 1, 1], [], []>} : vector<8x32xf32>, vector<32x96xf32>, vector<8x96xf32> -> vector<8x96xf32>
    %679 = vector.broadcast %675 : vector<1x96xf32> to vector<8x96xf32>
    %680 = arith.addf %678, %679 : vector<8x96xf32>
    %681 = vector.extract_strided_slice %680 {offsets = [0, 0], sizes = [8, 8], strides = [1, 1]} : vector<8x96xf32> to vector<8x8xf32>
    %682 = vector.extract_strided_slice %680 {offsets = [0, 32], sizes = [8, 8], strides = [1, 1]} : vector<8x96xf32> to vector<8x8xf32>
    %683 = vector.extract_strided_slice %680 {offsets = [0, 64], sizes = [8, 8], strides = [1, 1]} : vector<8x96xf32> to vector<8x8xf32>
    %cst_216 = arith.constant dense<0.000000e+00> : vector<8x8xf32>
    %684 = tpu.matmul %681, %682, %cst_216 {dimension_numbers = #tpu.dot_dimension_numbers<[1], [1], [0], [0], [0, 0, 1, 0], [], []>} : vector<8x8xf32>, vector<8x8xf32>, vector<8x8xf32> -> vector<8x8xf32>
    %685 = arith.addf %684, %497 : vector<8x8xf32>
    %cst_217 = arith.constant dense<0xFF800000> : vector<8xf32>
    %686 = vector.multi_reduction <maximumf>, %685, %cst_217 [1] : vector<8x8xf32> to vector<8xf32>
    %687 = vector.shape_cast %686 : vector<8xf32> to vector<8x1xf32>
    %688 = vector.broadcast %687 : vector<8x1xf32> to vector<8x8xf32>
    %689 = arith.subf %685, %688 : vector<8x8xf32>
    %690 = math.exp %689 : vector<8x8xf32>
    %cst_218 = arith.constant dense<0.000000e+00> : vector<8xf32>
    %691 = vector.multi_reduction <add>, %690, %cst_218 [1] : vector<8x8xf32> to vector<8xf32>
    %692 = vector.shape_cast %691 : vector<8xf32> to vector<8x1xf32>
    %693 = tpu.reciprocal %692 {approx = true} : vector<8x1xf32> -> vector<8x1xf32>
    %694 = vector.broadcast %693 : vector<8x1xf32> to vector<8x8xf32>
    %695 = arith.mulf %690, %694 : vector<8x8xf32>
    %cst_219 = arith.constant dense<0.000000e+00> : vector<8x8xf32>
    %696 = tpu.matmul %695, %683, %cst_219 {dimension_numbers = #tpu.dot_dimension_numbers<[1], [0], [0], [1], [0, 0, 1, 1], [], []>} : vector<8x8xf32>, vector<8x8xf32>, vector<8x8xf32> -> vector<8x8xf32>
    %697 = vector.extract_strided_slice %680 {offsets = [0, 8], sizes = [8, 8], strides = [1, 1]} : vector<8x96xf32> to vector<8x8xf32>
    %698 = vector.extract_strided_slice %680 {offsets = [0, 40], sizes = [8, 8], strides = [1, 1]} : vector<8x96xf32> to vector<8x8xf32>
    %699 = vector.extract_strided_slice %680 {offsets = [0, 72], sizes = [8, 8], strides = [1, 1]} : vector<8x96xf32> to vector<8x8xf32>
    %cst_220 = arith.constant dense<0.000000e+00> : vector<8x8xf32>
    %700 = tpu.matmul %697, %698, %cst_220 {dimension_numbers = #tpu.dot_dimension_numbers<[1], [1], [0], [0], [0, 0, 1, 0], [], []>} : vector<8x8xf32>, vector<8x8xf32>, vector<8x8xf32> -> vector<8x8xf32>
    %701 = arith.addf %700, %497 : vector<8x8xf32>
    %cst_221 = arith.constant dense<0xFF800000> : vector<8xf32>
    %702 = vector.multi_reduction <maximumf>, %701, %cst_221 [1] : vector<8x8xf32> to vector<8xf32>
    %703 = vector.shape_cast %702 : vector<8xf32> to vector<8x1xf32>
    %704 = vector.broadcast %703 : vector<8x1xf32> to vector<8x8xf32>
    %705 = arith.subf %701, %704 : vector<8x8xf32>
    %706 = math.exp %705 : vector<8x8xf32>
    %cst_222 = arith.constant dense<0.000000e+00> : vector<8xf32>
    %707 = vector.multi_reduction <add>, %706, %cst_222 [1] : vector<8x8xf32> to vector<8xf32>
    %708 = vector.shape_cast %707 : vector<8xf32> to vector<8x1xf32>
    %709 = tpu.reciprocal %708 {approx = true} : vector<8x1xf32> -> vector<8x1xf32>
    %710 = vector.broadcast %709 : vector<8x1xf32> to vector<8x8xf32>
    %711 = arith.mulf %706, %710 : vector<8x8xf32>
    %cst_223 = arith.constant dense<0.000000e+00> : vector<8x8xf32>
    %712 = tpu.matmul %711, %699, %cst_223 {dimension_numbers = #tpu.dot_dimension_numbers<[1], [0], [0], [1], [0, 0, 1, 1], [], []>} : vector<8x8xf32>, vector<8x8xf32>, vector<8x8xf32> -> vector<8x8xf32>
    %713 = vector.extract_strided_slice %680 {offsets = [0, 16], sizes = [8, 8], strides = [1, 1]} : vector<8x96xf32> to vector<8x8xf32>
    %714 = vector.extract_strided_slice %680 {offsets = [0, 48], sizes = [8, 8], strides = [1, 1]} : vector<8x96xf32> to vector<8x8xf32>
    %715 = vector.extract_strided_slice %680 {offsets = [0, 80], sizes = [8, 8], strides = [1, 1]} : vector<8x96xf32> to vector<8x8xf32>
    %cst_224 = arith.constant dense<0.000000e+00> : vector<8x8xf32>
    %716 = tpu.matmul %713, %714, %cst_224 {dimension_numbers = #tpu.dot_dimension_numbers<[1], [1], [0], [0], [0, 0, 1, 0], [], []>} : vector<8x8xf32>, vector<8x8xf32>, vector<8x8xf32> -> vector<8x8xf32>
    %717 = arith.addf %716, %497 : vector<8x8xf32>
    %cst_225 = arith.constant dense<0xFF800000> : vector<8xf32>
    %718 = vector.multi_reduction <maximumf>, %717, %cst_225 [1] : vector<8x8xf32> to vector<8xf32>
    %719 = vector.shape_cast %718 : vector<8xf32> to vector<8x1xf32>
    %720 = vector.broadcast %719 : vector<8x1xf32> to vector<8x8xf32>
    %721 = arith.subf %717, %720 : vector<8x8xf32>
    %722 = math.exp %721 : vector<8x8xf32>
    %cst_226 = arith.constant dense<0.000000e+00> : vector<8xf32>
    %723 = vector.multi_reduction <add>, %722, %cst_226 [1] : vector<8x8xf32> to vector<8xf32>
    %724 = vector.shape_cast %723 : vector<8xf32> to vector<8x1xf32>
    %725 = tpu.reciprocal %724 {approx = true} : vector<8x1xf32> -> vector<8x1xf32>
    %726 = vector.broadcast %725 : vector<8x1xf32> to vector<8x8xf32>
    %727 = arith.mulf %722, %726 : vector<8x8xf32>
    %cst_227 = arith.constant dense<0.000000e+00> : vector<8x8xf32>
    %728 = tpu.matmul %727, %715, %cst_227 {dimension_numbers = #tpu.dot_dimension_numbers<[1], [0], [0], [1], [0, 0, 1, 1], [], []>} : vector<8x8xf32>, vector<8x8xf32>, vector<8x8xf32> -> vector<8x8xf32>
    %729 = vector.extract_strided_slice %680 {offsets = [0, 24], sizes = [8, 8], strides = [1, 1]} : vector<8x96xf32> to vector<8x8xf32>
    %730 = vector.extract_strided_slice %680 {offsets = [0, 56], sizes = [8, 8], strides = [1, 1]} : vector<8x96xf32> to vector<8x8xf32>
    %731 = vector.extract_strided_slice %680 {offsets = [0, 88], sizes = [8, 8], strides = [1, 1]} : vector<8x96xf32> to vector<8x8xf32>
    %cst_228 = arith.constant dense<0.000000e+00> : vector<8x8xf32>
    %732 = tpu.matmul %729, %730, %cst_228 {dimension_numbers = #tpu.dot_dimension_numbers<[1], [1], [0], [0], [0, 0, 1, 0], [], []>} : vector<8x8xf32>, vector<8x8xf32>, vector<8x8xf32> -> vector<8x8xf32>
    %733 = arith.addf %732, %497 : vector<8x8xf32>
    %cst_229 = arith.constant dense<0xFF800000> : vector<8xf32>
    %734 = vector.multi_reduction <maximumf>, %733, %cst_229 [1] : vector<8x8xf32> to vector<8xf32>
    %735 = vector.shape_cast %734 : vector<8xf32> to vector<8x1xf32>
    %736 = vector.broadcast %735 : vector<8x1xf32> to vector<8x8xf32>
    %737 = arith.subf %733, %736 : vector<8x8xf32>
    %738 = math.exp %737 : vector<8x8xf32>
    %cst_230 = arith.constant dense<0.000000e+00> : vector<8xf32>
    %739 = vector.multi_reduction <add>, %738, %cst_230 [1] : vector<8x8xf32> to vector<8xf32>
    %740 = vector.shape_cast %739 : vector<8xf32> to vector<8x1xf32>
    %741 = tpu.reciprocal %740 {approx = true} : vector<8x1xf32> -> vector<8x1xf32>
    %742 = vector.broadcast %741 : vector<8x1xf32> to vector<8x8xf32>
    %743 = arith.mulf %738, %742 : vector<8x8xf32>
    %cst_231 = arith.constant dense<0.000000e+00> : vector<8x8xf32>
    %744 = tpu.matmul %743, %731, %cst_231 {dimension_numbers = #tpu.dot_dimension_numbers<[1], [0], [0], [1], [0, 0, 1, 1], [], []>} : vector<8x8xf32>, vector<8x8xf32>, vector<8x8xf32> -> vector<8x8xf32>
    %745 = tpu.concatenate %696, %712, %728, %744 in 1 : vector<8x8xf32>, vector<8x8xf32>, vector<8x8xf32>, vector<8x8xf32> -> vector<8x32xf32>
    %cst_232 = arith.constant dense<0.000000e+00> : vector<8x32xf32>
    %746 = tpu.matmul %745, %676, %cst_232 {dimension_numbers = #tpu.dot_dimension_numbers<[1], [0], [0], [1], [0, 0, 1, 1], [], []>} : vector<8x32xf32>, vector<32x32xf32>, vector<8x32xf32> -> vector<8x32xf32>
    %747 = vector.broadcast %677 : vector<1x32xf32> to vector<8x32xf32>
    %748 = arith.addf %746, %747 : vector<8x32xf32>
    %749 = arith.addf %669, %748 : vector<8x32xf32>
    %750 = vector.extract_strided_slice %673 {offsets = [3, 0], sizes = [1, 32], strides = [1, 1]} : vector<16x128xf32> to vector<1x32xf32>
    %751 = vector.extract_strided_slice %673 {offsets = [4, 0], sizes = [1, 32], strides = [1, 1]} : vector<16x128xf32> to vector<1x32xf32>
    %cst_233 = arith.constant dense<0.000000e+00> : vector<8xf32>
    %752 = vector.multi_reduction <add>, %749, %cst_233 [1] : vector<8x32xf32> to vector<8xf32>
    %753 = vector.shape_cast %752 : vector<8xf32> to vector<8x1xf32>
    %cst_234 = arith.constant 3.200000e+01 : f32
    %754 = vector.broadcast %cst_234 : f32 to vector<8x1xf32>
    %755 = arith.divf %753, %754 : vector<8x1xf32>
    %756 = vector.broadcast %755 : vector<8x1xf32> to vector<8x32xf32>
    %757 = arith.subf %749, %756 : vector<8x32xf32>
    %758 = arith.mulf %757, %757 : vector<8x32xf32>
    %cst_235 = arith.constant dense<0.000000e+00> : vector<8xf32>
    %759 = vector.multi_reduction <add>, %758, %cst_235 [1] : vector<8x32xf32> to vector<8xf32>
    %760 = vector.shape_cast %759 : vector<8xf32> to vector<8x1xf32>
    %cst_236 = arith.constant 3.200000e+01 : f32
    %761 = vector.broadcast %cst_236 : f32 to vector<8x1xf32>
    %762 = arith.divf %760, %761 : vector<8x1xf32>
    %cst_237 = arith.constant 9.99999974E-6 : f32
    %763 = vector.broadcast %cst_237 : f32 to vector<8x1xf32>
    %764 = arith.addf %762, %763 : vector<8x1xf32>
    %765 = math.rsqrt %764 : vector<8x1xf32>
    %766 = vector.broadcast %765 : vector<8x1xf32> to vector<8x32xf32>
    %767 = arith.mulf %757, %766 : vector<8x32xf32>
    %768 = vector.broadcast %750 : vector<1x32xf32> to vector<8x32xf32>
    %769 = arith.mulf %767, %768 : vector<8x32xf32>
    %770 = vector.broadcast %751 : vector<1x32xf32> to vector<8x32xf32>
    %771 = arith.addf %769, %770 : vector<8x32xf32>
    %772 = vector.extract_strided_slice %671 {offsets = [0, 256], sizes = [32, 32], strides = [1, 1]} : vector<32x288xf32> to vector<32x32xf32>
    %cst_238 = arith.constant dense<0.000000e+00> : vector<1x32xf32>
    %773 = tpu.matmul %373, %772, %cst_238 {dimension_numbers = #tpu.dot_dimension_numbers<[1], [0], [0], [1], [0, 0, 1, 1], [], []>} : vector<1x32xf32>, vector<32x32xf32>, vector<1x32xf32> -> vector<1x32xf32>
    %774 = vector.extract_strided_slice %673 {offsets = [2, 0], sizes = [1, 32], strides = [1, 1]} : vector<16x128xf32> to vector<1x32xf32>
    %775 = arith.addf %773, %774 : vector<1x32xf32>
    %776 = vector.broadcast %775 : vector<1x32xf32> to vector<8x32xf32>
    %777 = arith.addf %771, %776 : vector<8x32xf32>
    %778 = vector.extract_strided_slice %673 {offsets = [5, 0], sizes = [1, 32], strides = [1, 1]} : vector<16x128xf32> to vector<1x32xf32>
    %779 = vector.extract_strided_slice %673 {offsets = [6, 0], sizes = [1, 32], strides = [1, 1]} : vector<16x128xf32> to vector<1x32xf32>
    %cst_239 = arith.constant dense<0.000000e+00> : vector<8xf32>
    %780 = vector.multi_reduction <add>, %777, %cst_239 [1] : vector<8x32xf32> to vector<8xf32>
    %781 = vector.shape_cast %780 : vector<8xf32> to vector<8x1xf32>
    %cst_240 = arith.constant 3.200000e+01 : f32
    %782 = vector.broadcast %cst_240 : f32 to vector<8x1xf32>
    %783 = arith.divf %781, %782 : vector<8x1xf32>
    %784 = vector.broadcast %783 : vector<8x1xf32> to vector<8x32xf32>
    %785 = arith.subf %777, %784 : vector<8x32xf32>
    %786 = arith.mulf %785, %785 : vector<8x32xf32>
    %cst_241 = arith.constant dense<0.000000e+00> : vector<8xf32>
    %787 = vector.multi_reduction <add>, %786, %cst_241 [1] : vector<8x32xf32> to vector<8xf32>
    %788 = vector.shape_cast %787 : vector<8xf32> to vector<8x1xf32>
    %cst_242 = arith.constant 3.200000e+01 : f32
    %789 = vector.broadcast %cst_242 : f32 to vector<8x1xf32>
    %790 = arith.divf %788, %789 : vector<8x1xf32>
    %cst_243 = arith.constant 9.99999974E-6 : f32
    %791 = vector.broadcast %cst_243 : f32 to vector<8x1xf32>
    %792 = arith.addf %790, %791 : vector<8x1xf32>
    %793 = math.rsqrt %792 : vector<8x1xf32>
    %794 = vector.broadcast %793 : vector<8x1xf32> to vector<8x32xf32>
    %795 = arith.mulf %785, %794 : vector<8x32xf32>
    %796 = vector.broadcast %778 : vector<1x32xf32> to vector<8x32xf32>
    %797 = arith.mulf %795, %796 : vector<8x32xf32>
    %798 = vector.broadcast %779 : vector<1x32xf32> to vector<8x32xf32>
    %799 = arith.addf %797, %798 : vector<8x32xf32>
    %800 = vector.extract_strided_slice %671 {offsets = [0, 0], sizes = [32, 128], strides = [1, 1]} : vector<32x288xf32> to vector<32x128xf32>
    %cst_244 = arith.constant dense<0.000000e+00> : vector<8x128xf32>
    %801 = tpu.matmul %799, %800, %cst_244 {dimension_numbers = #tpu.dot_dimension_numbers<[1], [0], [0], [1], [0, 0, 1, 1], [], []>} : vector<8x32xf32>, vector<32x128xf32>, vector<8x128xf32> -> vector<8x128xf32>
    %802 = vector.extract_strided_slice %673 {offsets = [7, 0], sizes = [1, 128], strides = [1, 1]} : vector<16x128xf32> to vector<1x128xf32>
    %803 = vector.broadcast %802 : vector<1x128xf32> to vector<8x128xf32>
    %804 = arith.addf %801, %803 : vector<8x128xf32>
    %cst_245 = arith.constant 0.000000e+00 : f32
    %805 = vector.broadcast %cst_245 : f32 to vector<8x128xf32>
    %806 = arith.maximumf %804, %805 : vector<8x128xf32>
    %c1_246 = arith.constant 1 : index
    %c0_247 = arith.constant 0 : index
    %c0_248 = arith.constant 0 : index
    %807 = vector.load %arg12[%c1_246, %c0_247, %c0_248] : memref<2x128x32xf32, #tpu.memory_space<vmem>>, vector<1x128x32xf32>
    %808 = vector.shape_cast %807 : vector<1x128x32xf32> to vector<128x32xf32>
    %cst_249 = arith.constant dense<0.000000e+00> : vector<8x32xf32>
    %809 = tpu.matmul %806, %808, %cst_249 {dimension_numbers = #tpu.dot_dimension_numbers<[1], [0], [0], [1], [0, 0, 1, 1], [], []>} : vector<8x128xf32>, vector<128x32xf32>, vector<8x32xf32> -> vector<8x32xf32>
    %810 = vector.extract_strided_slice %673 {offsets = [8, 0], sizes = [1, 32], strides = [1, 1]} : vector<16x128xf32> to vector<1x32xf32>
    %811 = vector.broadcast %810 : vector<1x32xf32> to vector<8x32xf32>
    %812 = arith.addf %809, %811 : vector<8x32xf32>
    %813 = arith.addf %799, %812 : vector<8x32xf32>
    %814 = vector.extract_strided_slice %673 {offsets = [9, 0], sizes = [1, 32], strides = [1, 1]} : vector<16x128xf32> to vector<1x32xf32>
    %815 = vector.extract_strided_slice %673 {offsets = [10, 0], sizes = [1, 32], strides = [1, 1]} : vector<16x128xf32> to vector<1x32xf32>
    %cst_250 = arith.constant dense<0.000000e+00> : vector<8xf32>
    %816 = vector.multi_reduction <add>, %813, %cst_250 [1] : vector<8x32xf32> to vector<8xf32>
    %817 = vector.shape_cast %816 : vector<8xf32> to vector<8x1xf32>
    %cst_251 = arith.constant 3.200000e+01 : f32
    %818 = vector.broadcast %cst_251 : f32 to vector<8x1xf32>
    %819 = arith.divf %817, %818 : vector<8x1xf32>
    %820 = vector.broadcast %819 : vector<8x1xf32> to vector<8x32xf32>
    %821 = arith.subf %813, %820 : vector<8x32xf32>
    %822 = arith.mulf %821, %821 : vector<8x32xf32>
    %cst_252 = arith.constant dense<0.000000e+00> : vector<8xf32>
    %823 = vector.multi_reduction <add>, %822, %cst_252 [1] : vector<8x32xf32> to vector<8xf32>
    %824 = vector.shape_cast %823 : vector<8xf32> to vector<8x1xf32>
    %cst_253 = arith.constant 3.200000e+01 : f32
    %825 = vector.broadcast %cst_253 : f32 to vector<8x1xf32>
    %826 = arith.divf %824, %825 : vector<8x1xf32>
    %cst_254 = arith.constant 9.99999974E-6 : f32
    %827 = vector.broadcast %cst_254 : f32 to vector<8x1xf32>
    %828 = arith.addf %826, %827 : vector<8x1xf32>
    %829 = math.rsqrt %828 : vector<8x1xf32>
    %830 = vector.broadcast %829 : vector<8x1xf32> to vector<8x32xf32>
    %831 = arith.mulf %821, %830 : vector<8x32xf32>
    %832 = vector.broadcast %814 : vector<1x32xf32> to vector<8x32xf32>
    %833 = arith.mulf %831, %832 : vector<8x32xf32>
    %834 = vector.broadcast %815 : vector<1x32xf32> to vector<8x32xf32>
    %835 = arith.addf %833, %834 : vector<8x32xf32>
    %c0_255 = arith.constant 0 : index
    %c0_256 = arith.constant 0 : index
    %836 = vector.load %arg14[%c0_255, %c0_256] : memref<2x32xf32, #tpu.memory_space<vmem>>, vector<2x32xf32>
    %837 = vector.extract_strided_slice %836 {offsets = [0, 0], sizes = [1, 32], strides = [1, 1]} : vector<2x32xf32> to vector<1x32xf32>
    %838 = vector.extract_strided_slice %836 {offsets = [1, 0], sizes = [1, 32], strides = [1, 1]} : vector<2x32xf32> to vector<1x32xf32>
    %cst_257 = arith.constant dense<0.000000e+00> : vector<8xf32>
    %839 = vector.multi_reduction <add>, %835, %cst_257 [1] : vector<8x32xf32> to vector<8xf32>
    %840 = vector.shape_cast %839 : vector<8xf32> to vector<8x1xf32>
    %cst_258 = arith.constant 3.200000e+01 : f32
    %841 = vector.broadcast %cst_258 : f32 to vector<8x1xf32>
    %842 = arith.divf %840, %841 : vector<8x1xf32>
    %843 = vector.broadcast %842 : vector<8x1xf32> to vector<8x32xf32>
    %844 = arith.subf %835, %843 : vector<8x32xf32>
    %845 = arith.mulf %844, %844 : vector<8x32xf32>
    %cst_259 = arith.constant dense<0.000000e+00> : vector<8xf32>
    %846 = vector.multi_reduction <add>, %845, %cst_259 [1] : vector<8x32xf32> to vector<8xf32>
    %847 = vector.shape_cast %846 : vector<8xf32> to vector<8x1xf32>
    %cst_260 = arith.constant 3.200000e+01 : f32
    %848 = vector.broadcast %cst_260 : f32 to vector<8x1xf32>
    %849 = arith.divf %847, %848 : vector<8x1xf32>
    %cst_261 = arith.constant 9.99999974E-6 : f32
    %850 = vector.broadcast %cst_261 : f32 to vector<8x1xf32>
    %851 = arith.addf %849, %850 : vector<8x1xf32>
    %852 = math.rsqrt %851 : vector<8x1xf32>
    %853 = vector.broadcast %852 : vector<8x1xf32> to vector<8x32xf32>
    %854 = arith.mulf %844, %853 : vector<8x32xf32>
    %855 = vector.broadcast %837 : vector<1x32xf32> to vector<8x32xf32>
    %856 = arith.mulf %854, %855 : vector<8x32xf32>
    %857 = vector.broadcast %838 : vector<1x32xf32> to vector<8x32xf32>
    %858 = arith.addf %856, %857 : vector<8x32xf32>
    %c0_262 = arith.constant 0 : index
    %c0_263 = arith.constant 0 : index
    %859 = vector.load %arg15[%c0_262, %c0_263] : memref<32x128xf32, #tpu.memory_space<vmem>>, vector<32x128xf32>
    %cst_264 = arith.constant dense<0.000000e+00> : vector<8x128xf32>
    %860 = tpu.matmul %858, %859, %cst_264 {dimension_numbers = #tpu.dot_dimension_numbers<[1], [0], [0], [1], [0, 0, 1, 1], [], []>} : vector<8x32xf32>, vector<32x128xf32>, vector<8x128xf32> -> vector<8x128xf32>
    %c0_265 = arith.constant 0 : index
    %c0_266 = arith.constant 0 : index
    %861 = vector.load %arg16[%c0_265, %c0_266] : memref<1x128xf32, #tpu.memory_space<vmem>>, vector<1x128xf32>
    %862 = vector.broadcast %861 : vector<1x128xf32> to vector<8x128xf32>
    %863 = arith.addf %860, %862 : vector<8x128xf32>
    %c0_267 = arith.constant 0 : index
    %c0_268 = arith.constant 0 : index
    %c0_269 = arith.constant 0 : index
    %864 = vector.load %arg17[%c0_267, %c0_268, %c0_269] : memref<1x8x128xf32, #tpu.memory_space<vmem>>, vector<1x8x128xf32>
    %865 = vector.shape_cast %864 : vector<1x8x128xf32> to vector<8x128xf32>
    %866 = vector.shape_cast %863 : vector<8x128xf32> to vector<1x8x128xf32>
    tpu.vector_store %arg17[%c0_267, %c0_268, %c0_269], %866 {strides = array<i32>} : memref<1x8x128xf32, #tpu.memory_space<vmem>>, vector<1x8x128xf32>,
    return
  }
  func.func @transform_0(%arg0: i32, %arg1: memref<2x8xi32, #tpu.memory_space<smem>>) -> (i32, i32, i32) {
    %c0_i32 = arith.constant 0 : i32
    %c0_i32_0 = arith.constant 0 : i32
    %c0_i32_1 = arith.constant 0 : i32
    return %arg0, %c0_i32, %c0_i32_0 : i32, i32, i32
  }
  func.func @transform_1(%arg0: i32, %arg1: memref<2x8xi32, #tpu.memory_space<smem>>) -> (i32, i32) {
    %c0_i32 = arith.constant 0 : i32
    %c0_i32_0 = arith.constant 0 : i32
    %c0_i32_1 = arith.constant 0 : i32
    return %c0_i32, %c0_i32_0 : i32, i32
  }
  func.func @transform_2(%arg0: i32, %arg1: memref<2x8xi32, #tpu.memory_space<smem>>) -> (i32, i32) {
    %c0_i32 = arith.constant 0 : i32
    %c0_i32_0 = arith.constant 0 : i32
    %c0_i32_1 = arith.constant 0 : i32
    return %c0_i32, %c0_i32_0 : i32, i32
  }
  func.func @transform_3(%arg0: i32, %arg1: memref<2x8xi32, #tpu.memory_space<smem>>) -> (i32, i32, i32) {
    %c0_i32 = arith.constant 0 : i32
    %c0_i32_0 = arith.constant 0 : i32
    %c0_i32_1 = arith.constant 0 : i32
    %c0_i32_2 = arith.constant 0 : i32
    return %c0_i32, %c0_i32_0, %c0_i32_1 : i32, i32, i32
  }
  func.func @transform_4(%arg0: i32, %arg1: memref<2x8xi32, #tpu.memory_space<smem>>) -> (i32, i32, i32) {
    %c0_i32 = arith.constant 0 : i32
    %c0_i32_0 = arith.constant 0 : i32
    %c0_i32_1 = arith.constant 0 : i32
    %c0_i32_2 = arith.constant 0 : i32
    return %c0_i32, %c0_i32_0, %c0_i32_1 : i32, i32, i32
  }
  func.func @transform_5(%arg0: i32, %arg1: memref<2x8xi32, #tpu.memory_space<smem>>) -> (i32, i32, i32) {
    %c0_i32 = arith.constant 0 : i32
    %c0_i32_0 = arith.constant 0 : i32
    %c0_i32_1 = arith.constant 0 : i32
    %c0_i32_2 = arith.constant 0 : i32
    return %c0_i32, %c0_i32_0, %c0_i32_1 : i32, i32, i32
  }
  func.func @transform_6(%arg0: i32, %arg1: memref<2x8xi32, #tpu.memory_space<smem>>) -> (i32, i32) {
    %c0_i32 = arith.constant 0 : i32
    %c0_i32_0 = arith.constant 0 : i32
    %c0_i32_1 = arith.constant 0 : i32
    return %c0_i32, %c0_i32_0 : i32, i32
  }
  func.func @transform_7(%arg0: i32, %arg1: memref<2x8xi32, #tpu.memory_space<smem>>) -> (i32, i32) {
    %c0_i32 = arith.constant 0 : i32
    %c0_i32_0 = arith.constant 0 : i32
    %c0_i32_1 = arith.constant 0 : i32
    return %c0_i32, %c0_i32_0 : i32, i32
  }
  func.func @transform_8(%arg0: i32, %arg1: memref<2x8xi32, #tpu.memory_space<smem>>) -> (i32, i32) {
    %c0_i32 = arith.constant 0 : i32
    %c0_i32_0 = arith.constant 0 : i32
    %c0_i32_1 = arith.constant 0 : i32
    return %c0_i32, %c0_i32_0 : i32, i32
  }
  func.func @transform_9(%arg0: i32, %arg1: memref<2x8xi32, #tpu.memory_space<smem>>) -> (i32, i32, i32) {
    %c0_i32 = arith.constant 0 : i32
    %c0_i32_0 = arith.constant 0 : i32
    %c0_i32_1 = arith.constant 0 : i32
    %c0_i32_2 = arith.constant 0 : i32
    return %c0_i32, %c0_i32_0, %c0_i32_1 : i32, i32, i32
  }
  func.func @transform_10(%arg0: i32, %arg1: memref<2x8xi32, #tpu.memory_space<smem>>) -> (i32, i32, i32) {
    %c0_i32 = arith.constant 0 : i32
    %c0_i32_0 = arith.constant 0 : i32
    %c0_i32_1 = arith.constant 0 : i32
    %c0_i32_2 = arith.constant 0 : i32
    return %c0_i32, %c0_i32_0, %c0_i32_1 : i32, i32, i32
  }
  func.func @transform_11(%arg0: i32, %arg1: memref<2x8xi32, #tpu.memory_space<smem>>) -> (i32, i32, i32) {
    %c0_i32 = arith.constant 0 : i32
    %c0_i32_0 = arith.constant 0 : i32
    %c0_i32_1 = arith.constant 0 : i32
    %c0_i32_2 = arith.constant 0 : i32
    return %c0_i32, %c0_i32_0, %c0_i32_1 : i32, i32, i32
  }
  func.func @transform_12(%arg0: i32, %arg1: memref<2x8xi32, #tpu.memory_space<smem>>) -> (i32, i32) {
    %c0_i32 = arith.constant 0 : i32
    %c0_i32_0 = arith.constant 0 : i32
    %c0_i32_1 = arith.constant 0 : i32
    return %c0_i32, %c0_i32_0 : i32, i32
  }
  func.func @transform_13(%arg0: i32, %arg1: memref<2x8xi32, #tpu.memory_space<smem>>) -> (i32, i32) {
    %c0_i32 = arith.constant 0 : i32
    %c0_i32_0 = arith.constant 0 : i32
    %c0_i32_1 = arith.constant 0 : i32
    return %c0_i32, %c0_i32_0 : i32, i32
  }
  func.func @transform_14(%arg0: i32, %arg1: memref<2x8xi32, #tpu.memory_space<smem>>) -> (i32, i32) {
    %c0_i32 = arith.constant 0 : i32
    %c0_i32_0 = arith.constant 0 : i32
    %c0_i32_1 = arith.constant 0 : i32
    return %c0_i32, %c0_i32_0 : i32, i32
  }
  func.func @transform_15(%arg0: i32, %arg1: memref<2x8xi32, #tpu.memory_space<smem>>) -> (i32, i32, i32) {
    %c0_i32 = arith.constant 0 : i32
    %c0_i32_0 = arith.constant 0 : i32
    %c0_i32_1 = arith.constant 0 : i32
    return %arg0, %c0_i32, %c0_i32_0 : i32, i32, i32
  }
}

</mosaic_0001>

<bundles_post_ra>
// kernel: vit_seq2seq_forward.1
= control target key start
LH: loop header
LB: loop body
LE: loop exit
PB: predicated region body
PF: predicated region fallthrough
CT: control target
= control target key end

     0   :  { %s4602_s24 = smov [#allocation3]   ;;  %s6294_s0 = inlined_call_operand.vmem [shape: s32[2,8], index: 0, kind: input, shape index: {}]   ;;  %s6295_s1 = inlined_call_operand.vmem [shape: f32[2,17,192], index: 1, kind: input, shape index: {}]   ;;  %s6296_s2 = inlined_call_operand.vmem [shape: f32[192,32], index: 2, kind: input, shape index: {}]   ;;  %s6297_s3 = inlined_call_operand.vmem [shape: f32[17,32], index: 3, kind: input, shape index: {}]   ;;  %s6298_s4 = inlined_call_operand.vmem [shape: f32[2,32,256], index: 4, kind: input, shape index: {}]   ;;  %s6299_s5 = inlined_call_operand.vmem [shape: f32[2,128,32], index: 5, kind: input, shape index: {}]   ;;  %s6300_s6 = inlined_call_operand.vmem [shape: f32[2,8,128], index: 6, kind: input, shape index: {}]   ;;  %s6301_s7 = inlined_call_operand.vmem [shape: f32[2,32], index: 7, kind: input, shape index: {}]   ;;  %s6302_s8 = inlined_call_operand.vmem [shape: f32[64,32], index: 8, kind: input, shape index: {}]   ;;  %s6303_s9 = inlined_call_operand.vmem [shape: f32[16,32], index: 9, kind: input, shape index: {}]   ;;  %s6304_s10 = inlined_call_operand.vmem [shape: f32[2,32,288], index: 10, kind: input, shape index: {}]   ;;  %s6305_s11 = inlined_call_operand.vmem [shape: f32[2,128,32], index: 11, kind: input, shape index: {}]   ;;  %s6306_s12 = inlined_call_operand.vmem [shape: f32[2,16,128], index: 12, kind: input, shape index: {}]   ;;  %s6307_s13 = inlined_call_operand.vmem [shape: f32[2,32], index: 13, kind: input, shape index: {}]   ;;  %s6308_s14 = inlined_call_operand.vmem [shape: f32[32,128], index: 14, kind: input, shape index: {}]   ;;  %s6309_s15 = inlined_call_operand.vmem [shape: f32[1,128], index: 15, kind: input, shape index: {}]   ;;  %s6310_s16 = inlined_call_operand.hbm [shape: f32[2,8,128], index: 16, kind: output, shape index: {}]  }
   0x1   :  { %6355 = sst [smem:[#allocation17_spill]] %s6294_s0 }
   0x2   :  { %6356 = sst [smem:[#allocation18_spill]] %s6295_s1 }
   0x3   :  { %6357 = sst [smem:[#allocation19_spill]] %s6296_s2 }
   0x4   :  { %6358 = sst [smem:[#allocation20_spill]] %s6297_s3 }
   0x5   :  { %6359 = sst [smem:[#allocation21_spill]] %s6298_s4 }
   0x6   :  { %6360 = sst [smem:[#allocation22_spill]] %s6299_s5 }
   0x7   :  { %6361 = sst [smem:[#allocation23_spill]] %s6301_s7 }
   0x8   :  { %6362 = sst [smem:[#allocation24_spill]] %s6305_s11 }
   0x9   :  { %6363 = sst [smem:[#allocation25_spill]] %s6307_s13 }
   0xa   :  { %6364 = sst [smem:[#allocation26_spill]] %s6308_s14 }
   0xb   :  { %6365 = sst [smem:[#allocation27_spill]] %s6309_s15 }
   0xc   :  { %6366 = sst [smem:[#allocation28_spill]] %s6310_s16 }
   0xd   :  { %s6367_s23 = sld [smem:[#allocation17_spill]] }
  0x13   :  { %s22_s7 = sshll.u32 %s6367_s23, 4  ;;  %s23_s7 = int_to_ptr.vmem [resolvable:$true] %s22_s7 }
  0x14   :  { %25 = dma.vmem_to_smem %s23_s7, 32, %s4602_s24, [#allocation2] }
  0x15   :  { %4580 = dma.done.wait [#allocation2], 32 }
  0x16   :  { %4581 = vsyncadd [#allocation2], 4294967264 }
  0x17   :  { %28 = sfence }
  0x18   :  { %29 = vsyncpa [#allocation5], 0 }
  0x19   :  { %31 = vsyncpa [#allocation5 + $0x1], 0  ;;  %s4709_s25 = smov 0   ;;  %s4711_s26 = smov 0  }
  0x1a   :  { %s4713_s27 = smov 0   ;;  %s4715_s28 = smov 0  }
  0x1b LB: > { %6368 = sst [smem:[#allocation8_spill]] %s4588_s25  ;;  %s4730_s7 = sadd.s32 4294967295, %s4600_s28   ;;  %s4600_s28 = sphi %s4715_s28, %s6413_s28   ;;  %s4596_s27 = sphi %s4713_s27, %s6416_s27   ;;  %s4592_s26 = sphi %s4711_s26, %s6415_s26   ;;  %s4588_s25 = sphi %s4709_s25, %s6414_s25  }
  0x1c   : > { %6369 = sst [smem:[#allocation9_spill]] %s4592_s26  ;;  %s3978_s29 = sadd.s32 4294967294, %s4600_s28  }
  0x1d   : > { %6370 = sst [smem:[#allocation10_spill]] %s4596_s27  ;;  %s4734_s30 = sadd.s32 1, %s4600_s28  }
  0x1e   : > { %6371 = sst [smem:[#allocation11_spill]] %s4600_s28  ;;  %s364_s0 = sadd.s32 1, %s4596_s27 }
  0x1f   : > { %6372 = sst [smem:[#allocation12_spill]] %s4730_s7  ;;  %s361_s17 = ssub.s32 %s4600_s28, %s4734_s30 }
  0x20   : > { %6373 = sst [smem:[#allocation13_spill]] %s4734_s30  ;;  %p374_p0 = scmp.ne.s32.totalorder %s4596_s27, %s4592_s26 }
  0x21   : > { %p362_p1 = scmp.eq.s32.totalorder %s361_s17, 0  ;;  %p375_p2 = scmp.eq.s32.totalorder %s4730_s7, 1 }
  0x22   : > { %p380_p3 = scmp.ne.s32.totalorder %s4592_s26, %s4588_s25  ;;  %p381_p4 = scmp.eq.s32.totalorder %s3978_s29, 1 }
  0x23   : > { %s4745_s18 = scalar_select %p362_p1, %s4596_s27, %s364_s0  }
  0x24   : > { %p4747_p5 = por %p375_p2, %p374_p0  ;;  %p4751_p6 = por %p381_p4, %p380_p3 }
  0x25   : > { %6374 = sst [smem:[#allocation14_spill]] %s4745_s18  ;;  %p3981_p7 = scmp.ge.s32.totalorder %s4600_s28, 1 }
  0x26   : > { %s6375_s19 = scalar_select %p4747_p5, 1, 0 }
  0x27   : > { %s6377_s20 = scalar_select %p4751_p6, 1, 0 }
  0x28   : > { %6376 = sst [smem:[#allocation15_spill]] %s6375_s19  ;;  %p449_p8 = scmp.lt.s32.totalorder %s4600_s28, 3 }
  0x29   : > { %6378 = sst [smem:[#allocation16_spill]] %s6377_s20 }
  0x2a   : > { %p450_p9 = pnand %p3981_p7, %p449_p8 }
  0x2b   : > { %s6379_s2 = sld [smem:[#allocation19_spill]] (!%p450_p9)  ;;  %p497_p10 = scmp.lt.s32.totalorder (!%p450_p9), %s4730_s7, 1 }
  0x2c   : > { %453 = sbr.rel (%p450_p9) target bundleno = 8831 (0x227f), region = 80  ;;  %s6380_s1 = sld [smem:[#allocation18_spill]] (!%p450_p9) }
  0x2d   : > { %s6381_s3 = sld [smem:[#allocation20_spill]] (!%p450_p9)  ;;  %s6344_s23 = smov (!%p450_p9), 88  }
  0x2e   : > { %s6382_s4 = sld [smem:[#allocation21_spill]] (!%p450_p9)  ;;  %s6342_s24 = smov (!%p450_p9), 120  }
  0x2f   : > { %s6334_s29 = smov (!%p450_p9), 80   ;;  %s6340_s0 = smov (!%p450_p9), 104  }
  0x30   : > { %s6338_s17 = smov (!%p450_p9), 72   ;;  %s6332_s20 = smov (!%p450_p9), 112  }
  0x31   : > { %v523_v0 = vld [vmem:[%s6379_s2 + $0x78] sm:$0xff]  ;;  %v522_v1 = vld [vmem:[%s6379_s2 + $0x70] sm:$0xff]  ;;  %v521_v2 = vld [vmem:[%s6379_s2 + $0x68] sm:$0xff]  ;;  %s498_s27 = scalar_select %p497_p10, %s4730_s7, 1  ;;  %vm535_vm0 = vcmask 523264   ;;  %vm606_vm1 = vcmask 261120  }
  0x32   : > { %545 = vmatpush.msra.mxu0 %v523_v0  ;;  %v531_v3 = vld [vmem:[%s6379_s2 + $0xb8] sm:$0xff]  ;;  %v520_v4 = vld [vmem:[%s6379_s2 + $0x60] sm:$0xff]  ;;  %v530_v5 = vld [vmem:[%s6379_s2 + $0xb0] sm:$0xff]  ;;  %vm613_vm2 = vcmask 253952   ;;  %v4603_v48 = vmov 32.0   ;;  %s6330_s21 = smov 56  }
  0x33   : > { %579 = vmatpush.msra.mxu1 %v531_v3  ;;  %v529_v6 = vld [vmem:[%s6379_s2 + $0xa8] sm:$0xff]  ;;  %v519_v7 = vld [vmem:[%s6379_s2 + $0x58] sm:$0xff]  ;;  %v528_v8 = vld [vmem:[%s6379_s2 + $0xa0] sm:$0xff]  ;;  %s4187_s18 = smul.u32 48, %s498_s27  ;;  %4327 = vrcp.f32 %v4603_v48  ;;  %s6320_s22 = smov 64   ;;  %vm734_vm13 = vcmask 64512  }
  0x34   : > { %546 = vmatpush.msra.mxu0 %v522_v1  ;;  %v518_v9 = vld [vmem:[%s6379_s2 + $0x50] sm:$0xff]  ;;  %v527_v10 = vld [vmem:[%s6379_s2 + $0x98] sm:$0xff]  ;;  %v517_v11 = vld [vmem:[%s6379_s2 + $0x48] sm:$0xff]  ;;  %vm825_vm14 = vcmask 1040384   ;;  %vm773_vm15 = vcmask 138240   ;;  %s6328_s30 = smov 40  }
  0x35   : > { %580 = vmatpush.msra.mxu1 %v530_v5  ;;  %v526_v12 = vld [vmem:[%s6379_s2 + $0x90] sm:$0xff]  ;;  %v516_v13 = vld [vmem:[%s6379_s2 + $0x40] sm:$0xff]  ;;  %v525_v14 = vld [vmem:[%s6379_s2 + $0x88] sm:$0xff]  ;;  %s501_s27 = scalar_lea.vmem %s6380_s1, %s4187_s18  ;;  %s6318_s18 = smov 48  }
  0x36   : > { %547 = vmatpush.msra.mxu0 %v521_v2  ;;  %v515_v15 = vld [vmem:[%s6379_s2 + $0x38] sm:$0xff]  ;;  %v524_v16 = vld [vmem:[%s6379_s2 + $0x80] sm:$0xff]  ;;  %v514_v17 = vld [vmem:[%s6379_s2 + $0x30] sm:$0xff]  ;;  %s6316_s25 = smov 32   ;;  %s6383_s5 = sld [smem:[#allocation22_spill]] }
  0x37   : > { %581 = vmatpush.msra.mxu1 %v529_v6  ;;  %v503_v18 = vld [vmem:[%s501_s27 + $0x8] sm:$0xff]  ;;  %v512_v20 = vld [vmem:[%s6379_s2 + $0x20] sm:$0xff]  ;;  %v511_v21 = vld [vmem:[%s6379_s2 + $0x18] sm:$0xff] }
  0x38   : > { %548 = vmatpush.msra.mxu0 %v520_v4  ;;  %v513_v19 = vld [vmem:[%s6379_s2 + $0x28] sm:$0xff]  ;;  %v510_v22 = vld [vmem:[%s6379_s2 + $0x10] sm:$0xff]  ;;  %v505_v23 = vld [vmem:[%s501_s27 + $0x18] sm:$0xff] }
  0x39   : > { %582 = vmatpush.msra.mxu1 %v528_v8  ;;  %v509_v24 = vld [vmem:[%s6379_s2 + $0x8] sm:$0xff]  ;;  %v508_v25 = vld [vmem:[%s6379_s2] sm:$0xff]  ;;  %v504_v28 = vld [vmem:[%s501_s27 + $0x10] sm:$0xff]  ;;  %v4328_v49 = vpop.eup %4327 }
  0x3a   : > { %549 = vmatpush.msra.mxu0 %v519_v7  ;;  %v502_v26 = vld [vmem:[%s501_s27] sm:$0xff]  ;;  %v507_v27 = vld [vmem:[%s501_s27 + $0x28] sm:$0x1]  ;;  %v534_v42 = vld [vmem:[%s6381_s3 + $0x10] sm:$0x1]  ;;  %v618_v50 = vmul.f32 32.0, %v4328_v49  ;;  %vm622_vm3 = vweird.f32 %v4328_v49 }
  0x3b   : > { %583 = vmatpush.msra.mxu1 %v527_v10  ;;  %v506_v29 = vld [vmem:[%s501_s27 + $0x20] sm:$0x1]  ;;  %v533_v36 = vld [vmem:[%s6381_s3 + $0x8] sm:$0xff]  ;;  %v4880_v6 = vld [vmem:[%s6382_s4 + $0x38] sm:$0xff]  ;;  %s6336_s27 = smov 96  }
  0x3c   : > { %550 = vmatpush.msra.mxu0 %v518_v9  ;;  %v532_v31 = vld [vmem:[%s6381_s3] sm:$0xff]  ;;  %v619_v51 = vsub.f32 1.0, %v618_v50  ;;  %711 = vmatpush.msra.mxu2 %v4880_v6  ;;  %v4886_v7 = vld [vmem:[%s6382_s4 + $0x28] sm:$0xff]  ;;  %v4892_v8 = vld [vmem:[%s6382_s4 + $0x18] sm:$0xff] }
  0x3d   : > { %584 = vmatpush.msra.mxu1 %v526_v12  ;;  %v4898_v9 = vld [vmem:[%s6382_s4 + $0x8] sm:$0xff] }
  0x3e   : > { %551 = vmatpush.msra.mxu0 %v517_v11  ;;  %v620_v52 = vmul.f32 %v4328_v49, %v619_v51  ;;  %712 = vmatpush.msra.mxu2 %v4886_v7 }
  0x3f   : > { %585 = vmatpush.msra.mxu1 %v525_v14  ;;  %v4271_v14 = vpack.i.bf16 %v4898_v9, %v4892_v8 }
  0x40   : > { %552 = vmatpush.msra.mxu0 %v516_v13  ;;  %v621_v53 = vadd.f32 %v4328_v49, %v620_v52  ;;  %713 = vmatpush.msra.mxu2 %v4892_v8  ;;  %v4266_v13 = vpack.i.bf16 %v4886_v7, %v4880_v6 }
  0x41   : > { %586 = vmatpush.msra.mxu1 %v524_v16 }
  0x42   : > { %553 = vmatpush.msra.mxu0 %v515_v15  ;;  %3984 = vmatmul.msk.f32.vlgmr.msra.gmra.mxu1 %vm535_vm0, %v503_v18  ;;  %v4858_v54 = vsel %vm622_vm3, %v4328_v49, %v621_v53  ;;  %vm780_vm3 = vcmask 131072  }
  0x43   : > { %714 = vmatpush.msra.mxu2 %v4898_v9 }
  0x44   : > { %554 = vmatpush.msra.mxu0 %v514_v17 }
  0x46   : > { %555 = vmatpush.msra.mxu0 %v513_v19 }
  0x48   : > { %556 = vmatpush.msra.mxu0 %v512_v20 }
  0x4a   : > { %557 = vmatpush.msra.mxu0 %v511_v21  ;;  %3985 = vmatmul.msk.f32.gmra.mxu1 %vm535_vm0, %v505_v23 }
  0x4c   : > { %558 = vmatpush.msra.mxu0 %v510_v22 }
  0x4e   : > { %559 = vmatpush.msra.mxu0 %v509_v24 }
  0x50   : > { %560 = vmatpush.msra.mxu0 %v508_v25  ;;  %v4911_v25 = vld [vmem:[%s6300_s6] sm:$0xff] }
  0x51   : > { %561 = vmatmul.f32.vlgmr.msra.gmra.mxu0 %v502_v26 }
  0x52   : > { %3986 = vmatmul.msk.f32.gmra.mxu1 %vm535_vm0, %v507_v27 }
  0x59   : > { %564 = vmatmul.f32.gmra.mxu0 %v504_v28 }
  0x61   : > { %567 = vmatmul.f32.gmra.mxu0 %v506_v29 }
  0xbf   : > { %v588_v30 = vpop.f32.mrf.mxu1 }
  0xc7   : > { %v591_v37 = vpop.f32.mrf.mxu1 }
  0xce   : > { %v562_v32 = vpop.f32.mrf.mxu0 }
  0xcf   : > { %v563_v33 = vadd.f32 %v562_v32, %v532_v31  ;;  %v594_v44 = vpop.f32.mrf.mxu1 }
  0xd1   : > { %v4840_v34 = vadd.f32 %v588_v30, %v563_v33  ;;  %v681_v30 = vperm.slane %v4911_v25, 0 }
  0xd3   : > { %v607_v35 = vsel %vm606_vm1, %v4840_v34, 0.0 }
  0xd4   : > { %608 = vadd.xlane.f32.xlu0 %v607_v35  ;;  %v685_v35 = vperm.slane %v4911_v25, 1 }
  0xd6   : > { %v565_v38 = vpop.f32.mrf.mxu0 }
  0xd7   : > { %v566_v39 = vadd.f32 %v565_v38, %v533_v36 }
  0xd9   : > { %v4847_v40 = vadd.f32 %v591_v37, %v566_v39 }
  0xdb   : > { %v610_v41 = vsel %vm606_vm1, %v4847_v40, 0.0 }
  0xdc   : > { %611 = vadd.xlane.f32.xlu0 %v610_v41 }
  0xde   : > { %v568_v43 = vpop.f32.mrf.mxu0 }
  0xdf   : > { %v569_v45 = vadd.f32 %v568_v43, %v534_v42 }
  0xe1   : > { %v4854_v46 = vadd.f32 %v594_v44, %v569_v45 }
  0xe3   : > { %v614_v47 = vsel %vm613_vm2, %v4854_v46, 0.0 }
  0xe4   : > { %615 = vadd.xlane.f32.xlu1 %v614_v47 }
 0x147   : > { %v609_v55 = vpop.xlane.xlu0 %608 }
 0x148   : > { %v624_v56 = vmul.f32 %v4858_v54, %v609_v55 }
 0x14a   : > { %v627_v57 = vsub.f32 %v4840_v34, %v624_v56 }
 0x14c   : > { %v630_v58 = vmul.f32 %v627_v57, %v627_v57 }
 0x14e   : > { %v633_v59 = vsel %vm606_vm1, %v630_v58, 0.0  ;;  %v689_v58 = vperm.slane %v4911_v25, 2 }
 0x14f   : > { %634 = vadd.xlane.f32.xlu1 %v633_v59  ;;  %v612_v60 = vpop.xlane.xlu0 %611 }
 0x150   : > { %v625_v61 = vmul.f32 %v4858_v54, %v612_v60 }
 0x152   : > { %v4865_v62 = vsub.f32 %v4847_v40, %v625_v61 }
 0x154   : > { %v631_v63 = vmul.f32 %v4865_v62, %v4865_v62 }
 0x156   : > { %v636_v0 = vsel %vm606_vm1, %v631_v63, 0.0 }
 0x157   : > { %v616_v1 = vpop.xlane.xlu1 %615  ;;  %637 = vadd.xlane.f32.xlu2 %v636_v0 }
 0x158   : > { %v626_v2 = vmul.f32 %v4858_v54, %v616_v1 }
 0x15a   : > { %v4872_v3 = vsub.f32 %v4854_v46, %v626_v2 }
 0x15c   : > { %v632_v4 = vmul.f32 %v4872_v3, %v4872_v3 }
 0x15e   : > { %v639_v5 = vsel %vm613_vm2, %v632_v4, 0.0 }
 0x15f   : > { %640 = vadd.xlane.f32.xlu2 %v639_v5 }
 0x1c2   : > { %v635_v10 = vpop.xlane.xlu1 %634 }
 0x1c3   : > { %v642_v11 = vmul.f32 %v635_v10, %v4858_v54 }
 0x1c5   : > { %v645_v12 = vadd.f32 1e-05, %v642_v11 }
 0x1c7   : > { %4329 = vrsqrt.f32 %v645_v12  ;;  %vm654_vm5 = vweird.f32 %v645_v12 }
 0x1ca   : > { %v638_v15 = vpop.xlane.xlu2 %637 }
 0x1cb   : > { %v643_v16 = vmul.f32 %v638_v15, %v4858_v54 }
 0x1cd   : > { %v4330_v17 = vpop.eup %4329  ;;  %v646_v18 = vadd.f32 1e-05, %v643_v16 }
 0x1ce   : > { %v649_v19 = vmul.f32 %v4330_v17, %v645_v12  ;;  %vm655_vm4 = vweird.f32 %v4330_v17 }
 0x1cf   : > { %4331 = vrsqrt.f32 %v646_v18  ;;  %vm656_vm6 = vmor %vm654_vm5, %vm655_vm4  ;;  %vm664_vm8 = vweird.f32 %v646_v18  ;;  %vm1277_vm4 = vcmask 130048   ;;  %vm1281_vm5 = vcmask 195584  }
 0x1d0   : > { %v650_v20 = vmul.f32 %v4330_v17, %v649_v19 }
 0x1d2   : > { %v651_v21 = vmul.f32 0.5, %v650_v20  ;;  %v641_v22 = vpop.xlane.xlu2 %640 }
 0x1d3   : > { %v644_v23 = vmul.f32 %v641_v22, %v4858_v54 }
 0x1d4   : > { %v652_v24 = vsub.f32 1.5, %v651_v21 }
 0x1d5   : > { %v4332_v26 = vpop.eup %4331  ;;  %v647_v27 = vadd.f32 1e-05, %v644_v23 }
 0x1d6   : > { %v653_v28 = vmul.f32 %v4330_v17, %v652_v24  ;;  %v659_v29 = vmul.f32 %v4332_v26, %v646_v18  ;;  %vm665_vm7 = vweird.f32 %v4332_v26 }
 0x1d7   : > { %4333 = vrsqrt.f32 %v647_v27  ;;  %vm666_vm9 = vmor %vm664_vm8, %vm665_vm7  ;;  %vm674_vm11 = vweird.f32 %v647_v27 }
 0x1d8   : > { %v660_v31 = vmul.f32 %v4332_v26, %v659_v29  ;;  %v657_v32 = vsel %vm656_vm6, %v4330_v17, %v653_v28 }
 0x1d9   : > { %v678_v33 = vmul.f32 %v657_v32, %v627_v57 }
 0x1da   : > { %v661_v36 = vmul.f32 0.5, %v660_v31 }
 0x1db   : > { %v682_v37 = vmul.f32 %v681_v30, %v678_v33 }
 0x1dc   : > { %v662_v38 = vsub.f32 1.5, %v661_v36 }
 0x1dd   : > { %v4334_v39 = vpop.eup %4333  ;;  %v686_v41 = vadd.f32 %v685_v35, %v682_v37 }
 0x1de   : > { %v663_v42 = vmul.f32 %v4332_v26, %v662_v38  ;;  %v669_v43 = vmul.f32 %v4334_v39, %v647_v27  ;;  %vm675_vm10 = vweird.f32 %v4334_v39 }
 0x1df   : > { %3987 = vmatmul.msk.f32.vlgmr.msra.gmra.mxu2 %vm606_vm1, %v686_v41  ;;  %vm676_vm12 = vmor %vm674_vm11, %vm675_vm10 }
 0x1e0   : > { %v670_v44 = vmul.f32 %v4334_v39, %v669_v43  ;;  %v667_v45 = vsel %vm666_vm9, %v4332_v26, %v663_v42 }
 0x1e1   : > { %v679_v47 = vmul.f32 %v667_v45, %v4865_v62 }
 0x1e2   : > { %v671_v48 = vmul.f32 0.5, %v670_v44 }
 0x1e3   : > { %v683_v49 = vmul.f32 %v681_v30, %v679_v47 }
 0x1e4   : > { %v672_v50 = vsub.f32 1.5, %v671_v48 }
 0x1e5   : > { %v687_v51 = vadd.f32 %v685_v35, %v683_v49 }
 0x1e6   : > { %v673_v52 = vmul.f32 %v4334_v39, %v672_v50 }
 0x1e7   : > { %3988 = vmatmul.msk.f32.gmra.mxu2 %vm606_vm1, %v687_v51 }
 0x1e8   : > { %v677_v53 = vsel %vm676_vm12, %v4334_v39, %v673_v52 }
 0x1e9   : > { %v680_v55 = vmul.f32 %v677_v53, %v4872_v3 }
 0x1eb   : > { %v684_v56 = vmul.f32 %v681_v30, %v680_v55 }
 0x1ed   : > { %v688_v57 = vadd.f32 %v685_v35, %v684_v56 }
 0x1ef   : > { %3989 = vmatmul.msk.f32.gmra.mxu2 %vm606_vm1, %v688_v57 }
 0x262   : > { %v716_v59 = vpop.f32.mrf.mxu2 }
 0x263   : > { %v717_v60 = vadd.f32 %v716_v59, %v689_v58 }
 0x265   : > { %728 = vrot.lane.b32.xlu2 %v717_v60, %s6336_s27 }
 0x26a   : > { %v719_v61 = vpop.f32.mrf.mxu2 }
 0x26b   : > { %v720_v62 = vadd.f32 %v719_v61, %v689_v58 }
 0x26d   : > { %862 = vrot.lane.b32.xlu2 %v720_v62, %s6344_s23  ;;  %730 = vrot.lane.b32.xlu1 %v720_v62, %s6336_s27  ;;  %v4947_v1 = vpack.i.bf16 %v717_v60, %v720_v62 }
 0x272   : > { %v722_v63 = vpop.f32.mrf.mxu2 }
 0x273   : > { %v4924_v0 = vadd.f32 %v722_v63, %v689_v58 }
 0x275   : > { %856 = vrot.lane.b32.xlu2 %v720_v62, %s6342_s24  ;;  %860 = vrot.lane.b32.xlu1 %v717_v60, %s6344_s23 }
 0x276   : > { %732 = vrot.lane.b32.xlu0 %v4924_v0, %s6336_s27  ;;  %s6388_s27 = smov 40  }
 0x27d   : > { %988 = vrot.lane.b32.xlu2 %v717_v60, %s6334_s29  ;;  %992 = vrot.lane.b32.xlu1 %v4924_v0, %s6334_s29 }
 0x27e   : > { %864 = vrot.lane.b32.xlu0 %v4924_v0, %s6344_s23 }
 0x285   : > { %858 = vrot.lane.b32.xlu2 %v4924_v0, %s6342_s24  ;;  %990 = vrot.lane.b32.xlu1 %v720_v62, %s6334_s29  ;;  %s6389_s29 = smov 64  }
 0x286   : > { %854 = vrot.lane.b32.xlu0 %v717_v60, %s6342_s24 }
 0x28d   : > { %1110 = vrot.lane.b32.xlu2 %v717_v60, %s6340_s0  ;;  %1116 = vrot.lane.b32.xlu1 %v717_v60, %s6338_s17 }
 0x28e   : > { %1120 = vrot.lane.b32.xlu0 %v4924_v0, %s6338_s17 }
 0x295   : > { %986 = vrot.lane.b32.xlu2 %v4924_v0, %s6332_s20  ;;  %984 = vrot.lane.b32.xlu1 %v720_v62, %s6332_s20 }
 0x296   : > { %1118 = vrot.lane.b32.xlu0 %v720_v62, %s6338_s17 }
 0x29d   : > { %4252 = vrot.lane.b32.xlu2 %v4947_v1, %s6330_s21  ;;  %1114 = vrot.lane.b32.xlu1 %v4924_v0, %s6340_s0 }
 0x29e   : > { %982 = vrot.lane.b32.xlu0 %v717_v60, %s6332_s20  ;;  %s6390_s20 = smov 48  }
 0x2a5   : > { %812 = vrot.lane.b32.xlu2 %v4924_v0, %s6320_s22  ;;  %4247 = vrot.lane.b32.xlu1 %v4947_v1, %s6320_s22  ;;  %s6324_s22 = smov 24  }
 0x2a6   : > { %1112 = vrot.lane.b32.xlu0 %v720_v62, %s6340_s0 }
 0x2ae   : > { %941 = vrot.lane.b32.xlu0 %v4924_v0, %s6330_s21  ;;  %s6391_s21 = smov 32  }
 0x2bf   : > { %v729_v2 = vpop.permute.xlu2 %728 }
 0x2c7   : > { %v863_v3 = vpop.permute.xlu2 %862 }
 0x2cf   : > { %v857_v4 = vpop.permute.xlu2 %856 }
 0x2d7   : > { %v989_v5 = vpop.permute.xlu2 %988 }
 0x2df   : > { %v731_v10 = vpop.permute.xlu1 %730  ;;  %v859_v11 = vpop.permute.xlu2 %858 }
 0x2e7   : > { %v861_v12 = vpop.permute.xlu1 %860  ;;  %v1111_v15 = vpop.permute.xlu2 %1110 }
 0x2e8   : > { %v733_v16 = vpop.permute.xlu0 %732 }
 0x2e9   : > { %3990 = vmatpush.xpose.msk.msra.mxu3 %vm734_vm13, %v733_v16 }
 0x2ed   : > { %3991 = vmatpush.xpose.msk.msra.mxu3 %vm734_vm13, %v731_v10 }
 0x2ef   : > { %v993_v17 = vpop.permute.xlu1 %992  ;;  %v987_v18 = vpop.permute.xlu2 %986 }
 0x2f0   : > { %v865_v19 = vpop.permute.xlu0 %864  ;;  %4010 = vmatpush.xpose.msk.msrb.mxu0 %vm734_vm13, %v993_v17 }
 0x2f1   : > { %3992 = vmatpush.xpose.msk.msra.mxu3 %vm734_vm13, %v729_v2 }
 0x2f4   : > { %3993 = vmatmul.msk.f32.vlgmr.msra.gmra.mxu3 %vm734_vm13, %v717_v60 }
 0x2f5   : > { %4000 = vmatpush.xpose.msk.msrb.mxu3 %vm734_vm13, %v865_v19 }
 0x2f7   : > { %v991_v20 = vpop.permute.xlu1 %990  ;;  %v4253_v21 = vpop.permute.xlu2 %4252 }
 0x2f8   : > { %v855_v22 = vpop.permute.xlu0 %854  ;;  %4011 = vmatpush.xpose.msk.msrb.mxu0 %vm734_vm13, %v991_v20  ;;  %v4254_v37 = vunpack.i.l.bf16 %v4253_v21  ;;  %v4255_v38 = vunpack.i.h.bf16 %v4253_v21 }
 0x2f9   : > { %4001 = vmatpush.xpose.msk.msrb.mxu3 %vm734_vm13, %v863_v3 }
 0x2fc   : > { %3994 = vmatmul.msk.f32.gmra.mxu3 %vm734_vm13, %v720_v62  ;;  %4012 = vmatpush.xpose.msk.msrb.mxu0 %vm734_vm13, %v989_v5 }
 0x2fd   : > { %4002 = vmatpush.xpose.msk.msrb.mxu3 %vm734_vm13, %v861_v12 }
 0x2ff   : > { %v1117_v23 = vpop.permute.xlu1 %1116  ;;  %v813_v24 = vpop.permute.xlu2 %812 }
 0x300   : > { %v1121_v26 = vpop.permute.xlu0 %1120  ;;  %3996 = vmatpush.msk.msrb.mxu2 %vm825_vm14, %v813_v24 }
 0x301   : > { %4020 = vmatpush.xpose.msk.msra.mxu3 %vm734_vm13, %v1121_v26 }
 0x304   : > { %3995 = vmatmul.msk.f32.gmra.mxu3 %vm734_vm13, %v4924_v0 }
 0x307   : > { %v985_v27 = vpop.permute.xlu1 %984 }
 0x308   : > { %v1119_v28 = vpop.permute.xlu0 %1118 }
 0x309   : > { %4021 = vmatpush.xpose.msk.msra.mxu3 %vm734_vm13, %v1119_v28 }
 0x30c   : > { %4003 = vmatmul.msk.f32.vlgmr.msrb.gmra.mxu3 %vm734_vm13, %v855_v22 }
 0x30d   : > { %4022 = vmatpush.xpose.msk.msra.mxu3 %vm734_vm13, %v1117_v23 }
 0x30f   : > { %v1115_v29 = vpop.permute.xlu1 %1114 }
 0x310   : > { %v983_v30 = vpop.permute.xlu0 %982 }
 0x311   : > { %4013 = vmatmul.msk.f32.vlgmr.msrb.gmra.mxu0 %vm734_vm13, %v983_v30 }
 0x314   : > { %4004 = vmatmul.msk.f32.gmra.mxu3 %vm734_vm13, %v857_v4 }
 0x317   : > { %v4248_v31 = vpop.permute.xlu1 %4247 }
 0x318   : > { %v1113_v32 = vpop.permute.xlu0 %1112  ;;  %v4249_v33 = vunpack.i.l.bf16 %v4248_v31  ;;  %v4250_v35 = vunpack.i.h.bf16 %v4248_v31 }
 0x319   : > { %4014 = vmatmul.msk.f32.gmra.mxu0 %vm734_vm13, %v985_v27 }
 0x31a   : > { %842 = vmatpush.msrb.mxu2 %v4249_v33 }
 0x31c   : > { %4005 = vmatmul.msk.f32.gmra.mxu3 %vm734_vm13, %v859_v11  ;;  %843 = vmatpush.msrb.mxu2 %v4250_v35 }
 0x320   : > { %v942_v36 = vpop.permute.xlu0 %941 }
 0x321   : > { %4006 = vmatpush.msk.msrb.mxu1 %vm825_vm14, %v942_v36  ;;  %4015 = vmatmul.msk.f32.gmra.mxu0 %vm734_vm13, %v987_v18 }
 0x323   : > { %970 = vmatpush.msrb.mxu1 %v4254_v37 }
 0x324   : > { %4023 = vmatmul.msk.f32.vlgmr.msra.gmra.mxu3 %vm734_vm13, %v1111_v15 }
 0x325   : > { %971 = vmatpush.msrb.mxu1 %v4255_v38 }
 0x32c   : > { %4024 = vmatmul.msk.f32.gmra.mxu3 %vm734_vm13, %v1113_v32 }
 0x334   : > { %4025 = vmatmul.msk.f32.gmra.mxu3 %vm734_vm13, %v1115_v29 }
 0x377   : > { %v764_v39 = vpop.f32.mrf.mxu3 }
 0x378   : > { %v774_v49 = vsel %vm773_vm15, %v764_v39, -inf }
 0x37f   : > { %v767_v41 = vpop.f32.mrf.mxu3 }
 0x380   : > { %v777_v55 = vsel %vm773_vm15, %v767_v41, -inf }
 0x387   : > { %v4988_v42 = vpop.f32.mrf.mxu3 }
 0x388   : > { %v781_v59 = vsel %vm780_vm3, %v4988_v42, -inf }
 0x38e   : > { %v1023_v43 = vpop.f32.mrf.mxu0 }
 0x38f   : > { %v4990_v44 = vpop.f32.mrf.mxu3  ;;  %v1032_v45 = vsel %vm773_vm15, %v1023_v43, -inf }
 0x390   : > { %1033 = vmax.xlane.f32.xlu0 %v1032_v45  ;;  %v904_v61 = vsel %vm773_vm15, %v4990_v44, -inf }
 0x396   : > { %v4993_v47 = vpop.f32.mrf.mxu0 }
 0x397   : > { %v898_v48 = vpop.f32.mrf.mxu3  ;;  %v1035_v50 = vsel %vm773_vm15, %v4993_v47, -inf }
 0x398   : > { %775 = vmax.xlane.f32.xlu0 %v774_v49  ;;  %1036 = vmax.xlane.f32.xlu1 %v1035_v50  ;;  %v907_v53 = vsel %vm773_vm15, %v898_v48, -inf }
 0x39e   : > { %v4998_v51 = vpop.f32.mrf.mxu0 }
 0x39f   : > { %v5000_v52 = vpop.f32.mrf.mxu3  ;;  %v1038_v56 = vsel %vm780_vm3, %v4998_v51, -inf }
 0x3a0   : > { %908 = vmax.xlane.f32.xlu0 %v907_v53  ;;  %778 = vmax.xlane.f32.xlu1 %v777_v55  ;;  %v910_v58 = vsel %vm780_vm3, %v5000_v52, -inf }
 0x3a1   : > { %1039 = vmax.xlane.f32.xlu2 %v1038_v56 }
 0x3a7   : > { %v5006_v57 = vpop.f32.mrf.mxu3 }
 0x3a8   : > { %911 = vmax.xlane.f32.xlu1 %v910_v58  ;;  %v1160_v3 = vsel %vm773_vm15, %v5006_v57, -inf }
 0x3a9   : > { %782 = vmax.xlane.f32.xlu2 %v781_v59 }
 0x3af   : > { %v5012_v60 = vpop.f32.mrf.mxu3 }
 0x3b0   : > { %v1163_v62 = vsel %vm773_vm15, %v5012_v60, -inf }
 0x3b1   : > { %905 = vmax.xlane.f32.xlu2 %v904_v61  ;;  %1164 = vmax.xlane.f32.xlu0 %v1163_v62 }
 0x3b7   : > { %v5018_v63 = vpop.f32.mrf.mxu3 }
 0x3b8   : > { %v1166_v2 = vsel %vm780_vm3, %v5018_v63, -inf }
 0x3b9   : > { %1167 = vmax.xlane.f32.xlu1 %v1166_v2 }
 0x3c9   : > { %1069 = vrot.lane.b32.xlu2 %v4924_v0, %s6318_s18 }
 0x3f2   : > { %1161 = vmax.xlane.f32.xlu2 %v1160_v3 }
 0x403   : > { %v1034_v4 = vpop.xlane.xlu0 %1033 }
 0x404   : > { %v1041_v5 = vsub.f32 %v1023_v43, %v1034_v4 }
 0x406   : > { %v1044_v10 = vmul.f32 1.442695, %v1041_v5 }
 0x408   : > { %4335 = vpow2.f32 %v1044_v10 }
 0x40b   : > { %v776_v11 = vpop.xlane.xlu0 %775  ;;  %v1037_v12 = vpop.xlane.xlu1 %1036 }
 0x40c   : > { %v784_v15 = vsub.f32 %v764_v39, %v776_v11 }
 0x40e   : > { %v5026_v16 = vpop.eup %4335  ;;  %v787_v17 = vmul.f32 1.442695, %v784_v15 }
 0x40f   : > { %v1050_v18 = vsel %vm773_vm15, %v5026_v16, 0.0 }
 0x410   : > { %4337 = vpow2.f32 %v787_v17  ;;  %1051 = vadd.xlane.f32.xlu1 %v1050_v18 }
 0x413   : > { %v909_v19 = vpop.xlane.xlu0 %908  ;;  %v779_v20 = vpop.xlane.xlu1 %778 }
 0x414   : > { %v914_v21 = vsub.f32 %v898_v48, %v909_v19  ;;  %v785_v22 = vsub.f32 %v767_v41, %v779_v20  ;;  %v1040_v23 = vpop.xlane.xlu2 %1039  ;;  %v1042_v41 = vsub.f32 %v4993_v47, %v1037_v12 }
 0x415   : > { %v1043_v2 = vsub.f32 %v4998_v51, %v1040_v23 }
 0x416   : > { %v5030_v24 = vpop.eup %4337  ;;  %v918_v26 = vmul.f32 1.442695, %v914_v21  ;;  %v789_v27 = vmul.f32 1.442695, %v785_v22  ;;  %v1046_v45 = vmul.f32 1.442695, %v1042_v41 }
 0x417   : > { %v793_v28 = vsel %vm773_vm15, %v5030_v24, 0.0  ;;  %v1048_v3 = vmul.f32 1.442695, %v1043_v2 }
 0x418   : > { %4339 = vpow2.f32 %v918_v26  ;;  %794 = vadd.xlane.f32.xlu0 %v793_v28 }
 0x419   : > { %4341 = vpow2.f32 %v789_v27 }
 0x41b   : > { %v912_v48 = vpop.xlane.xlu1 %911 }
 0x41c   : > { %v783_v29 = vpop.xlane.xlu2 %782 }
 0x41d   : > { %v786_v30 = vsub.f32 %v4988_v42, %v783_v29 }
 0x41e   : > { %v5035_v31 = vpop.eup %4339 }
 0x41f   : > { %v5037_v32 = vpop.eup %4341  ;;  %v791_v33 = vmul.f32 1.442695, %v786_v30  ;;  %v925_v35 = vsel %vm773_vm15, %v5035_v31, 0.0 }
 0x420   : > { %v796_v36 = vsel %vm773_vm15, %v5037_v32, 0.0  ;;  %926 = vadd.xlane.f32.xlu1 %v925_v35 }
 0x421   : > { %4343 = vpow2.f32 %v791_v33  ;;  %797 = vadd.xlane.f32.xlu0 %v796_v36 }
 0x424   : > { %v906_v37 = vpop.xlane.xlu2 %905  ;;  %v1165_v59 = vpop.xlane.xlu0 %1164 }
 0x425   : > { %v913_v38 = vsub.f32 %v4990_v44, %v906_v37  ;;  %v915_v44 = vsub.f32 %v5000_v52, %v912_v48  ;;  %v1170_v61 = vsub.f32 %v5012_v60, %v1165_v59 }
 0x427   : > { %v5044_v39 = vpop.eup %4343  ;;  %v916_v42 = vmul.f32 1.442695, %v913_v38  ;;  %v920_v47 = vmul.f32 1.442695, %v915_v44  ;;  %v1174_v62 = vmul.f32 1.442695, %v1170_v61 }
 0x428   : > { %v799_v43 = vsel %vm780_vm3, %v5044_v39, 0.0 }
 0x429   : > { %4345 = vpow2.f32 %v916_v42  ;;  %800 = vadd.xlane.f32.xlu2 %v799_v43 }
 0x42a   : > { %4347 = vpow2.f32 %v1046_v45 }
 0x42b   : > { %4349 = vpow2.f32 %v920_v47 }
 0x42c   : > { %v1070_v49 = vpop.permute.xlu2 %1069  ;;  %4351 = vpow2.f32 %v1174_v62  ;;  %v1168_v19 = vpop.xlane.xlu1 %1167 }
 0x42d   : > { %4016 = vmatpush.msk.msra.mxu2 %vm825_vm14, %v1070_v49  ;;  %4353 = vpow2.f32 %v1048_v3  ;;  %v1171_v23 = vsub.f32 %v5018_v63, %v1168_v19 }
 0x42f   : > { %v5050_v50 = vpop.eup %4345 }
 0x430   : > { %v922_v53 = vsel %vm773_vm15, %v5050_v50, 0.0  ;;  %v5055_v55 = vpop.eup %4347 }
 0x431   : > { %923 = vadd.xlane.f32.xlu0 %v922_v53  ;;  %v1053_v56 = vsel %vm773_vm15, %v5055_v55, 0.0  ;;  %v5061_v58 = vpop.eup %4349 }
 0x432   : > { %v928_v52 = vsel %vm780_vm3, %v5061_v58, 0.0  ;;  %v5069_v4 = vpop.eup %4351 }
 0x433   : > { %v1181_v5 = vsel %vm773_vm15, %v5069_v4, 0.0  ;;  %v5073_v11 = vpop.eup %4353 }
 0x434   : > { %v1056_v60 = vsel %vm780_vm3, %v5073_v11, 0.0 }
 0x439   : > { %1054 = vadd.xlane.f32.xlu0 %v1053_v56  ;;  %4257 = vrot.lane.b32.xlu1 %v4947_v1, %s6318_s18  ;;  %s6322_s18 = smov 16  }
 0x441   : > { %1197 = vrot.lane.b32.xlu2 %v4924_v0, %s6328_s30  ;;  %929 = vadd.xlane.f32.xlu0 %v928_v52 }
 0x463   : > { %1182 = vadd.xlane.f32.xlu1 %v1181_v5 }
 0x465   : > { %v1162_v10 = vpop.xlane.xlu2 %1161 }
 0x466   : > { %v1169_v0 = vsub.f32 %v5006_v57, %v1162_v10 }
 0x468   : > { %v1172_v12 = vmul.f32 1.442695, %v1169_v0 }
 0x46a   : > { %4355 = vpow2.f32 %v1172_v12  ;;  %1057 = vadd.xlane.f32.xlu2 %v1056_v60 }
 0x470   : > { %v5078_v51 = vpop.eup %4355 }
 0x471   : > { %v1178_v15 = vsel %vm773_vm15, %v5078_v51, 0.0 }
 0x472   : > { %1179 = vadd.xlane.f32.xlu0 %v1178_v15 }
 0x47c   : > { %4267 = vrot.lane.b32.xlu1 %v4266_v13, %s6316_s25 }
 0x483   : > { %v1052_v22 = vpop.xlane.xlu1 %1051 }
 0x486   : > { %4262 = vrot.lane.b32.xlu0 %v4947_v1, %s6328_s30  ;;  %v1176_v1 = vmul.f32 1.442695, %v1171_v23  ;;  %s6386_s30 = smov 112  }
 0x48b   : > { %v795_v17 = vpop.xlane.xlu0 %794 }
 0x48c   : > { %4357 = vrcp.f32 %v795_v17 }
 0x492   : > { %v4358_v18 = vpop.eup %4357 }
 0x493   : > { %v805_v57 = vmul.f32 %v4358_v18, %v5030_v24  ;;  %v927_v29 = vpop.xlane.xlu1 %926 }
 0x494   : > { %v798_v20 = vpop.xlane.xlu0 %797 }
 0x495   : > { %4359 = vrcp.f32 %v798_v20  ;;  %3997 = vmatmul.msk.f32.vlgmr.msrb.gmra.mxu2 %vm773_vm15, %v805_v57 }
 0x49b   : > { %v4360_v21 = vpop.eup %4359 }
 0x49c   : > { %v801_v26 = vpop.xlane.xlu2 %800  ;;  %v806_v27 = vmul.f32 %v4360_v21, %v5037_v32 }
 0x49d   : > { %4361 = vrcp.f32 %v801_v26 }
 0x49e   : > { %3998 = vmatmul.msk.f32.gmra.mxu2 %vm773_vm15, %v806_v27  ;;  %4363 = vpow2.f32 %v1176_v1 }
 0x4a3   : > { %v4362_v28 = vpop.eup %4361 }
 0x4a4   : > { %v924_v30 = vpop.xlane.xlu0 %923  ;;  %v1198_v24 = vpop.permute.xlu2 %1197  ;;  %v807_v33 = vmul.f32 %v4362_v28, %v5044_v39 }
 0x4a5   : > { %4365 = vrcp.f32 %v924_v30  ;;  %4026 = vmatpush.msk.msra.mxu1 %vm825_vm14, %v1198_v24  ;;  %v4364_v63 = vpop.eup %4363 }
 0x4a6   : > { %4367 = vrcp.f32 %v1052_v22  ;;  %3999 = vmatmul.msk.f32.gmra.mxu2 %vm773_vm15, %v807_v33  ;;  %v1184_v43 = vsel %vm780_vm3, %v4364_v63, 0.0 }
 0x4a7   : > { %4369 = vrcp.f32 %v927_v29 }
 0x4ab   : > { %v4366_v35 = vpop.eup %4365  ;;  %v4258_v32 = vpop.permute.xlu1 %4257 }
 0x4ac   : > { %v4368_v36 = vpop.eup %4367  ;;  %v4259_v37 = vunpack.i.l.bf16 %v4258_v32  ;;  %v1055_v38 = vpop.xlane.xlu0 %1054  ;;  %v934_v41 = vmul.f32 %v4366_v35, %v5050_v50  ;;  %v4260_v42 = vunpack.i.h.bf16 %v4258_v32 }
 0x4ad   : > { %4371 = vrcp.f32 %v1055_v38  ;;  %v1062_v39 = vmul.f32 %v4368_v36, %v5026_v16  ;;  %v4370_v45 = vpop.eup %4369 }
 0x4ae   : > { %4007 = vmatmul.msk.f32.vlgmr.msrb.gmra.mxu1 %vm773_vm15, %v934_v41  ;;  %1098 = vmatpush.msra.mxu2 %v4259_v37  ;;  %v935_v50 = vmul.f32 %v4370_v45, %v5035_v31 }
 0x4b0   : > { %1185 = vadd.xlane.f32.xlu0 %v1184_v43  ;;  %1099 = vmatpush.msra.mxu2 %v4260_v42  ;;  %v1285_v43 = vperm.slane %v4911_v25, 3 }
 0x4b1   : > { %4017 = vmatmul.msk.f32.vlgmr.msra.gmra.mxu2 %vm773_vm15, %v1062_v39 }
 0x4b3   : > { %v4372_v48 = vpop.eup %4371 }
 0x4b4   : > { %v930_v49 = vpop.xlane.xlu0 %929  ;;  %v1063_v16 = vmul.f32 %v4372_v48, %v5055_v55 }
 0x4b5   : > { %4373 = vrcp.f32 %v930_v49 }
 0x4b6   : > { %4008 = vmatmul.msk.f32.gmra.mxu1 %vm773_vm15, %v935_v50 }
 0x4b9   : > { %4018 = vmatmul.msk.f32.gmra.mxu2 %vm773_vm15, %v1063_v16 }
 0x4bb   : > { %v4374_v44 = vpop.eup %4373 }
 0x4bc   : > { %v936_v6 = vmul.f32 %v4374_v44, %v5061_v58 }
 0x4be   : > { %4009 = vmatmul.msk.f32.gmra.mxu1 %vm773_vm15, %v936_v6 }
 0x4c4   : > { %4272 = vrot.lane.b32.xlu0 %v4271_v14, %s6316_s25  ;;  %s6326_s25 = smov 8  }
 0x4d6   : > { %v1183_v47 = vpop.xlane.xlu1 %1182 }
 0x4dd   : > { %v1058_v7 = vpop.xlane.xlu2 %1057 }
 0x4de   : > { %4375 = vrcp.f32 %v1058_v7 }
 0x4e4   : > { %v4376_v13 = vpop.eup %4375 }
 0x4e5   : > { %v1064_v31 = vmul.f32 %v4376_v13, %v5073_v11  ;;  %v1180_v53 = vpop.xlane.xlu0 %1179 }
 0x4e6   : > { %4377 = vrcp.f32 %v1180_v53 }
 0x4e7   : > { %4019 = vmatmul.msk.f32.gmra.mxu2 %vm773_vm15, %v1064_v31  ;;  %4379 = vrcp.f32 %v1183_v47 }
 0x4ec   : > { %v4378_v56 = vpop.eup %4377 }
 0x4ed   : > { %v1190_v59 = vmul.f32 %v4378_v56, %v5078_v51  ;;  %v4380_v8 = vpop.eup %4379 }
 0x4ee   : > { %v1191_v9 = vmul.f32 %v4380_v8, %v5069_v4  ;;  %v4268_v12 = vpop.permute.xlu1 %4267 }
 0x4ef   : > { %v4270_v60 = vunpack.i.h.bf16 %v4268_v12  ;;  %v4269_v51 = vunpack.i.l.bf16 %v4268_v12 }
 0x4f1   : > { %1323 = vmatpush.msra.mxu0 %v4269_v51 }
 0x4f3   : > { %1324 = vmatpush.msra.mxu0 %v4270_v60 }
 0x4f8   : > { %v4263_v55 = vpop.permute.xlu0 %4262 }
 0x4f9   : > { %v4264_v58 = vunpack.i.l.bf16 %v4263_v55  ;;  %v4265_v52 = vunpack.i.h.bf16 %v4263_v55 }
 0x4fb   : > { %1226 = vmatpush.msra.mxu1 %v4264_v58 }
 0x4fd   : > { %1227 = vmatpush.msra.mxu1 %v4265_v52 }
 0x4fe   : > { %4027 = vmatmul.msk.f32.vlgmr.msra.gmra.mxu1 %vm773_vm15, %v1190_v59 }
 0x506   : > { %4028 = vmatmul.msk.f32.gmra.mxu1 %vm773_vm15, %v1191_v9 }
 0x518   : > { %v845_v14 = vpop.f32.mrf.mxu2 }
 0x521   : > { %v848_v61 = vpop.f32.mrf.mxu2 }
 0x523   : > { %v1186_v62 = vpop.xlane.xlu0 %1185 }
 0x524   : > { %4381 = vrcp.f32 %v1186_v62 }
 0x529   : > { %v851_v10 = vpop.f32.mrf.mxu2 }
 0x52a   : > { %v4382_v2 = vpop.eup %4381 }
 0x52b   : > { %v973_v3 = vpop.f32.mrf.mxu1  ;;  %v1192_v5 = vmul.f32 %v4382_v2, %v4364_v63 }
 0x52c   : > { %1241 = vrot.lane.b32.xlu2 %v973_v3, %s6326_s25 }
 0x52d   : > { %4029 = vmatmul.msk.f32.gmra.mxu1 %vm773_vm15, %v1192_v5  ;;  %v603_v5 = vld [vmem:[%s6382_s4 + $0x30] sm:$0xff] }
 0x52e   : > { %1436 = vmatpush.msrb.mxu2 %v603_v5  ;;  %v1577_v5 = vld [vmem:[%s6383_s5 + $0x38] sm:$0xff] }
 0x533   : > { %v976_v4 = vpop.f32.mrf.mxu1 }
 0x534   : > { %v1101_v11 = vpop.f32.mrf.mxu2 }
 0x535   : > { %1253 = vrot.lane.b32.xlu1 %v1101_v11, %s6322_s18  ;;  %v599_v11 = vld [vmem:[%s6382_s4 + $0x10] sm:$0xff] }
 0x536   : > { %v4273_v57 = vpop.permute.xlu0 %4272 }
 0x537   : > { %v4275_v20 = vunpack.i.h.bf16 %v4273_v57  ;;  %v4274_v21 = vunpack.i.l.bf16 %v4273_v57 }
 0x539   : > { %1325 = vmatpush.msra.mxu0 %v4274_v21 }
 0x53b   : > { %v979_v0 = vpop.f32.mrf.mxu1  ;;  %1326 = vmatpush.msra.mxu0 %v4275_v20  ;;  %v1406_v20 = vperm.slane %v4911_v25, 4 }
 0x53c   : > { %v1104_v17 = vpop.f32.mrf.mxu2 }
 0x53d   : > { %1243 = vrot.lane.b32.xlu1 %v976_v4, %s6326_s25  ;;  %v597_v4 = vld [vmem:[%s6382_s4] sm:$0xff] }
 0x545   : > { %1245 = vrot.lane.b32.xlu1 %v979_v0, %s6326_s25  ;;  %s6387_s25 = smov 56  }
 0x56a   : > { %v1107_v19 = vpop.f32.mrf.mxu2 }
 0x57b   : > { %v1229_v15 = vpop.f32.mrf.mxu1 }
 0x57c   : > { %1265 = vrot.lane.b32.xlu2 %v1229_v15, %s6324_s22 }
 0x583   : > { %v1232_v18 = vpop.f32.mrf.mxu1 }
 0x584   : > { %1255 = vrot.lane.b32.xlu2 %v1104_v17, %s6322_s18  ;;  %1267 = vrot.lane.b32.xlu0 %v1232_v18, %s6324_s22 }
 0x586   : > { %v1242_v23 = vpop.permute.xlu2 %1241 }
 0x587   : > { %v1274_v27 = vsel %vm734_vm13, %v845_v14, %v1242_v23  ;;  %v1410_v23 = vperm.slane %v4911_v25, 5 }
 0x58c   : > { %1257 = vrot.lane.b32.xlu2 %v1107_v19, %s6322_s18  ;;  %s6385_s18 = smov 80  }
 0x5a7   : > { %v1254_v26 = vpop.permute.xlu1 %1253 }
 0x5a8   : > { %v1278_v1 = vsel %vm1277_vm4, %v1274_v27, %v1254_v26 }
 0x5aa   : > { %v1235_v22 = vpop.f32.mrf.mxu1 }
 0x5ab   : > { %1269 = vrot.lane.b32.xlu0 %v1235_v22, %s6324_s22  ;;  %s6384_s22 = smov 96  }
 0x5af   : > { %v1244_v30 = vpop.permute.xlu1 %1243 }
 0x5b0   : > { %v1275_v33 = vsel %vm734_vm13, %v848_v61, %v1244_v30 }
 0x5b7   : > { %v1246_v36 = vpop.permute.xlu1 %1245 }
 0x5b8   : > { %v1276_v38 = vsel %vm734_vm13, %v851_v10, %v1246_v36  ;;  %v601_v10 = vld [vmem:[%s6382_s4 + $0x20] sm:$0xff] }
 0x5b9   : > { %1437 = vmatpush.msrb.mxu2 %v601_v10  ;;  %v1576_v10 = vld [vmem:[%s6383_s5 + $0x30] sm:$0xff] }
 0x5bb   : > { %1438 = vmatpush.msrb.mxu2 %v599_v11  ;;  %v1575_v11 = vld [vmem:[%s6383_s5 + $0x28] sm:$0xff] }
 0x5bd   : > { %1439 = vmatpush.msrb.mxu2 %v597_v4  ;;  %v1574_v4 = vld [vmem:[%s6383_s5 + $0x20] sm:$0xff] }
 0x5d6   : > { %v1266_v28 = vpop.permute.xlu2 %1265 }
 0x5d7   : > { %v1282_v29 = vsel %vm1281_vm5, %v1278_v1, %v1266_v28 }
 0x5d8   : > { %4030 = vmatmul.msk.f32.vlgmr.msra.gmra.mxu0 %vm606_vm1, %v1282_v29 }
 0x5de   : > { %v1256_v24 = vpop.permute.xlu2 %1255 }
 0x5df   : > { %v1279_v63 = vsel %vm1277_vm4, %v1275_v33, %v1256_v24 }
 0x5e6   : > { %v1258_v37 = vpop.permute.xlu2 %1257 }
 0x5e7   : > { %v1280_v41 = vsel %vm1277_vm4, %v1276_v38, %v1258_v37 }
 0x5f6   : > { %v1268_v35 = vpop.permute.xlu0 %1267 }
 0x5f7   : > { %v1283_v32 = vsel %vm1281_vm5, %v1279_v63, %v1268_v35 }
 0x5f8   : > { %4031 = vmatmul.msk.f32.gmra.mxu0 %vm606_vm1, %v1283_v32 }
 0x61d   : > { %v1270_v42 = vpop.permute.xlu0 %1269 }
 0x61e   : > { %v1284_v39 = vsel %vm1281_vm5, %v1280_v41, %v1270_v42 }
 0x61f   : > { %4032 = vmatmul.msk.f32.gmra.mxu0 %vm606_vm1, %v1284_v39 }
 0x655   : > { %v1328_v45 = vpop.f32.mrf.mxu0 }
 0x656   : > { %v1329_v48 = vadd.f32 %v1328_v45, %v1285_v43 }
 0x658   : > { %v5141_v49 = vadd.f32 %v1329_v48, %v4840_v34 }
 0x65a   : > { %v1340_v50 = vsel %vm606_vm1, %v5141_v49, 0.0 }
 0x65b   : > { %1341 = vadd.xlane.f32.xlu1 %v1340_v50 }
 0x675   : > { %v1331_v16 = vpop.f32.mrf.mxu0 }
 0x676   : > { %v1332_v44 = vadd.f32 %v1331_v16, %v1285_v43 }
 0x678   : > { %v5146_v6 = vadd.f32 %v1332_v44, %v4847_v40 }
 0x67a   : > { %v1343_v7 = vsel %vm606_vm1, %v5146_v6, 0.0 }
 0x67b   : > { %1344 = vadd.xlane.f32.xlu2 %v1343_v7 }
 0x69c   : > { %v1334_v13 = vpop.f32.mrf.mxu0 }
 0x69d   : > { %v1335_v31 = vadd.f32 %v1334_v13, %v1285_v43 }
 0x69f   : > { %v5151_v53 = vadd.f32 %v1335_v31, %v4854_v46 }
 0x6a1   : > { %v1346_v34 = vsel %vm613_vm2, %v5151_v53, 0.0 }
 0x6a2   : > { %1347 = vadd.xlane.f32.xlu0 %v1346_v34 }
 0x6ce   : > { %v1342_v47 = vpop.xlane.xlu1 %1341 }
 0x6cf   : > { %v1349_v55 = vmul.f32 %v1342_v47, %v4858_v54 }
 0x6d1   : > { %v1352_v56 = vsub.f32 %v5141_v49, %v1349_v55  ;;  %v1585_v55 = vld [vmem:[%s6383_s5 + $0x78] sm:$0xff] }
 0x6d2   : > { %1586 = vmatpush.msrb.mxu3 %v1585_v55 }
 0x6d3   : > { %v1355_v40 = vmul.f32 %v1352_v56, %v1352_v56 }
 0x6d5   : > { %v1358_v58 = vsel %vm606_vm1, %v1355_v40, 0.0  ;;  %v5196_v40 = vperm.slane %v4911_v25, 6  ;;  %v1581_v25 = vld [vmem:[%s6383_s5 + $0x58] sm:$0xff] }
 0x6d6   : > { %1359 = vadd.xlane.f32.xlu1 %v1358_v58  ;;  %v1583_v58 = vld [vmem:[%s6383_s5 + $0x68] sm:$0xff] }
 0x6ee   : > { %v1345_v52 = vpop.xlane.xlu2 %1344 }
 0x6ef   : > { %v1350_v59 = vmul.f32 %v1345_v52, %v4858_v54 }
 0x6f1   : > { %v1353_v8 = vsub.f32 %v5146_v6, %v1350_v59  ;;  %v1582_v59 = vld [vmem:[%s6383_s5 + $0x60] sm:$0xff] }
 0x6f3   : > { %v1356_v46 = vmul.f32 %v1353_v8, %v1353_v8 }
 0x6f5   : > { %v1361_v9 = vsel %vm606_vm1, %v1356_v46, 0.0 }
 0x6f6   : > { %1362 = vadd.xlane.f32.xlu2 %v1361_v9  ;;  %v1580_v9 = vld [vmem:[%s6383_s5 + $0x50] sm:$0xff] }
 0x715   : > { %v1348_v14 = vpop.xlane.xlu0 %1347 }
 0x716   : > { %v1351_v61 = vmul.f32 %v1348_v14, %v4858_v54 }
 0x718   : > { %v5163_v62 = vsub.f32 %v5151_v53, %v1351_v61  ;;  %v1579_v61 = vld [vmem:[%s6383_s5 + $0x48] sm:$0xff] }
 0x71a   : > { %v1357_v2 = vmul.f32 %v5163_v62, %v5163_v62 }
 0x71c   : > { %v1364_v3 = vsel %vm613_vm2, %v1357_v2, 0.0  ;;  %v1578_v2 = vld [vmem:[%s6383_s5 + $0x40] sm:$0xff] }
 0x71d   : > { %1365 = vadd.xlane.f32.xlu0 %v1364_v3 }
 0x749   : > { %v1360_v0 = vpop.xlane.xlu1 %1359 }
 0x74a   : > { %v1367_v12 = vmul.f32 %v1360_v0, %v4858_v54 }
 0x74c   : > { %v1370_v60 = vadd.f32 1e-05, %v1367_v12 }
 0x74e   : > { %4383 = vrsqrt.f32 %v1370_v60  ;;  %vm1379_vm7 = vweird.f32 %v1370_v60 }
 0x754   : > { %v4384_v51 = vpop.eup %4383 }
 0x755   : > { %v1374_v15 = vmul.f32 %v4384_v51, %v1370_v60  ;;  %vm1380_vm6 = vweird.f32 %v4384_v51  ;;  %v1573_v60 = vld [vmem:[%s6383_s5 + $0x18] sm:$0xff] }
 0x756   : > { %vm1381_vm8 = vmor %vm1379_vm7, %vm1380_vm6 }
 0x757   : > { %v1375_v17 = vmul.f32 %v4384_v51, %v1374_v15  ;;  %v1572_v15 = vld [vmem:[%s6383_s5 + $0x10] sm:$0xff] }
 0x759   : > { %v1376_v18 = vmul.f32 0.5, %v1375_v17 }
 0x75b   : > { %v1377_v19 = vsub.f32 1.5, %v1376_v18 }
 0x75d   : > { %v1378_v57 = vmul.f32 %v4384_v51, %v1377_v19 }
 0x75f   : > { %v1382_v21 = vsel %vm1381_vm8, %v4384_v51, %v1378_v57  ;;  %v1571_v57 = vld [vmem:[%s6383_s5 + $0x8] sm:$0xff] }
 0x760   : > { %v1403_v22 = vmul.f32 %v1382_v21, %v1352_v56  ;;  %v1584_v56 = vld [vmem:[%s6383_s5 + $0x70] sm:$0xff] }
 0x761   : > { %1587 = vmatpush.msrb.mxu3 %v1584_v56 }
 0x762   : > { %v1407_v26 = vmul.f32 %v1406_v20, %v1403_v22 }
 0x763   : > { %1588 = vmatpush.msrb.mxu3 %v1583_v58 }
 0x764   : > { %v1411_v27 = vadd.f32 %v1410_v23, %v1407_v26 }
 0x765   : > { %1589 = vmatpush.msrb.mxu3 %v1582_v59 }
 0x766   : > { %4033 = vmatmul.msk.f32.vlgmr.msrb.gmra.mxu2 %vm606_vm1, %v1411_v27 }
 0x767   : > { %1590 = vmatpush.msrb.mxu3 %v1581_v25 }
 0x769   : > { %v1363_v1 = vpop.xlane.xlu2 %1362  ;;  %1591 = vmatpush.msrb.mxu3 %v1580_v9 }
 0x76a   : > { %v1368_v28 = vmul.f32 %v1363_v1, %v4858_v54 }
 0x76b   : > { %1592 = vmatpush.msrb.mxu3 %v1579_v61 }
 0x76c   : > { %v1371_v29 = vadd.f32 1e-05, %v1368_v28 }
 0x76d   : > { %1593 = vmatpush.msrb.mxu3 %v1578_v2 }
 0x76e   : > { %4385 = vrsqrt.f32 %v1371_v29  ;;  %vm1389_vm10 = vweird.f32 %v1371_v29 }
 0x76f   : > { %1594 = vmatpush.msrb.mxu3 %v1577_v5 }
 0x771   : > { %1595 = vmatpush.msrb.mxu3 %v1576_v10 }
 0x773   : > { %1596 = vmatpush.msrb.mxu3 %v1575_v11 }
 0x774   : > { %v4386_v30 = vpop.eup %4385 }
 0x775   : > { %v1384_v24 = vmul.f32 %v4386_v30, %v1371_v29  ;;  %vm1390_vm9 = vweird.f32 %v4386_v30  ;;  %1597 = vmatpush.msrb.mxu3 %v1574_v4 }
 0x776   : > { %vm1391_vm11 = vmor %vm1389_vm10, %vm1390_vm9 }
 0x777   : > { %v1385_v33 = vmul.f32 %v4386_v30, %v1384_v24  ;;  %1598 = vmatpush.msrb.mxu3 %v1573_v60 }
 0x779   : > { %v1386_v63 = vmul.f32 0.5, %v1385_v33  ;;  %1599 = vmatpush.msrb.mxu3 %v1572_v15 }
 0x77b   : > { %v1387_v35 = vsub.f32 1.5, %v1386_v63  ;;  %1600 = vmatpush.msrb.mxu3 %v1571_v57 }
 0x77d   : > { %v1388_v32 = vmul.f32 %v4386_v30, %v1387_v35 }
 0x77f   : > { %v1392_v36 = vsel %vm1391_vm11, %v4386_v30, %v1388_v32 }
 0x780   : > { %v1404_v37 = vmul.f32 %v1392_v36, %v1353_v8 }
 0x782   : > { %v1408_v38 = vmul.f32 %v1406_v20, %v1404_v37 }
 0x784   : > { %v1412_v41 = vadd.f32 %v1410_v23, %v1408_v38 }
 0x786   : > { %4034 = vmatmul.msk.f32.gmra.mxu2 %vm606_vm1, %v1412_v41 }
 0x790   : > { %v1366_v42 = vpop.xlane.xlu0 %1365 }
 0x791   : > { %v1369_v39 = vmul.f32 %v1366_v42, %v4858_v54 }
 0x793   : > { %v1372_v43 = vadd.f32 1e-05, %v1369_v39 }
 0x795   : > { %4387 = vrsqrt.f32 %v1372_v43  ;;  %vm1399_vm6 = vweird.f32 %v1372_v43 }
 0x79b   : > { %v4388_v45 = vpop.eup %4387 }
 0x79c   : > { %v1394_v48 = vmul.f32 %v4388_v45, %v1372_v43  ;;  %vm1400_vm12 = vweird.f32 %v4388_v45 }
 0x79d   : > { %vm1401_vm7 = vmor %vm1399_vm6, %vm1400_vm12 }
 0x79e   : > { %v1395_v50 = vmul.f32 %v4388_v45, %v1394_v48 }
 0x7a0   : > { %v1396_v16 = vmul.f32 0.5, %v1395_v50 }
 0x7a2   : > { %v1397_v44 = vsub.f32 1.5, %v1396_v16 }
 0x7a4   : > { %v1398_v7 = vmul.f32 %v4388_v45, %v1397_v44 }
 0x7a6   : > { %v1402_v13 = vsel %vm1401_vm7, %v4388_v45, %v1398_v7 }
 0x7a7   : > { %v1405_v31 = vmul.f32 %v1402_v13, %v5163_v62 }
 0x7a9   : > { %v1409_v34 = vmul.f32 %v1406_v20, %v1405_v31  ;;  %v1570_v20 = vld [vmem:[%s6383_s5] sm:$0xff] }
 0x7aa   : > { %1601 = vmatpush.msrb.mxu3 %v1570_v20 }
 0x7ab   : > { %v1413_v47 = vadd.f32 %v1410_v23, %v1409_v34 }
 0x7ad   : > { %4035 = vmatmul.msk.f32.gmra.mxu2 %vm606_vm1, %v1413_v47 }
 0x7e9   : > { %v1441_v52 = vpop.f32.mrf.mxu2 }
 0x7ea   : > { %v5205_v8 = vadd.f32 %v1441_v52, %v5196_v40 }
 0x7ec   : > { %v5211_v46 = vmul.f32 0.70710677, %v5205_v8  ;;  %v1450_v47 = vmul.f32 0.5, %v5205_v8 }
 0x7ee   : > { %v1456_v14 = vand.u32 2147483647, %v5211_v46  ;;  %v1537_v27 = vmul.f32 %v5211_v46, %v5211_v46  ;;  %vm1555_vm12 = vcmp.ge.f32.partialorder %v5211_v46, 0.0 }
 0x7f0   : > { %v1459_v62 = vmul.f32 0.3275911, %v1456_v14  ;;  %v1540_v29 = vsub.f32 0.0, %v1537_v27 }
 0x7f2   : > { %v1462_v3 = vadd.f32 1.0, %v1459_v62  ;;  %v1543_v35 = vmul.f32 1.442695, %v1540_v29 }
 0x7f4   : > { %4389 = vrcp.f32 %v1462_v3  ;;  %v1476_v17 = vand.u32 2147483648, %v1462_v3  ;;  %v1474_v19 = vand.u32 2147483647, %v1462_v3  ;;  %vm1470_vm9 = vweird.f32 %v1462_v3 }
 0x7f5   : > { %4391 = vpow2.f32 %v1543_v35 }
 0x7f6   : > { %v1477_v22 = vor.u32 1.1754944e-38, %v1476_v17  ;;  %vm1475_vm11 = vcmp.eq.f32.partialorder %v1474_v19, 8.507059e+37 }
 0x7fa   : > { %v4390_v0 = vpop.eup %4389 }
 0x7fb   : > { %v1466_v12 = vmul.f32 %v4390_v0, %v1462_v3  ;;  %vm1471_vm8 = vweird.f32 %v4390_v0  ;;  %v4392_v48 = vpop.eup %4391 }
 0x7fc   : > { %vm1472_vm10 = vmor %vm1470_vm9, %vm1471_vm8 }
 0x7fd   : > { %v1467_v51 = vsub.f32 1.0, %v1466_v12 }
 0x7ff   : > { %v1468_v18 = vmul.f32 %v4390_v0, %v1467_v51 }
 0x801   : > { %v1469_v21 = vadd.f32 %v4390_v0, %v1468_v18 }
 0x803   : > { %v1473_v23 = vsel %vm1472_vm10, %v4390_v0, %v1469_v21 }
 0x804   : > { %v1478_v26 = vsel %vm1475_vm11, %v1477_v22, %v1473_v23 }
 0x805   : > { %v1510_v1 = vmul.f32 1.0614054, %v1478_v26 }
 0x807   : > { %v1513_v28 = vadd.f32 -1.4531521, %v1510_v1 }
 0x809   : > { %v1516_v30 = vmul.f32 %v1513_v28, %v1478_v26  ;;  %v1444_v24 = vpop.f32.mrf.mxu2 }
 0x80a   : > { %v5250_v33 = vadd.f32 %v1444_v24, %v5196_v40 }
 0x80b   : > { %v1519_v63 = vadd.f32 1.4214138, %v1516_v30 }
 0x80c   : > { %v1454_v32 = vmul.f32 0.70710677, %v5250_v33  ;;  %v1451_v27 = vmul.f32 0.5, %v5250_v33 }
 0x80d   : > { %v1522_v36 = vmul.f32 %v1519_v63, %v1478_v26 }
 0x80e   : > { %v1457_v37 = vand.u32 2147483647, %v1454_v32  ;;  %v1538_v61 = vmul.f32 %v1454_v32, %v1454_v32  ;;  %vm1556_vm10 = vcmp.ge.f32.partialorder %v1454_v32, 0.0 }
 0x80f   : > { %v1525_v38 = vadd.f32 -0.28449672, %v1522_v36 }
 0x810   : > { %v1460_v41 = vmul.f32 0.3275911, %v1457_v37  ;;  %v1541_v3 = vsub.f32 0.0, %v1538_v61 }
 0x811   : > { %v1528_v42 = vmul.f32 %v1525_v38, %v1478_v26 }
 0x812   : > { %v1463_v39 = vadd.f32 1.0, %v1460_v41  ;;  %v1545_v10 = vmul.f32 1.442695, %v1541_v3 }
 0x813   : > { %v1531_v43 = vadd.f32 0.2548296, %v1528_v42 }
 0x814   : > { %4393 = vrcp.f32 %v1463_v39  ;;  %v1491_v56 = vand.u32 2147483648, %v1463_v39  ;;  %v1489_v52 = vand.u32 2147483647, %v1463_v39  ;;  %vm1485_vm7 = vweird.f32 %v1463_v39 }
 0x815   : > { %v1534_v45 = vmul.f32 %v1531_v43, %v1478_v26  ;;  %4395 = vpow2.f32 %v1545_v10 }
 0x816   : > { %v1492_v9 = vor.u32 1.1754944e-38, %v1491_v56  ;;  %vm1490_vm9 = vcmp.eq.f32.partialorder %v1489_v52, 8.507059e+37 }
 0x817   : > { %v1549_v50 = vmul.f32 %v4392_v48, %v1534_v45 }
 0x819   : > { %v1552_v16 = vsub.f32 1.0, %v1549_v50 }
 0x81a   : > { %v4394_v44 = vpop.eup %4393 }
 0x81b   : > { %v1558_v7 = vsub.f32 0.0, %v1552_v16  ;;  %v1481_v13 = vmul.f32 %v4394_v44, %v1463_v39  ;;  %vm1486_vm6 = vweird.f32 %v4394_v44  ;;  %v4396_v19 = vpop.eup %4395 }
 0x81c   : > { %vm1487_vm8 = vmor %vm1485_vm7, %vm1486_vm6 }
 0x81d   : > { %v1561_v31 = vsel %vm1555_vm12, %v1552_v16, %v1558_v7  ;;  %v1482_v34 = vsub.f32 1.0, %v1481_v13 }
 0x81e   : > { %v1564_v55 = vadd.f32 1.0, %v1561_v31 }
 0x81f   : > { %v1483_v58 = vmul.f32 %v4394_v44, %v1482_v34 }
 0x820   : > { %v1567_v59 = vmul.f32 %v1564_v55, %v1450_v47 }
 0x821   : > { %v1484_v25 = vadd.f32 %v4394_v44, %v1483_v58 }
 0x822   : > { %1602 = vmatmul.f32.vlgmr.msrb.gmra.mxu3 %v1567_v59 }
 0x823   : > { %v1488_v14 = vsel %vm1487_vm8, %v4394_v44, %v1484_v25  ;;  %v4521_v25 = vld [vmem:[%s6300_s6] sm:$0xff] }
 0x824   : > { %v1493_v62 = vsel %vm1490_vm9, %v1492_v9, %v1488_v14  ;;  %v1615_v9 = vperm.slane %v4521_v25, 7 }
 0x825   : > { %v1511_v46 = vmul.f32 1.0614054, %v1493_v62 }
 0x827   : > { %v1514_v2 = vadd.f32 -1.4531521, %v1511_v46 }
 0x829   : > { %v1517_v5 = vmul.f32 %v1514_v2, %v1493_v62 }
 0x82b   : > { %v1520_v8 = vadd.f32 1.4214138, %v1517_v5 }
 0x82d   : > { %v1523_v11 = vmul.f32 %v1520_v8, %v1493_v62 }
 0x82f   : > { %v1526_v4 = vadd.f32 -0.28449672, %v1523_v11 }
 0x830   : > { %v1447_v0 = vpop.f32.mrf.mxu2 }
 0x831   : > { %v1448_v12 = vadd.f32 %v1447_v0, %v5196_v40  ;;  %v1529_v60 = vmul.f32 %v1526_v4, %v1493_v62 }
 0x833   : > { %v1455_v51 = vmul.f32 0.70710677, %v1448_v12  ;;  %v1532_v15 = vadd.f32 0.2548296, %v1529_v60  ;;  %v1452_v58 = vmul.f32 0.5, %v1448_v12 }
 0x835   : > { %v1458_v17 = vand.u32 2147483647, %v1455_v51  ;;  %v1535_v18 = vmul.f32 %v1532_v15, %v1493_v62  ;;  %v1539_v32 = vmul.f32 %v1455_v51, %v1455_v51  ;;  %vm1557_vm8 = vcmp.ge.f32.partialorder %v1455_v51, 0.0 }
 0x837   : > { %v1461_v57 = vmul.f32 0.3275911, %v1458_v17  ;;  %v1550_v20 = vmul.f32 %v4396_v19, %v1535_v18  ;;  %v1542_v39 = vsub.f32 0.0, %v1539_v32  ;;  %v4044_v32 = vld [vmem:[%s6300_s6 + $0x8] sm:$0xff] }
 0x839   : > { %v1464_v21 = vadd.f32 1.0, %v1461_v57  ;;  %v1553_v22 = vsub.f32 1.0, %v1550_v20  ;;  %v1547_v48 = vmul.f32 1.442695, %v1542_v39 }
 0x83b   : > { %4397 = vrcp.f32 %v1464_v21  ;;  %v1559_v23 = vsub.f32 0.0, %v1553_v22  ;;  %v1506_v24 = vand.u32 2147483648, %v1464_v21  ;;  %v1504_v35 = vand.u32 2147483647, %v1464_v21 }
 0x83c   : > { %vm1500_vm12 = vweird.f32 %v1464_v21  ;;  %4399 = vpow2.f32 %v1547_v48 }
 0x83d   : > { %v1562_v26 = vsel %vm1556_vm10, %v1553_v22, %v1559_v23  ;;  %v1507_v37 = vor.u32 1.1754944e-38, %v1506_v24  ;;  %vm1505_vm7 = vcmp.eq.f32.partialorder %v1504_v35, 8.507059e+37 }
 0x83e   : > { %v1565_v1 = vadd.f32 1.0, %v1562_v26  ;;  %v5291_v26 = vld [vmem:[%s6382_s4 + $0x78] sm:$0xff] }
 0x83f   : > { %1726 = vmatpush.msrb.mxu1 %v5291_v26 }
 0x840   : > { %v1568_v28 = vmul.f32 %v1565_v1, %v1451_v27  ;;  %v5297_v27 = vld [vmem:[%s6382_s4 + $0x68] sm:$0xff] }
 0x841   : > { %v4398_v29 = vpop.eup %4397  ;;  %v4296_v1 = vpack.i.bf16 %v5297_v27, %v5291_v26  ;;  %1727 = vmatpush.msrb.mxu1 %v5297_v27 }
 0x842   : > { %v1496_v40 = vmul.f32 %v4398_v29, %v1464_v21  ;;  %1605 = vmatmul.f32.gmra.mxu3 %v1568_v28  ;;  %vm1501_vm11 = vweird.f32 %v4398_v29  ;;  %v4400_v31 = vpop.eup %4399  ;;  %v5305_v28 = vld [vmem:[%s6382_s4 + $0x58] sm:$0xff] }
 0x843   : > { %vm1502_vm6 = vmor %vm1500_vm12, %vm1501_vm11  ;;  %1728 = vmatpush.msrb.mxu1 %v5305_v28 }
 0x844   : > { %v1497_v30 = vsub.f32 1.0, %v1496_v40 }
 0x846   : > { %v1498_v63 = vmul.f32 %v4398_v29, %v1497_v30 }
 0x848   : > { %v1499_v36 = vadd.f32 %v4398_v29, %v1498_v63 }
 0x84a   : > { %v1503_v38 = vsel %vm1502_vm6, %v4398_v29, %v1499_v36  ;;  %v5310_v29 = vld [vmem:[%s6382_s4 + $0x48] sm:$0xff] }
 0x84b   : > { %v1508_v41 = vsel %vm1505_vm7, %v1507_v37, %v1503_v38  ;;  %v4301_v40 = vpack.i.bf16 %v5310_v29, %v5305_v28  ;;  %1729 = vmatpush.msrb.mxu1 %v5310_v29 }
 0x84c   : > { %v1512_v42 = vmul.f32 1.0614054, %v1508_v41 }
 0x84e   : > { %v1515_v33 = vadd.f32 -1.4531521, %v1512_v42 }
 0x850   : > { %v1518_v43 = vmul.f32 %v1515_v33, %v1508_v41  ;;  %v1696_v33 = vperm.slane %v4044_v32, 0 }
 0x852   : > { %v1521_v45 = vadd.f32 1.4214138, %v1518_v43 }
 0x854   : > { %v1524_v50 = vmul.f32 %v1521_v45, %v1508_v41  ;;  %v1700_v45 = vperm.slane %v4044_v32, 1 }
 0x856   : > { %v1527_v16 = vadd.f32 -0.28449672, %v1524_v50 }
 0x858   : > { %v1530_v44 = vmul.f32 %v1527_v16, %v1508_v41 }
 0x85a   : > { %v1533_v7 = vadd.f32 0.2548296, %v1530_v44 }
 0x85c   : > { %v1536_v13 = vmul.f32 %v1533_v7, %v1508_v41 }
 0x85e   : > { %v1551_v34 = vmul.f32 %v4400_v31, %v1536_v13 }
 0x860   : > { %v1554_v47 = vsub.f32 1.0, %v1551_v34 }
 0x862   : > { %v1560_v55 = vsub.f32 0.0, %v1554_v47 }
 0x864   : > { %v1563_v56 = vsel %vm1557_vm8, %v1554_v47, %v1560_v55 }
 0x865   : > { %v1566_v52 = vadd.f32 1.0, %v1563_v56 }
 0x867   : > { %v1569_v59 = vmul.f32 %v1566_v52, %v1452_v58 }
 0x869   : > { %1608 = vmatmul.f32.gmra.mxu3 %v1569_v59 }
 0x8a5   : > { %v1603_v14 = vpop.f32.mrf.mxu3 }
 0x8a6   : > { %v1612_v61 = vadd.f32 %v1603_v14, %v5141_v49 }
 0x8a8   : > { %v5261_v62 = vadd.f32 %v1615_v9, %v1612_v61 }
 0x8aa   : > { %v1630_v46 = vsel %vm606_vm1, %v5261_v62, 0.0 }
 0x8ab   : > { %1631 = vadd.xlane.f32.xlu1 %v1630_v46 }
 0x8c5   : > { %v1606_v2 = vpop.f32.mrf.mxu3 }
 0x8c6   : > { %v1613_v3 = vadd.f32 %v1606_v2, %v5146_v6 }
 0x8c8   : > { %v5266_v5 = vadd.f32 %v1615_v9, %v1613_v3 }
 0x8ca   : > { %v1633_v8 = vsel %vm606_vm1, %v5266_v5, 0.0 }
 0x8cb   : > { %1634 = vadd.xlane.f32.xlu2 %v1633_v8 }
 0x8ec   : > { %v1609_v10 = vpop.f32.mrf.mxu3 }
 0x8ed   : > { %v1614_v11 = vadd.f32 %v1609_v10, %v5151_v53 }
 0x8ef   : > { %v5271_v4 = vadd.f32 %v1615_v9, %v1614_v11 }
 0x8f1   : > { %v1636_v49 = vsel %vm613_vm2, %v5271_v4, 0.0 }
 0x8f2   : > { %1637 = vadd.xlane.f32.xlu0 %v1636_v49 }
 0x91e   : > { %v1632_v0 = vpop.xlane.xlu1 %1631 }
 0x91f   : > { %v1639_v12 = vmul.f32 %v1632_v0, %v4858_v54 }
 0x921   : > { %v1642_v6 = vsub.f32 %v5261_v62, %v1639_v12 }
 0x923   : > { %v1645_v60 = vmul.f32 %v1642_v6, %v1642_v6 }
 0x925   : > { %v1648_v51 = vsel %vm606_vm1, %v1645_v60, 0.0  ;;  %v1704_v60 = vperm.slane %v4044_v32, 2 }
 0x926   : > { %1649 = vadd.xlane.f32.xlu1 %v1648_v51 }
 0x93e   : > { %v1635_v15 = vpop.xlane.xlu2 %1634 }
 0x93f   : > { %v1640_v17 = vmul.f32 %v1635_v15, %v4858_v54 }
 0x941   : > { %v1643_v53 = vsub.f32 %v5266_v5, %v1640_v17 }
 0x943   : > { %v1646_v18 = vmul.f32 %v1643_v53, %v1643_v53 }
 0x945   : > { %v1651_v19 = vsel %vm606_vm1, %v1646_v18, 0.0 }
 0x946   : > { %1652 = vadd.xlane.f32.xlu2 %v1651_v19 }
 0x965   : > { %v1638_v57 = vpop.xlane.xlu0 %1637 }
 0x966   : > { %v1641_v20 = vmul.f32 %v1638_v57, %v4858_v54 }
 0x968   : > { %v5283_v21 = vsub.f32 %v5271_v4, %v1641_v20 }
 0x96a   : > { %v1647_v22 = vmul.f32 %v5283_v21, %v5283_v21 }
 0x96c   : > { %v1654_v23 = vsel %vm613_vm2, %v1647_v22, 0.0 }
 0x96d   : > { %1655 = vadd.xlane.f32.xlu0 %v1654_v23 }
 0x999   : > { %v1650_v30 = vpop.xlane.xlu1 %1649 }
 0x99a   : > { %v1657_v24 = vmul.f32 %v1650_v30, %v4858_v54 }
 0x99c   : > { %v1660_v63 = vadd.f32 1e-05, %v1657_v24 }
 0x99e   : > { %4401 = vrsqrt.f32 %v1660_v63  ;;  %vm1669_vm10 = vweird.f32 %v1660_v63 }
 0x9a4   : > { %v4402_v35 = vpop.eup %4401 }
 0x9a5   : > { %v1664_v36 = vmul.f32 %v4402_v35, %v1660_v63  ;;  %vm1670_vm9 = vweird.f32 %v4402_v35 }
 0x9a6   : > { %vm1671_vm11 = vmor %vm1669_vm10, %vm1670_vm9 }
 0x9a7   : > { %v1665_v37 = vmul.f32 %v4402_v35, %v1664_v36 }
 0x9a9   : > { %v1666_v38 = vmul.f32 0.5, %v1665_v37 }
 0x9ab   : > { %v1667_v41 = vsub.f32 1.5, %v1666_v38 }
 0x9ad   : > { %v1668_v42 = vmul.f32 %v4402_v35, %v1667_v41 }
 0x9af   : > { %v1672_v39 = vsel %vm1671_vm11, %v4402_v35, %v1668_v42 }
 0x9b0   : > { %v1693_v43 = vmul.f32 %v1672_v39, %v1642_v6 }
 0x9b2   : > { %v1697_v48 = vmul.f32 %v1696_v33, %v1693_v43 }
 0x9b4   : > { %v1701_v50 = vadd.f32 %v1700_v45, %v1697_v48 }
 0x9b6   : > { %4045 = vmatmul.msk.f32.vlgmr.msrb.gmra.mxu1 %vm606_vm1, %v1701_v50 }
 0x9b9   : > { %v1653_v16 = vpop.xlane.xlu2 %1652 }
 0x9ba   : > { %v1658_v44 = vmul.f32 %v1653_v16, %v4858_v54 }
 0x9bc   : > { %v1661_v7 = vadd.f32 1e-05, %v1658_v44 }
 0x9be   : > { %4403 = vrsqrt.f32 %v1661_v7  ;;  %vm1679_vm6 = vweird.f32 %v1661_v7 }
 0x9c4   : > { %v4404_v13 = vpop.eup %4403 }
 0x9c5   : > { %v1674_v31 = vmul.f32 %v4404_v13, %v1661_v7  ;;  %vm1680_vm12 = vweird.f32 %v4404_v13 }
 0x9c6   : > { %vm1681_vm7 = vmor %vm1679_vm6, %vm1680_vm12 }
 0x9c7   : > { %v1675_v34 = vmul.f32 %v4404_v13, %v1674_v31 }
 0x9c9   : > { %v1676_v47 = vmul.f32 0.5, %v1675_v34 }
 0x9cb   : > { %v1677_v55 = vsub.f32 1.5, %v1676_v47 }
 0x9cd   : > { %v1678_v56 = vmul.f32 %v4404_v13, %v1677_v55 }
 0x9cf   : > { %v1682_v58 = vsel %vm1681_vm7, %v4404_v13, %v1678_v56 }
 0x9d0   : > { %v1694_v52 = vmul.f32 %v1682_v58, %v1643_v53 }
 0x9d2   : > { %v1698_v59 = vmul.f32 %v1696_v33, %v1694_v52 }
 0x9d4   : > { %v1702_v25 = vadd.f32 %v1700_v45, %v1698_v59 }
 0x9d6   : > { %4046 = vmatmul.msk.f32.gmra.mxu1 %vm606_vm1, %v1702_v25 }
 0x9e0   : > { %v1656_v9 = vpop.xlane.xlu0 %1655 }
 0x9e1   : > { %v1659_v14 = vmul.f32 %v1656_v9, %v4858_v54 }
 0x9e3   : > { %v1662_v61 = vadd.f32 1e-05, %v1659_v14 }
 0x9e5   : > { %4405 = vrsqrt.f32 %v1662_v61  ;;  %vm1689_vm9 = vweird.f32 %v1662_v61 }
 0x9eb   : > { %v4406_v46 = vpop.eup %4405 }
 0x9ec   : > { %v1684_v2 = vmul.f32 %v4406_v46, %v1662_v61  ;;  %vm1690_vm8 = vweird.f32 %v4406_v46 }
 0x9ed   : > { %vm1691_vm10 = vmor %vm1689_vm9, %vm1690_vm8 }
 0x9ee   : > { %v1685_v3 = vmul.f32 %v4406_v46, %v1684_v2 }
 0x9f0   : > { %v1686_v8 = vmul.f32 0.5, %v1685_v3 }
 0x9f2   : > { %v1687_v10 = vsub.f32 1.5, %v1686_v8 }
 0x9f4   : > { %v1688_v11 = vmul.f32 %v4406_v46, %v1687_v10 }
 0x9f6   : > { %v1692_v49 = vsel %vm1691_vm10, %v4406_v46, %v1688_v11 }
 0x9f7   : > { %v1695_v0 = vmul.f32 %v1692_v49, %v5283_v21 }
 0x9f9   : > { %v1699_v12 = vmul.f32 %v1696_v33, %v1695_v0 }
 0x9fb   : > { %v1703_v6 = vadd.f32 %v1700_v45, %v1699_v12 }
 0x9fd   : > { %4047 = vmatmul.msk.f32.gmra.mxu1 %vm606_vm1, %v1703_v6 }
 0xa33   : > { %v1731_v51 = vpop.f32.mrf.mxu1 }
 0xa34   : > { %v5326_v15 = vadd.f32 %v1731_v51, %v1704_v60 }
 0xa36   : > { %1871 = vrot.lane.b32.xlu0 %v5326_v15, %s6344_s23 }
 0xa3e   : > { %1865 = vrot.lane.b32.xlu0 %v5326_v15, %s6342_s24 }
 0xa53   : > { %v1734_v17 = vpop.f32.mrf.mxu1 }
 0xa54   : > { %v5332_v53 = vadd.f32 %v1734_v17, %v1704_v60 }
 0xa56   : > { %1873 = vrot.lane.b32.xlu2 %v5332_v53, %s6344_s23  ;;  %v5408_v52 = vpack.i.bf16 %v5326_v15, %v5332_v53 }
 0xa5e   : > { %1867 = vrot.lane.b32.xlu2 %v5332_v53, %s6342_s24 }
 0xa66   : > { %2129 = vrot.lane.b32.xlu2 %v5332_v53, %s6338_s17 }
 0xa6e   : > { %2123 = vrot.lane.b32.xlu2 %v5332_v53, %s6340_s0 }
 0xa76   : > { %1745 = vrot.lane.b32.xlu2 %v5332_v53, %s6384_s22 }
 0xa7a   : > { %v1737_v18 = vpop.f32.mrf.mxu1 }
 0xa7b   : > { %v5344_v19 = vadd.f32 %v1737_v18, %v1704_v60 }
 0xa7d   : > { %1875 = vrot.lane.b32.xlu1 %v5344_v19, %s6344_s23  ;;  %1869 = vrot.lane.b32.xlu0 %v5344_v19, %s6342_s24 }
 0xa7e   : > { %2001 = vrot.lane.b32.xlu2 %v5332_v53, %s6385_s18 }
 0xa85   : > { %2131 = vrot.lane.b32.xlu1 %v5344_v19, %s6338_s17  ;;  %2121 = vrot.lane.b32.xlu0 %v5326_v15, %s6340_s0 }
 0xa86   : > { %1995 = vrot.lane.b32.xlu2 %v5332_v53, %s6386_s30 }
 0xa8d   : > { %2127 = vrot.lane.b32.xlu1 %v5326_v15, %s6338_s17  ;;  %1747 = vrot.lane.b32.xlu0 %v5344_v19, %s6384_s22  ;;  %s5501_s17 = sshll.u32 %s4730_s7, 7 }
 0xa8e   : > { %s5511_s24 = sld [smem:[#allocation3 + %s5501_s17]]  ;;  %s2676_s23 = sadd.s32 2, %s5501_s17 }
 0xa8f   : > { %s2688_s2 = sadd.s32 3, %s5501_s17  ;;  %s5517_s3 = sld [smem:[#allocation3 + %s2676_s23]] }
 0xa90   : > { %s2700_s28 = sadd.s32 4, %s5501_s17  ;;  %s5523_s15 = sld [smem:[#allocation3 + %s2688_s2]] }
 0xa91   : > { %s2712_s19 = sadd.s32 5, %s5501_s17  ;;  %s5531_s23 = sld [smem:[#allocation3 + %s2700_s28]] }
 0xa92   : > { %s5536_s13 = sld [smem:[#allocation3 + %s2712_s19]]  ;;  %s2736_s2 = sadd.s32 7, %s5501_s17 }
 0xa93   : > { %s5568_s14 = sld [smem:[#allocation3 + %s2736_s2]] }
 0xa94   : > { %p2659_p11 = scmp.eq.s32.totalorder %s5511_s24, 0 }
 0xa95   : > { %2125 = vrot.lane.b32.xlu1 %v5344_v19, %s6340_s0  ;;  %2003 = vrot.lane.b32.xlu0 %v5344_v19, %s6385_s18  ;;  %s2664_s0 = sadd.s32 1, %s5501_s17  ;;  %p2683_p13 = scmp.eq.s32.totalorder %s5517_s3, 0 }
 0xa96   : > { %s5514_s1 = sld [smem:[#allocation3 + %s2664_s0]]  ;;  %s2724_s0 = sadd.s32 6, %s5501_s17 }
 0xa97   : > { %s5540_s26 = sld [smem:[#allocation3 + %s2724_s0]]  ;;  %p2695_p0 = scmp.eq.s32.totalorder %s5523_s15, 0 }
 0xa98   : > { %s2660_s7 = scalar_select %p2659_p11, -1e+09, 0.0 }
 0xa99   : > { %s2684_s11 = scalar_select %p2683_p13, -1e+09, 0.0 }
 0xa9a   : > { %p2707_p1 = scmp.eq.s32.totalorder %s5531_s23, 0  ;;  %p2719_p2 = scmp.eq.s32.totalorder %s5536_s13, 0 }
 0xa9b   : > { %p2743_p4 = scmp.eq.s32.totalorder %s5568_s14, 0 }
 0xa9c   : > { %p2671_p12 = scmp.eq.s32.totalorder %s5514_s1, 0 }
 0xa9d   : > { %1743 = vrot.lane.b32.xlu1 %v5326_v15, %s6384_s22  ;;  %1993 = vrot.lane.b32.xlu0 %v5326_v15, %s6386_s30  ;;  %p2731_p3 = scmp.eq.s32.totalorder %s5540_s26, 0 }
 0xa9e   : > { %s2672_s19 = scalar_select %p2671_p12, -1e+09, 0.0 }
 0xa9f   : > { %s2720_s16 = scalar_select %p2719_p2, -1e+09, 0.0 }
 0xaa0   : > { %s2744_s17 = scalar_select %p2743_p4, -1e+09, 0.0 }
 0xaa5   : > { %1999 = vrot.lane.b32.xlu1 %v5326_v15, %s6385_s18 }
 0xaa8   : > { %v1872_v20 = vpop.permute.xlu0 %1871 }
 0xaad   : > { %1997 = vrot.lane.b32.xlu1 %v5344_v19, %s6386_s30 }
 0xab0   : > { %v1874_v57 = vpop.permute.xlu2 %1873  ;;  %v1866_v22 = vpop.permute.xlu0 %1865 }
 0xab8   : > { %v1868_v21 = vpop.permute.xlu2 %1867 }
 0xac0   : > { %v2130_v23 = vpop.permute.xlu2 %2129 }
 0xac8   : > { %v2124_v36 = vpop.permute.xlu2 %2123 }
 0xad0   : > { %v1746_v32 = vpop.permute.xlu2 %1745 }
 0xad8   : > { %v2002_v39 = vpop.permute.xlu2 %2001 }
 0xae0   : > { %v1996_v48 = vpop.permute.xlu2 %1995 }
 0xaef   : > { %v1876_v30 = vpop.permute.xlu1 %1875  ;;  %v1870_v24 = vpop.permute.xlu0 %1869 }
 0xaf0   : > { %4058 = vmatpush.xpose.msk.msra.mxu1 %vm734_vm13, %v1876_v30 }
 0xaf4   : > { %4059 = vmatpush.xpose.msk.msra.mxu1 %vm734_vm13, %v1874_v57 }
 0xaf7   : > { %v2132_v63 = vpop.permute.xlu1 %2131  ;;  %v2122_v35 = vpop.permute.xlu0 %2121 }
 0xaf8   : > { %4060 = vmatpush.xpose.msk.msra.mxu1 %vm734_vm13, %v1872_v20 }
 0xafb   : > { %4061 = vmatmul.msk.f32.vlgmr.msra.gmra.mxu1 %vm734_vm13, %v1866_v22 }
 0xafc   : > { %4078 = vmatpush.xpose.msk.msrb.mxu1 %vm734_vm13, %v2132_v63 }
 0xaff   : > { %v2128_v37 = vpop.permute.xlu1 %2127  ;;  %v1748_v38 = vpop.permute.xlu0 %1747 }
 0xb00   : > { %4079 = vmatpush.xpose.msk.msrb.mxu1 %vm734_vm13, %v2130_v23  ;;  %4048 = vmatpush.xpose.msk.msrb.mxu0 %vm734_vm13, %v1748_v38 }
 0xb03   : > { %4062 = vmatmul.msk.f32.gmra.mxu1 %vm734_vm13, %v1868_v21 }
 0xb04   : > { %4080 = vmatpush.xpose.msk.msrb.mxu1 %vm734_vm13, %v2128_v37  ;;  %4049 = vmatpush.xpose.msk.msrb.mxu0 %vm734_vm13, %v1746_v32 }
 0xb07   : > { %v2126_v41 = vpop.permute.xlu1 %2125  ;;  %v2004_v33 = vpop.permute.xlu0 %2003 }
 0xb0b   : > { %4063 = vmatmul.msk.f32.gmra.mxu1 %vm734_vm13, %v1870_v24 }
 0xb0f   : > { %v1744_v42 = vpop.permute.xlu1 %1743  ;;  %v1994_v45 = vpop.permute.xlu0 %1993 }
 0xb10   : > { %4050 = vmatpush.xpose.msk.msrb.mxu0 %vm734_vm13, %v1744_v42 }
 0xb13   : > { %4051 = vmatmul.msk.f32.vlgmr.msrb.gmra.mxu0 %vm734_vm13, %v5326_v15  ;;  %4081 = vmatmul.msk.f32.vlgmr.msrb.gmra.mxu1 %vm734_vm13, %v2122_v35 }
 0xb14   : > { %4068 = vmatpush.xpose.msk.msra.mxu0 %vm734_vm13, %v2004_v33 }
 0xb17   : > { %v2000_v43 = vpop.permute.xlu1 %1999 }
 0xb18   : > { %4069 = vmatpush.xpose.msk.msra.mxu0 %vm734_vm13, %v2002_v39 }
 0xb1b   : > { %4052 = vmatmul.msk.f32.gmra.mxu0 %vm734_vm13, %v5332_v53  ;;  %4082 = vmatmul.msk.f32.gmra.mxu1 %vm734_vm13, %v2124_v36 }
 0xb1c   : > { %4070 = vmatpush.xpose.msk.msra.mxu0 %vm734_vm13, %v2000_v43 }
 0xb1f   : > { %v1998_v50 = vpop.permute.xlu1 %1997 }
 0xb23   : > { %4053 = vmatmul.msk.f32.gmra.mxu0 %vm734_vm13, %v5344_v19  ;;  %4083 = vmatmul.msk.f32.gmra.mxu1 %vm734_vm13, %v2126_v41 }
 0xb2b   : > { %4071 = vmatmul.msk.f32.vlgmr.msra.gmra.mxu0 %vm734_vm13, %v1994_v45 }
 0xb33   : > { %4072 = vmatmul.msk.f32.gmra.mxu0 %vm734_vm13, %v1996_v48 }
 0xb3b   : > { %4073 = vmatmul.msk.f32.gmra.mxu0 %vm734_vm13, %v1998_v50 }
 0xb78   : > { %v1906_v16 = vpop.f32.mrf.mxu1 }
 0xb79   : > { %v1915_v44 = vsel %vm773_vm15, %v1906_v16, -inf }
 0xb7a   : > { %1916 = vmax.xlane.f32.xlu0 %v1915_v44 }
 0xb80   : > { %v1909_v7 = vpop.f32.mrf.mxu1 }
 0xb81   : > { %v1918_v13 = vsel %vm773_vm15, %v1909_v7, -inf }
 0xb82   : > { %1919 = vmax.xlane.f32.xlu2 %v1918_v13 }
 0xb88   : > { %v1912_v31 = vpop.f32.mrf.mxu1 }
 0xb89   : > { %v1921_v34 = vsel %vm780_vm3, %v1912_v31, -inf }
 0xb8a   : > { %1922 = vmax.xlane.f32.xlu1 %v1921_v34 }
 0xb90   : > { %v2162_v47 = vpop.f32.mrf.mxu1  ;;  %v5424_v11 = vpop.f32.mrf.mxu0 }
 0xb91   : > { %v2171_v55 = vsel %vm773_vm15, %v2162_v47, -inf  ;;  %v1787_v35 = vsel %vm773_vm15, %v5424_v11, -inf }
 0xb92   : > { %2172 = vmax.xlane.f32.xlu2 %v2171_v55 }
 0xb98   : > { %v2165_v56 = vpop.f32.mrf.mxu1  ;;  %v5430_v15 = vpop.f32.mrf.mxu0 }
 0xb99   : > { %v2174_v58 = vsel %vm773_vm15, %v2165_v56, -inf  ;;  %v1790_v42 = vsel %vm773_vm15, %v5430_v15, -inf }
 0xb9a   : > { %2175 = vmax.xlane.f32.xlu0 %v2174_v58 }
 0xba0   : > { %v5414_v59 = vpop.f32.mrf.mxu1  ;;  %v5438_v23 = vpop.f32.mrf.mxu0 }
 0xba1   : > { %v2177_v25 = vsel %vm780_vm3, %v5414_v59, -inf  ;;  %v1793_v33 = vsel %vm780_vm3, %v5438_v23, -inf }
 0xba3   : > { %4277 = vrot.lane.b32.xlu1 %v5408_v52, %s6387_s25 }
 0xba8   : > { %v5448_v37 = vpop.f32.mrf.mxu0 }
 0xba9   : > { %v2043_v45 = vsel %vm773_vm15, %v5448_v37, -inf }
 0xbae   : > { %1952 = vrot.lane.b32.xlu0 %v5344_v19, %s6387_s25 }
 0xbb0   : > { %v5457_v43 = vpop.f32.mrf.mxu0 }
 0xbb1   : > { %v2046_v48 = vsel %vm773_vm15, %v5457_v43, -inf }
 0xbb8   : > { %v5463_v50 = vpop.f32.mrf.mxu0 }
 0xbcd   : > { %2178 = vmax.xlane.f32.xlu1 %v2177_v25 }
 0xbe6   : > { %4282 = vrot.lane.b32.xlu1 %v5408_v52, %s6388_s27 }
 0xbed   : > { %v1917_v9 = vpop.xlane.xlu0 %1916 }
 0xbee   : > { %v1924_v14 = vsub.f32 %v1906_v16, %v1917_v9  ;;  %v2049_v16 = vsel %vm780_vm3, %v5463_v50, -inf }
 0xbf0   : > { %v1927_v61 = vmul.f32 1.442695, %v1924_v14 }
 0xbf2   : > { %4407 = vpow2.f32 %v1927_v61 }
 0xbf5   : > { %v1920_v46 = vpop.xlane.xlu2 %1919 }
 0xbf6   : > { %v1925_v2 = vsub.f32 %v1909_v7, %v1920_v46 }
 0xbf8   : > { %v5420_v3 = vpop.eup %4407  ;;  %v1929_v8 = vmul.f32 1.442695, %v1925_v2 }
 0xbf9   : > { %v1933_v10 = vsel %vm773_vm15, %v5420_v3, 0.0 }
 0xbfa   : > { %4409 = vpow2.f32 %v1929_v8  ;;  %1934 = vadd.xlane.f32.xlu2 %v1933_v10 }
 0xbfd   : > { %v1923_v49 = vpop.xlane.xlu1 %1922 }
 0xbfe   : > { %v1926_v0 = vsub.f32 %v1912_v31, %v1923_v49 }
 0xc00   : > { %v5426_v12 = vpop.eup %4409  ;;  %v1931_v6 = vmul.f32 1.442695, %v1926_v0 }
 0xc01   : > { %v1936_v60 = vsel %vm773_vm15, %v5426_v12, 0.0 }
 0xc02   : > { %4411 = vpow2.f32 %v1931_v6  ;;  %1937 = vadd.xlane.f32.xlu2 %v1936_v60 }
 0xc05   : > { %v2173_v51 = vpop.xlane.xlu2 %2172 }
 0xc06   : > { %v2180_v17 = vsub.f32 %v2162_v47, %v2173_v51 }
 0xc08   : > { %v5432_v53 = vpop.eup %4411  ;;  %v2183_v18 = vmul.f32 1.442695, %v2180_v17 }
 0xc09   : > { %v1939_v57 = vsel %vm780_vm3, %v5432_v53, 0.0 }
 0xc0a   : > { %4413 = vpow2.f32 %v2183_v18  ;;  %1940 = vadd.xlane.f32.xlu2 %v1939_v57 }
 0xc0d   : > { %v2176_v20 = vpop.xlane.xlu0 %2175 }
 0xc0e   : > { %v2181_v21 = vsub.f32 %v2165_v56, %v2176_v20  ;;  %v2773_v20 = vld [vmem:[%s6302_s8 + $0x38] sm:$0xff] }
 0xc10   : > { %v5436_v22 = vpop.eup %4413  ;;  %v2185_v30 = vmul.f32 1.442695, %v2181_v21 }
 0xc11   : > { %v2189_v24 = vsel %vm773_vm15, %v5436_v22, 0.0 }
 0xc12   : > { %4415 = vpow2.f32 %v2185_v30  ;;  %2190 = vadd.xlane.f32.xlu0 %v2189_v24  ;;  %v2772_v30 = vld [vmem:[%s6302_s8 + $0x30] sm:$0xff]  ;;  %v2771_v24 = vld [vmem:[%s6302_s8 + $0x28] sm:$0xff] }
 0xc15   : > { %v4278_v38 = vpop.permute.xlu1 %4277 }
 0xc16   : > { %v4279_v41 = vunpack.i.l.bf16 %v4278_v38  ;;  %v4280_v39 = vunpack.i.h.bf16 %v4278_v38 }
 0xc18   : > { %v5442_v63 = vpop.eup %4415 }
 0xc19   : > { %v2192_v36 = vsel %vm773_vm15, %v5442_v63, 0.0 }
 0xc1a   : > { %1788 = vmax.xlane.f32.xlu0 %v1787_v35  ;;  %2193 = vadd.xlane.f32.xlu1 %v2192_v36  ;;  %v2650_v36 = vlaneseq }
 0xc20   : > { %v1953_v32 = vpop.permute.xlu0 %1952 }
 0xc21   : > { %4064 = vmatpush.msk.msra.mxu3 %vm825_vm14, %v1953_v32 }
 0xc22   : > { %1791 = vmax.xlane.f32.xlu0 %v1790_v42  ;;  %2208 = vrot.lane.b32.xlu2 %v5344_v19, %s6388_s27  ;;  %v5565_v42 = vand.u32 127, %v2650_v36 }
 0xc23   : > { %1794 = vmax.xlane.f32.xlu1 %v1793_v33  ;;  %1981 = vmatpush.msra.mxu3 %v4279_v41  ;;  %v2769_v33 = vld [vmem:[%s6302_s8 + $0x18] sm:$0xff] }
 0xc24   : > { %vm2658_vm11 = vcmp.eq.s32.totalorder %v5565_v42, 0  ;;  %vm2670_vm12 = vcmp.eq.s32.totalorder %v5565_v42, 1  ;;  %vm2682_vm6 = vcmp.eq.s32.totalorder %v5565_v42, 2  ;;  %vm2694_vm7 = vcmp.eq.s32.totalorder %v5565_v42, 3 }
 0xc25   : > { %1982 = vmatpush.msra.mxu3 %v4280_v39  ;;  %v2768_v39 = vld [vmem:[%s6302_s8 + $0x10] sm:$0xff]  ;;  %vm2706_vm8 = vcmp.eq.s32.totalorder %v5565_v42, 4  ;;  %vm2718_vm9 = vcmp.eq.s32.totalorder %v5565_v42, 5  ;;  %vm2742_vm10 = vcmp.eq.s32.totalorder %v5565_v42, 7 }
 0xc2a   : > { %2044 = vmax.xlane.f32.xlu0 %v2043_v45 }
 0xc2b   : > { %2047 = vmax.xlane.f32.xlu1 %v2046_v48 }
 0xc32   : > { %2050 = vmax.xlane.f32.xlu0 %v2049_v16  ;;  %v2767_v16 = vld [vmem:[%s6302_s8 + $0x8] sm:$0xff] }
 0xc40   : > { %v2179_v44 = vpop.xlane.xlu1 %2178 }
 0xc41   : > { %v2182_v7 = vsub.f32 %v5414_v59, %v2179_v44 }
 0xc43   : > { %v2187_v13 = vmul.f32 1.442695, %v2182_v7  ;;  %v2685_v7 = vstv %s2684_s11 }
 0xc44   : > { %1824 = vrot.lane.b32.xlu1 %v5344_v19, %s6389_s29 }
 0xc45   : > { %4417 = vpow2.f32 %v2187_v13 }
 0xc46   : > { %4287 = vrot.lane.b32.xlu0 %v5408_v52, %s6389_s29 }
 0xc4b   : > { %v5472_v31 = vpop.eup %4417 }
 0xc4c   : > { %4292 = vrot.lane.b32.xlu1 %v5408_v52, %s6390_s20  ;;  %v2195_v34 = vsel %vm780_vm3, %v5472_v31, 0.0 }
 0xc4d   : > { %2196 = vadd.xlane.f32.xlu2 %v2195_v34 }
 0xc4e   : > { %2080 = vrot.lane.b32.xlu0 %v5344_v19, %s6390_s20 }
 0xc54   : > { %4297 = vrot.lane.b32.xlu1 %v4296_v1, %s6391_s21 }
 0xc58   : > { %v4283_v26 = vpop.permute.xlu1 %4282 }
 0xc59   : > { %v4285_v25 = vunpack.i.h.bf16 %v4283_v26 }
 0xc5c   : > { %4302 = vrot.lane.b32.xlu1 %v4301_v40, %s6391_s21  ;;  %v4284_v40 = vunpack.i.l.bf16 %v4283_v26  ;;  %s2696_s21 = scalar_select %p2695_p0, -1e+09, 0.0 }
 0xc6d   : > { %v1935_v47 = vpop.xlane.xlu2 %1934 }
 0xc6e   : > { %4419 = vrcp.f32 %v1935_v47  ;;  %v2686_v47 = vsel %vm2682_vm6, %v2685_v7, 0.0 }
 0xc74   : > { %v4420_v55 = vpop.eup %4419 }
 0xc75   : > { %v1945_v56 = vmul.f32 %v4420_v55, %v5420_v3  ;;  %v1938_v58 = vpop.xlane.xlu2 %1937  ;;  %v2697_v55 = vstv %s2696_s21  ;;  %s2732_s21 = scalar_select %p2731_p3, -1e+09, 0.0 }
 0xc76   : > { %4421 = vrcp.f32 %v1938_v58  ;;  %v2766_v58 = vld [vmem:[%s6302_s8] sm:$0xff] }
 0xc77   : > { %4065 = vmatmul.msk.f32.vlgmr.msra.gmra.mxu3 %vm773_vm15, %v1945_v56 }
 0xc7c   : > { %v4422_v19 = vpop.eup %4421 }
 0xc7d   : > { %v1941_v52 = vpop.xlane.xlu2 %1940  ;;  %v1946_v59 = vmul.f32 %v4422_v19, %v5426_v12 }
 0xc7e   : > { %4423 = vrcp.f32 %v1941_v52  ;;  %v2698_v52 = vsel %vm2694_vm7, %v2697_v55, 0.0 }
 0xc7f   : > { %4066 = vmatmul.msk.f32.gmra.mxu3 %vm773_vm15, %v1946_v59 }
 0xc84   : > { %v4424_v27 = vpop.eup %4423 }
 0xc85   : > { %v2209_v1 = vpop.permute.xlu2 %2208  ;;  %v2191_v28 = vpop.xlane.xlu0 %2190  ;;  %v1947_v29 = vmul.f32 %v4424_v27, %v5432_v53 }
 0xc86   : > { %4425 = vrcp.f32 %v2191_v28  ;;  %4084 = vmatpush.msk.msrb.mxu3 %vm825_vm14, %v2209_v1 }
 0xc87   : > { %4067 = vmatmul.msk.f32.gmra.mxu3 %vm773_vm15, %v1947_v29  ;;  %v2721_v29 = vstv %s2720_s16  ;;  %s6394_s16 = smov 16  }
 0xc88   : > { %2237 = vmatpush.msrb.mxu3 %v4284_v40  ;;  %v2654_v40 = vstv %s5511_s24  ;;  %s6399_s24 = smov 32  }
 0xc8a   : > { %2238 = vmatpush.msrb.mxu3 %v4285_v25  ;;  %v2666_v25 = vstv %s5514_s1  ;;  %s6392_s1 = smov 8  }
 0xc8c   : > { %v4426_v9 = vpop.eup %4425  ;;  %2785 = vmatpush.msra.mxu3 %v2773_v20 }
 0xc8d   : > { %v2201_v14 = vmul.f32 %v4426_v9, %v5436_v22  ;;  %v2194_v61 = vpop.xlane.xlu1 %2193  ;;  %v1789_v46 = vpop.xlane.xlu0 %1788 }
 0xc8e   : > { %4427 = vrcp.f32 %v2194_v61  ;;  %v1796_v2 = vsub.f32 %v5424_v11, %v1789_v46  ;;  %2786 = vmatpush.msra.mxu3 %v2772_v30  ;;  %v2733_v61 = vstv %s2732_s21  ;;  %v2702_v30 = vstv %s5531_s23  ;;  %s6395_s21 = smov 88  }
 0xc8f   : > { %4085 = vmatmul.msk.f32.vlgmr.msrb.gmra.mxu3 %vm773_vm15, %v2201_v14  ;;  %v2722_v14 = vsel %vm2718_vm9, %v2721_v29, 0.0 }
 0xc90   : > { %v1799_v3 = vmul.f32 1.442695, %v1796_v2  ;;  %2787 = vmatpush.msra.mxu3 %v2771_v24 }
 0xc92   : > { %4429 = vpow2.f32 %v1799_v3  ;;  %v2678_v3 = vstv %s5517_s3  ;;  %s6393_s3 = smov 24  }
 0xc93   : > { %vm2679_vm6 = vcmp.eq.s32.totalorder %v5565_v42, %v2678_v3 }
 0xc94   : > { %v4428_v8 = vpop.eup %4427 }
 0xc95   : > { %v1792_v10 = vpop.xlane.xlu0 %1791  ;;  %v2202_v49 = vmul.f32 %v4428_v8, %v5442_v63 }
 0xc96   : > { %v1795_v0 = vpop.xlane.xlu1 %1794  ;;  %v1797_v12 = vsub.f32 %v5430_v15, %v1792_v10 }
 0xc97   : > { %4086 = vmatmul.msk.f32.gmra.mxu3 %vm773_vm15, %v2202_v49  ;;  %v1798_v6 = vsub.f32 %v5438_v23, %v1795_v0  ;;  %v2745_v49 = vstv %s2744_s17  ;;  %s6396_s17 = smov 120  }
 0xc98   : > { %v5504_v11 = vpop.eup %4429  ;;  %v1801_v60 = vmul.f32 1.442695, %v1797_v12 }
 0xc99   : > { %v1805_v51 = vsel %vm773_vm15, %v5504_v11, 0.0  ;;  %v1803_v15 = vmul.f32 1.442695, %v1798_v6  ;;  %v2746_v6 = vsel %vm2742_vm10, %v2745_v49, 0.0  ;;  %vm2751_vm10 = vcmask 1042432  }
 0xc9a   : > { %4431 = vpow2.f32 %v1801_v60  ;;  %1806 = vadd.xlane.f32.xlu2 %v1805_v51 }
 0xc9b   : > { %4433 = vpow2.f32 %v1803_v15  ;;  %v4619_v15 = vmov 0.0  }
 0xc9d   : > { %v2045_v17 = vpop.xlane.xlu0 %2044 }
 0xc9e   : > { %v2052_v18 = vsub.f32 %v5448_v37, %v2045_v17  ;;  %v2048_v22 = vpop.xlane.xlu1 %2047  ;;  %v2770_v37 = vld [vmem:[%s6302_s8 + $0x20] sm:$0xff] }
 0xc9f   : > { %v2053_v38 = vsub.f32 %v5457_v43, %v2048_v22  ;;  %2788 = vmatpush.msra.mxu3 %v2770_v37  ;;  %v2661_v43 = vstv %s2660_s7  ;;  %s2708_s7 = scalar_select %p2707_p1, -1e+09, 0.0  ;;  %v2762_v22 = vshrl.u32 %v2650_v36, 7  ;;  %v4620_v37 = vmov -1e+09  }
 0xca0   : > { %v5520_v53 = vpop.eup %4431  ;;  %v2055_v21 = vmul.f32 1.442695, %v2052_v18  ;;  %v2662_v48 = vsel %vm2658_vm11, %v2661_v43, 0.0  ;;  %vm2655_vm11 = vcmp.eq.s32.totalorder %v5565_v42, %v2654_v40 }
 0xca1   : > { %v1808_v57 = vsel %vm773_vm15, %v5520_v53, 0.0  ;;  %v5550_v63 = vpop.eup %4433  ;;  %v2057_v45 = vmul.f32 1.442695, %v2053_v38  ;;  %2789 = vmatpush.msra.mxu3 %v2769_v33  ;;  %v2709_v27 = vstv %s2708_s7  ;;  %v4111_v17 = vsel %vm2655_vm11, 1.0, %v4619_v15  ;;  %s6398_s7 = smov 72  }
 0xca2   : > { %1809 = vadd.xlane.f32.xlu2 %v1808_v57  ;;  %4435 = vpow2.f32 %v2055_v21  ;;  %v1811_v41 = vsel %vm780_vm3, %v5550_v63, 0.0  ;;  %v2710_v28 = vsel %vm2706_vm8, %v2709_v27, 0.0  ;;  %v2690_v57 = vstv %s5523_s15 }
 0xca3   : > { %2790 = vmatpush.msra.mxu3 %v2768_v39  ;;  %vm2691_vm7 = vcmp.eq.s32.totalorder %v5565_v42, %v2690_v57  ;;  %vm2749_vm8 = vcmask 1041408   ;;  %vm2763_vm9 = vcmp.le.s32.totalorder %v5565_v42, %v2762_v22  ;;  %v2798_v22 = vld [vmem:[%s6303_s9] sm:$0xff] }
 0xca4   : > { %v2764_v38 = vsel %vm2763_vm9, 0.0, %v4620_v37  ;;  %v4114_v39 = vsel %vm2691_vm7, 1.0, %v4619_v15  ;;  %vm2755_vm7 = vcmask 1044480   ;;  %vm2759_vm9 = vcmask 1046528  }
 0xca5   : > { %v2051_v23 = vpop.xlane.xlu0 %2050  ;;  %2791 = vmatpush.msra.mxu3 %v2767_v16  ;;  %v2726_v16 = vstv %s5540_s26  ;;  %s6397_s26 = smov 104  }
 0xca6   : > { %v2054_v35 = vsub.f32 %v5463_v50, %v2051_v23  ;;  %v2673_v50 = vstv %s2672_s19  ;;  %v4113_v23 = vsel %vm2679_vm6, 1.0, %v4619_v15  ;;  %vm2727_vm6 = vcmp.eq.s32.totalorder %v5565_v42, %v2726_v16 }
 0xca7   : > { %v2674_v44 = vsel %vm2670_vm12, %v2673_v50, 0.0  ;;  %2792 = vmatpush.msra.mxu3 %v2766_v58  ;;  %vm2667_vm12 = vcmp.eq.s32.totalorder %v5565_v42, %v2666_v25 }
 0xca8   : > { %v2059_v32 = vmul.f32 1.442695, %v2054_v35  ;;  %v5588_v13 = vpop.eup %4435  ;;  %v2675_v34 = vadd.f32 %v2674_v44, %v2662_v48  ;;  %v4112_v18 = vsel %vm2667_vm12, 1.0, %v4619_v15  ;;  %vm2753_vm12 = vcmask 1043456  }
 0xca9   : > { %v2061_v59 = vsel %vm773_vm15, %v5588_v13, 0.0  ;;  %v2748_v24 = vsel %vm825_vm14, %v4111_v17, %v4112_v18 }
 0xcaa   : > { %4437 = vpow2.f32 %v2059_v32  ;;  %1812 = vadd.xlane.f32.xlu2 %v1811_v41  ;;  %v2687_v19 = vadd.f32 %v2686_v47, %v2675_v34  ;;  %v2714_v32 = vstv %s5536_s13  ;;  %v2750_v43 = vsel %vm2749_vm8, %v2748_v24, %v4113_v23 }
 0xcab   : > { %4439 = vpow2.f32 %v2057_v45  ;;  %vm2715_vm11 = vcmp.eq.s32.totalorder %v5565_v42, %v2714_v32  ;;  %v2752_v44 = vsel %vm2751_vm10, %v2750_v43, %v4114_v39  ;;  %v2738_v34 = vstv %s5568_s14  ;;  %s6400_s14 = sld [smem:[#allocation23_spill]] }
 0xcac   : > { %v2699_v1 = vadd.f32 %v2698_v52, %v2687_v19  ;;  %v4116_v7 = vsel %vm2715_vm11, 1.0, %v4619_v15  ;;  %v4117_v19 = vsel %vm2727_vm6, 1.0, %v4619_v15  ;;  %vm2757_vm8 = vcmask 1045504  }
 0xcae   : > { %v2711_v9 = vadd.f32 %v2710_v28, %v2699_v1 }
 0xcb0   : > { %v5594_v56 = vpop.eup %4437  ;;  %v2723_v8 = vadd.f32 %v2722_v14, %v2711_v9 }
 0xcb1   : > { %v2067_v26 = vsel %vm780_vm3, %v5594_v56, 0.0  ;;  %vm2730_vm3 = vcmp.eq.s32.totalorder %v5565_v42, 6  ;;  %v5612_v46 = vpop.eup %4439 }
 0xcb2   : > { %2062 = vadd.xlane.f32.xlu2 %v2061_v59  ;;  %2068 = vadd.xlane.f32.xlu0 %v2067_v26  ;;  %v2734_v10 = vsel %vm2730_vm3, %v2733_v61, 0.0  ;;  %v2064_v51 = vsel %vm773_vm15, %v5612_v46, 0.0  ;;  %vm2703_vm3 = vcmp.eq.s32.totalorder %v5565_v42, %v2702_v30 }
 0xcb3   : > { %v2735_v12 = vadd.f32 %v2734_v10, %v2723_v8  ;;  %v4115_v48 = vsel %vm2703_vm3, 1.0, %v4619_v15 }
 0xcb4   : > { %v2754_v47 = vsel %vm2753_vm12, %v2752_v44, %v4115_v48 }
 0xcb5   : > { %v2747_v21 = vadd.f32 %v2746_v6, %v2735_v12  ;;  %v2756_v52 = vsel %vm2755_vm7, %v2754_v47, %v4116_v7  ;;  %v5655_v6 = vld [vmem:[%s6304_s10 + $0x50] sm:$0xff] }
 0xcb6   : > { %v1825_v2 = vpop.permute.xlu1 %1824  ;;  %v2758_v26 = vsel %vm2757_vm8, %v2756_v52, %v4117_v19  ;;  %2830 = vmatpush.msrb.mxu3 %v5655_v6 }
 0xcb7   : > { %4054 = vmatpush.msk.msra.mxu2 %vm825_vm14, %v1825_v2  ;;  %v5630_v41 = vadd.f32 %v2764_v38, %v2747_v21 }
 0xcb8   : > { %v4288_v0 = vpop.permute.xlu0 %4287 }
 0xcb9   : > { %v4289_v60 = vunpack.i.l.bf16 %v4288_v0  ;;  %v4290_v20 = vunpack.i.h.bf16 %v4288_v0 }
 0xcba   : > { %2065 = vadd.xlane.f32.xlu2 %v2064_v51  ;;  %v5670_v51 = vld [vmem:[%s6304_s10 + $0x20] sm:$0xff] }
 0xcbb   : > { %1853 = vmatpush.msra.mxu2 %v4289_v60 }
 0xcbd   : > { %1854 = vmatpush.msra.mxu2 %v4290_v20 }
 0xcbe   : > { %v4293_v35 = vpop.permute.xlu1 %4292 }
 0xcbf   : > { %v4294_v45 = vunpack.i.l.bf16 %v4293_v35  ;;  %v4295_v50 = vunpack.i.h.bf16 %v4293_v35 }
 0xcc0   : > { %v2197_v36 = vpop.xlane.xlu2 %2196  ;;  %v2081_v33 = vpop.permute.xlu0 %2080 }
 0xcc1   : > { %4441 = vrcp.f32 %v2197_v36  ;;  %4074 = vmatpush.msk.msrb.mxu2 %vm825_vm14, %v2081_v33  ;;  %vm2739_vm14 = vcmp.eq.s32.totalorder %v5565_v42, %v2738_v34 }
 0xcc2   : > { %v4118_v59 = vsel %vm2739_vm14, 1.0, %v4619_v15 }
 0xcc3   : > { %2109 = vmatpush.msrb.mxu2 %v4294_v45  ;;  %v2760_v27 = vsel %vm2759_vm9, %v2758_v26, %v4118_v59 }
 0xcc5   : > { %2110 = vmatpush.msrb.mxu2 %v4295_v50  ;;  %v5700_v50 = vld [vmem:[%s6306_s12] sm:$0xff] }
 0xcc6   : > { %v4298_v32 = vpop.permute.xlu1 %4297  ;;  %v2814_v16 = vperm.slane %v5700_v50, 0 }
 0xcc7   : > { %v4442_v55 = vpop.eup %4441  ;;  %v4300_v36 = vunpack.i.h.bf16 %v4298_v32  ;;  %v4299_v33 = vunpack.i.l.bf16 %v4298_v32 }
 0xcc8   : > { %v2203_v58 = vmul.f32 %v4442_v55, %v5472_v31 }
 0xcc9   : > { %2332 = vmatpush.msrb.mxu0 %v4299_v33 }
 0xcca   : > { %4087 = vmatmul.msk.f32.gmra.mxu3 %vm773_vm15, %v2203_v58 }
 0xccb   : > { %2333 = vmatpush.msrb.mxu0 %v4300_v36 }
 0xcce   : > { %v4303_v43 = vpop.permute.xlu1 %4302 }
 0xccf   : > { %v4305_v45 = vunpack.i.h.bf16 %v4303_v43  ;;  %v4304_v48 = vunpack.i.l.bf16 %v4303_v43 }
 0xcd1   : > { %2334 = vmatpush.msrb.mxu0 %v4304_v48 }
 0xcd2   : > { %4119 = vmatmul.msk.f32.vlgmr.msra.gmra.mxu3 %vm535_vm0, %v2760_v27 }
 0xcd3   : > { %2335 = vmatpush.msrb.mxu0 %v4305_v45 }
 0xcfa   : > { %v1984_v1 = vpop.f32.mrf.mxu3 }
 0xcfb   : > { %2252 = vrot.lane.b32.xlu2 %v1984_v1, %s6392_s1 }
 0xd02   : > { %v1987_v28 = vpop.f32.mrf.mxu3 }
 0xd03   : > { %2254 = vrot.lane.b32.xlu2 %v1987_v28, %s6392_s1 }
 0xd0a   : > { %v1990_v31 = vpop.f32.mrf.mxu3 }
 0xd0b   : > { %2256 = vrot.lane.b32.xlu0 %v1990_v31, %s6392_s1 }
 0xd0d   : > { %v1807_v42 = vpop.xlane.xlu2 %1806 }
 0xd0e   : > { %4443 = vrcp.f32 %v1807_v42 }
 0xd12   : > { %v2240_v29 = vpop.f32.mrf.mxu3 }
 0xd14   : > { %v4444_v40 = vpop.eup %4443 }
 0xd15   : > { %v1817_v25 = vmul.f32 %v4444_v40, %v5504_v11  ;;  %v1810_v9 = vpop.xlane.xlu2 %1809 }
 0xd16   : > { %4445 = vrcp.f32 %v1810_v9 }
 0xd17   : > { %4055 = vmatmul.msk.f32.vlgmr.msra.gmra.mxu2 %vm773_vm15, %v1817_v25 }
 0xd1a   : > { %v2243_v14 = vpop.f32.mrf.mxu3 }
 0xd1b   : > { %2278 = vrot.lane.b32.xlu2 %v2243_v14, %s6393_s3 }
 0xd1c   : > { %v4446_v61 = vpop.eup %4445 }
 0xd1d   : > { %v1813_v2 = vpop.xlane.xlu2 %1812  ;;  %v1818_v3 = vmul.f32 %v4446_v61, %v5520_v53 }
 0xd1e   : > { %4447 = vrcp.f32 %v1813_v2 }
 0xd1f   : > { %4056 = vmatmul.msk.f32.gmra.mxu2 %vm773_vm15, %v1818_v3 }
 0xd24   : > { %v4448_v8 = vpop.eup %4447 }
 0xd25   : > { %v2063_v10 = vpop.xlane.xlu2 %2062  ;;  %v1819_v49 = vmul.f32 %v4448_v8, %v5550_v63  ;;  %v2069_v53 = vpop.xlane.xlu0 %2068  ;;  %v5731_v8 = vld [vmem:[%s6300_s6 + $0x8] sm:$0xff] }
 0xd26   : > { %4449 = vrcp.f32 %v2063_v10  ;;  %v2294_v10 = vperm.slane %v5731_v8, 3 }
 0xd27   : > { %4057 = vmatmul.msk.f32.gmra.mxu2 %vm773_vm15, %v1819_v49 }
 0xd2c   : > { %v4450_v11 = vpop.eup %4449 }
 0xd2d   : > { %v2073_v0 = vmul.f32 %v4450_v11, %v5588_v13  ;;  %v2066_v12 = vpop.xlane.xlu2 %2065  ;;  %v5663_v13 = vld [vmem:[%s6304_s10 + $0x38] sm:$0xff] }
 0xd2e   : > { %4451 = vrcp.f32 %v2066_v12  ;;  %2831 = vmatpush.msrb.mxu3 %v5663_v13  ;;  %v4306_v15 = vpack.i.bf16 %v5663_v13, %v5655_v6 }
 0xd2f   : > { %4075 = vmatmul.msk.f32.vlgmr.msrb.gmra.mxu2 %vm773_vm15, %v2073_v0  ;;  %4453 = vrcp.f32 %v2069_v53 }
 0xd30   : > { %2832 = vmatpush.msrb.mxu3 %v5670_v51 }
 0xd34   : > { %v4452_v60 = vpop.eup %4451 }
 0xd35   : > { %v2074_v63 = vmul.f32 %v4452_v60, %v5612_v46  ;;  %v5678_v46 = vld [vmem:[%s6304_s10 + $0x8] sm:$0xff]  ;;  %v4454_v18 = vpop.eup %4453 }
 0xd36   : > { %v4311_v17 = vpack.i.bf16 %v5678_v46, %v5670_v51  ;;  %2833 = vmatpush.msrb.mxu3 %v5678_v46  ;;  %v2075_v57 = vmul.f32 %v4454_v18, %v5594_v56 }
 0xd37   : > { %4076 = vmatmul.msk.f32.gmra.mxu2 %vm773_vm15, %v2074_v63 }
 0xd3f   : > { %4077 = vmatmul.msk.f32.gmra.mxu2 %vm773_vm15, %v2075_v57 }
 0xd4d   : > { %v2246_v20 = vpop.f32.mrf.mxu3 }
 0xd4e   : > { %2280 = vrot.lane.b32.xlu2 %v2246_v20, %s6393_s3 }
 0xd55   : > { %v2794_v21 = vpop.f32.mrf.mxu3  ;;  %v2253_v34 = vpop.permute.xlu2 %2252 }
 0xd56   : > { %v2797_v23 = vmul.f32 5.656854, %v2794_v21 }
 0xd58   : > { %v5689_v30 = vadd.f32 %v2798_v22, %v2797_v23 }
 0xd5a   : > { %4120 = vmatmul.msk.f32.vlgmr.msrb.gmra.mxu3 %vm606_vm1, %v5689_v30 }
 0xd5d   : > { %v2255_v47 = vpop.permute.xlu2 %2254 }
 0xd75   : > { %v2279_v58 = vpop.permute.xlu2 %2278 }
 0xd7d   : > { %v2257_v40 = vpop.permute.xlu0 %2256 }
 0xd9a   : > { %v1856_v24 = vpop.f32.mrf.mxu2 }
 0xd9b   : > { %v2285_v19 = vsel %vm734_vm13, %v1856_v24, %v2253_v34 }
 0xda2   : > { %v1859_v35 = vpop.f32.mrf.mxu2 }
 0xda3   : > { %v2286_v1 = vsel %vm734_vm13, %v1859_v35, %v2255_v47 }
 0xda8   : > { %v2281_v27 = vpop.permute.xlu2 %2280 }
 0xdaa   : > { %v1862_v37 = vpop.f32.mrf.mxu2 }
 0xdab   : > { %v2287_v25 = vsel %vm734_vm13, %v1862_v37, %v2257_v40  ;;  %v4040_v40 = vld [vmem:[%s6382_s4 + $0x60] sm:$0xff] }
 0xdb2   : > { %v2112_v56 = vpop.f32.mrf.mxu2 }
 0xdb3   : > { %2264 = vrot.lane.b32.xlu1 %v2112_v56, %s6394_s16 }
 0xdba   : > { %v2115_v38 = vpop.f32.mrf.mxu2 }
 0xdbb   : > { %2276 = vrot.lane.b32.xlu1 %v2240_v29, %s6393_s3 }
 0xdc2   : > { %v2118_v39 = vpop.f32.mrf.mxu2 }
 0xdc3   : > { %2266 = vrot.lane.b32.xlu1 %v2115_v38, %s6394_s16 }
 0xdcb   : > { %2268 = vrot.lane.b32.xlu1 %v2118_v39, %s6394_s16 }
 0xddd   : > { %v2835_v44 = vpop.f32.mrf.mxu3 }
 0xdde   : > { %v5703_v7 = vadd.f32 %v2835_v44, %v2814_v16 }
 0xde0   : > { %2839 = vrot.lane.b32.xlu1 %v5703_v7, %s6384_s22  ;;  %2904 = vrot.lane.b32.xlu2 %v5703_v7, %s6395_s21 }
 0xde8   : > { %2902 = vrot.lane.b32.xlu1 %v5703_v7, %s6396_s17 }
 0xe25   : > { %v2265_v55 = vpop.permute.xlu1 %2264 }
 0xe26   : > { %v2288_v52 = vsel %vm1277_vm4, %v2285_v19, %v2265_v55 }
 0xe2d   : > { %v2277_v59 = vpop.permute.xlu1 %2276 }
 0xe2e   : > { %v2291_v26 = vsel %vm1281_vm5, %v2288_v52, %v2277_v59 }
 0xe2f   : > { %4088 = vmatmul.msk.f32.vlgmr.msrb.gmra.mxu0 %vm606_vm1, %v2291_v26 }
 0xe35   : > { %v2267_v28 = vpop.permute.xlu1 %2266 }
 0xe36   : > { %v2289_v31 = vsel %vm1277_vm4, %v2286_v1, %v2267_v28 }
 0xe37   : > { %v2292_v42 = vsel %vm1281_vm5, %v2289_v31, %v2279_v58 }
 0xe38   : > { %4089 = vmatmul.msk.f32.gmra.mxu0 %vm606_vm1, %v2292_v42 }
 0xe3a   : > { %v2905_v29 = vpop.permute.xlu2 %2904 }
 0xe3b   : > { %4124 = vmatpush.xpose.msk.msra.mxu3 %vm734_vm13, %v2905_v29  ;;  %v4042_v29 = vld [vmem:[%s6382_s4 + $0x70] sm:$0xff] }
 0xe3c   : > { %2445 = vmatpush.msra.mxu2 %v4042_v29 }
 0xe3d   : > { %v2269_v9 = vpop.permute.xlu1 %2268 }
 0xe3e   : > { %v2290_v14 = vsel %vm1277_vm4, %v2287_v25, %v2269_v9  ;;  %2446 = vmatpush.msra.mxu2 %v4040_v40  ;;  %v4038_v25 = vld [vmem:[%s6382_s4 + $0x50] sm:$0xff]  ;;  %v4036_v9 = vld [vmem:[%s6382_s4 + $0x40] sm:$0xff] }
 0xe3f   : > { %v2293_v61 = vsel %vm1281_vm5, %v2290_v14, %v2281_v27 }
 0xe40   : > { %4090 = vmatmul.msk.f32.gmra.mxu0 %vm606_vm1, %v2293_v61  ;;  %2447 = vmatpush.msra.mxu2 %v4038_v25 }
 0xe42   : > { %2448 = vmatpush.msra.mxu2 %v4036_v9 }
 0xe52   : > { %v2840_v2 = vpop.permute.xlu1 %2839 }
 0xe53   : > { %4121 = vmatpush.xpose.msk.msra.mxu0 %vm734_vm13, %v2840_v2 }
 0xe56   : > { %4122 = vmatmul.msk.f32.vlgmr.msra.gmra.mxu0 %vm734_vm13, %v5703_v7 }
 0xe5a   : > { %v2903_v3 = vpop.permute.xlu1 %2902 }
 0xe5b   : > { %4125 = vmatmul.msk.f32.vlgmr.msra.gmra.mxu3 %vm734_vm13, %v2903_v3 }
 0xeac   : > { %v2337_v49 = vpop.f32.mrf.mxu0 }
 0xead   : > { %v2338_v11 = vadd.f32 %v2337_v49, %v2294_v10 }
 0xeaf   : > { %v5735_v0 = vadd.f32 %v2338_v11, %v5261_v62 }
 0xeb1   : > { %v2349_v12 = vsel %vm606_vm1, %v5735_v0, 0.0 }
 0xeb2   : > { %2350 = vadd.xlane.f32.xlu0 %v2349_v12 }
 0xeb5   : > { %v2340_v53 = vpop.f32.mrf.mxu0 }
 0xeb6   : > { %v2341_v60 = vadd.f32 %v2340_v53, %v2294_v10 }
 0xeb8   : > { %v2347_v63 = vadd.f32 %v2341_v60, %v5266_v5 }
 0xeba   : > { %v2352_v18 = vsel %vm606_vm1, %v2347_v63, 0.0 }
 0xebb   : > { %2353 = vadd.xlane.f32.xlu2 %v2352_v18 }
 0xebd   : > { %v2343_v57 = vpop.f32.mrf.mxu0 }
 0xebe   : > { %v2344_v20 = vadd.f32 %v2343_v57, %v2294_v10 }
 0xec0   : > { %v2348_v21 = vadd.f32 %v2344_v20, %v5271_v4 }
 0xec2   : > { %v2355_v22 = vsel %vm613_vm2, %v2348_v21, 0.0 }
 0xec3   : > { %2356 = vadd.xlane.f32.xlu1 %v2355_v22 }
 0xed3   : > { %v2862_v62 = vpop.f32.mrf.mxu0 }
 0xed4   : > { %v2863_v23 = vadd.f32 %v2862_v62, %v5630_v41 }
 0xed6   : > { %v2865_v24 = vsel %vm734_vm13, %v2863_v23, -inf }
 0xed7   : > { %2866 = vmax.xlane.f32.xlu2 %v2865_v24 }
 0xede   : > { %v2927_v35 = vpop.f32.mrf.mxu3 }
 0xedf   : > { %v2928_v37 = vadd.f32 %v2927_v35, %v5630_v41 }
 0xee1   : > { %v2930_v5 = vsel %vm734_vm13, %v2928_v37, -inf }
 0xee2   : > { %2931 = vmax.xlane.f32.xlu1 %v2930_v5 }
 0xefb   : > { %2969 = vrot.lane.b32.xlu1 %v5703_v7, %s6385_s18 }
 0xf25   : > { %v2351_v56 = vpop.xlane.xlu0 %2350 }
 0xf26   : > { %v2358_v4 = vmul.f32 %v2351_v56, %v4858_v54  ;;  %v2419_v56 = vperm.slane %v5731_v8, 5 }
 0xf28   : > { %v5751_v38 = vsub.f32 %v5735_v0, %v2358_v4 }
 0xf2a   : > { %v2364_v32 = vmul.f32 %v5751_v38, %v5751_v38 }
 0xf2c   : > { %v2367_v36 = vsel %vm606_vm1, %v2364_v32, 0.0 }
 0xf2d   : > { %2368 = vadd.xlane.f32.xlu0 %v2367_v36 }
 0xf2e   : > { %v2354_v33 = vpop.xlane.xlu2 %2353 }
 0xf2f   : > { %v2359_v39 = vmul.f32 %v2354_v33, %v4858_v54 }
 0xf31   : > { %v5757_v43 = vsub.f32 %v2347_v63, %v2359_v39 }
 0xf33   : > { %v2365_v45 = vmul.f32 %v5757_v43, %v5757_v43 }
 0xf35   : > { %v2370_v48 = vsel %vm606_vm1, %v2365_v45, 0.0 }
 0xf36   : > { %2371 = vadd.xlane.f32.xlu2 %v2370_v48  ;;  %v2357_v16 = vpop.xlane.xlu1 %2356 }
 0xf37   : > { %v2360_v44 = vmul.f32 %v2357_v16, %v4858_v54 }
 0xf39   : > { %v5763_v34 = vsub.f32 %v2348_v21, %v2360_v44 }
 0xf3b   : > { %v2366_v47 = vmul.f32 %v5763_v34, %v5763_v34 }
 0xf3d   : > { %v2373_v55 = vsel %vm613_vm2, %v2366_v47, 0.0 }
 0xf3e   : > { %2374 = vadd.xlane.f32.xlu0 %v2373_v55 }
 0xf4a   : > { %v2867_v58 = vpop.xlane.xlu2 %2866 }
 0xf4b   : > { %v2868_v19 = vsub.f32 %v2863_v23, %v2867_v58  ;;  %v2415_v23 = vperm.slane %v5731_v8, 4 }
 0xf4d   : > { %v2869_v52 = vmul.f32 1.442695, %v2868_v19 }
 0xf4e   : > { %2876 = vrot.lane.b32.xlu2 %v5703_v7, %s6389_s29 }
 0xf4f   : > { %4455 = vpow2.f32 %v2869_v52 }
 0xf52   : > { %2967 = vrot.lane.b32.xlu0 %v5703_v7, %s6386_s30 }
 0xf55   : > { %v5772_v59 = vpop.eup %4455  ;;  %v2932_v27 = vpop.xlane.xlu1 %2931 }
 0xf56   : > { %2941 = vrot.lane.b32.xlu2 %v5703_v7, %s6387_s25  ;;  %v2871_v26 = vsel %vm734_vm13, %v5772_v59, 0.0  ;;  %v2933_v1 = vsub.f32 %v2928_v37, %v2932_v27 }
 0xf57   : > { %2872 = vadd.xlane.f32.xlu1 %v2871_v26 }
 0xf58   : > { %v2934_v28 = vmul.f32 1.442695, %v2933_v1 }
 0xf5a   : > { %4457 = vpow2.f32 %v2934_v28 }
 0xf60   : > { %v5780_v31 = vpop.eup %4457 }
 0xf61   : > { %v2936_v42 = vsel %vm734_vm13, %v5780_v31, 0.0 }
 0xf6d   : > { %v2970_v48 = vpop.permute.xlu1 %2969 }
 0xf70   : > { %3032 = vrot.lane.b32.xlu1 %v5703_v7, %s6397_s26 }
 0xf7c   : > { %2937 = vadd.xlane.f32.xlu0 %v2936_v42 }
 0xf90   : > { %3034 = vrot.lane.b32.xlu0 %v5703_v7, %s6398_s7 }
 0xfa0   : > { %v2369_v14 = vpop.xlane.xlu0 %2368 }
 0xfa1   : > { %v2376_v61 = vmul.f32 %v2369_v14, %v4858_v54 }
 0xfa3   : > { %v2379_v2 = vadd.f32 1e-05, %v2376_v61 }
 0xfa5   : > { %4459 = vrsqrt.f32 %v2379_v2  ;;  %vm2388_vm2 = vweird.f32 %v2379_v2 }
 0xfa9   : > { %v2372_v3 = vpop.xlane.xlu2 %2371 }
 0xfaa   : > { %v2377_v10 = vmul.f32 %v2372_v3, %v4858_v54 }
 0xfab   : > { %v4460_v49 = vpop.eup %4459 }
 0xfac   : > { %v2383_v11 = vmul.f32 %v4460_v49, %v2379_v2  ;;  %v2380_v12 = vadd.f32 1e-05, %v2377_v10  ;;  %vm2389_vm0 = vweird.f32 %v4460_v49  ;;  %v2423_v10 = vperm.slane %v5731_v8, 6 }
 0xfad   : > { %vm2390_vm15 = vmor %vm2388_vm2, %vm2389_vm0 }
 0xfae   : > { %v2384_v53 = vmul.f32 %v4460_v49, %v2383_v11  ;;  %4461 = vrsqrt.f32 %v2380_v12  ;;  %vm2398_vm10 = vweird.f32 %v2380_v12 }
 0xfb0   : > { %v2385_v60 = vmul.f32 0.5, %v2384_v53  ;;  %v4106_v53 = vld [vmem:[%s6383_s5 + $0xe0] sm:$0xff] }
 0xfb1   : > { %v2877_v63 = vpop.permute.xlu2 %2876  ;;  %v2375_v18 = vpop.xlane.xlu0 %2374 }
 0xfb2   : > { %v2386_v57 = vsub.f32 1.5, %v2385_v60  ;;  %v2378_v20 = vmul.f32 %v2375_v18, %v4858_v54  ;;  %2897 = vmatpush.msrb.mxu2 %v2877_v63  ;;  %v4105_v63 = vld [vmem:[%s6383_s5 + $0xd8] sm:$0xff] }
 0xfb4   : > { %v4462_v21 = vpop.eup %4461  ;;  %v2387_v22 = vmul.f32 %v4460_v49, %v2386_v57  ;;  %v2381_v62 = vadd.f32 1e-05, %v2378_v20  ;;  %v4104_v57 = vld [vmem:[%s6383_s5 + $0xd0] sm:$0xff] }
 0xfb5   : > { %v2393_v24 = vmul.f32 %v4462_v21, %v2380_v12  ;;  %vm2399_vm3 = vweird.f32 %v4462_v21 }
 0xfb6   : > { %v2391_v35 = vsel %vm2390_vm15, %v4460_v49, %v2387_v22  ;;  %4463 = vrsqrt.f32 %v2381_v62  ;;  %vm2400_vm11 = vmor %vm2398_vm10, %vm2399_vm3  ;;  %vm2408_vm6 = vweird.f32 %v2381_v62  ;;  %v4108_v49 = vld [vmem:[%s6383_s5 + $0xf0] sm:$0xff] }
 0xfb7   : > { %v2412_v37 = vmul.f32 %v2391_v35, %v5751_v38  ;;  %v2394_v5 = vmul.f32 %v4462_v21, %v2393_v24  ;;  %v4101_v35 = vld [vmem:[%s6383_s5 + $0xb8] sm:$0xff] }
 0xfb9   : > { %v2416_v4 = vmul.f32 %v2415_v23, %v2412_v37  ;;  %v2395_v32 = vmul.f32 0.5, %v2394_v5  ;;  %v2942_v36 = vpop.permute.xlu2 %2941  ;;  %v4100_v5 = vld [vmem:[%s6383_s5 + $0xb0] sm:$0xff] }
 0xfba   : > { %2962 = vmatpush.msrb.mxu0 %v2942_v36 }
 0xfbb   : > { %v2396_v33 = vsub.f32 1.5, %v2395_v32  ;;  %v2420_v39 = vadd.f32 %v2419_v56, %v2416_v4  ;;  %v4099_v4 = vld [vmem:[%s6383_s5 + $0xa8] sm:$0xff] }
 0xfbc   : > { %v4464_v45 = vpop.eup %4463 }
 0xfbd   : > { %v2397_v16 = vmul.f32 %v4462_v21, %v2396_v33  ;;  %v2403_v44 = vmul.f32 %v4464_v45, %v2381_v62  ;;  %4091 = vmatmul.msk.f32.vlgmr.msra.gmra.mxu2 %vm606_vm1, %v2420_v39  ;;  %vm2409_vm12 = vweird.f32 %v4464_v45  ;;  %v4098_v39 = vld [vmem:[%s6383_s5 + $0xa0] sm:$0xff] }
 0xfbe   : > { %4127 = vmatpush.xpose.msk.msra.mxu2 %vm734_vm13, %v2970_v48  ;;  %vm2410_vm7 = vmor %vm2408_vm6, %vm2409_vm12 }
 0xfbf   : > { %v2401_v38 = vsel %vm2400_vm11, %v4462_v21, %v2397_v16  ;;  %v2404_v47 = vmul.f32 %v4464_v45, %v2403_v44  ;;  %v4103_v21 = vld [vmem:[%s6383_s5 + $0xc8] sm:$0xff]  ;;  %v4097_v44 = vld [vmem:[%s6383_s5 + $0x98] sm:$0xff] }
 0xfc0   : > { %v2413_v55 = vmul.f32 %v2401_v38, %v5757_v43 }
 0xfc1   : > { %v2405_v58 = vmul.f32 0.5, %v2404_v47 }
 0xfc2   : > { %v2417_v19 = vmul.f32 %v2415_v23, %v2413_v55 }
 0xfc3   : > { %v2406_v52 = vsub.f32 1.5, %v2405_v58  ;;  %v4096_v58 = vld [vmem:[%s6383_s5 + $0x90] sm:$0xff] }
 0xfc4   : > { %v2421_v26 = vadd.f32 %v2419_v56, %v2417_v19  ;;  %v2968_v9 = vpop.permute.xlu0 %2967 }
 0xfc5   : > { %v2407_v27 = vmul.f32 %v4464_v45, %v2406_v52 }
 0xfc6   : > { %4092 = vmatmul.msk.f32.gmra.mxu2 %vm606_vm1, %v2421_v26 }
 0xfc7   : > { %v2411_v1 = vsel %vm2410_vm7, %v4464_v45, %v2407_v27  ;;  %v4095_v27 = vld [vmem:[%s6383_s5 + $0x88] sm:$0xff] }
 0xfc8   : > { %v2414_v28 = vmul.f32 %v2411_v1, %v5763_v34  ;;  %v4094_v1 = vld [vmem:[%s6383_s5 + $0x80] sm:$0xff] }
 0xfca   : > { %v2873_v42 = vpop.xlane.xlu1 %2872  ;;  %v2418_v29 = vmul.f32 %v2415_v23, %v2414_v28  ;;  %v4102_v23 = vld [vmem:[%s6383_s5 + $0xc0] sm:$0xff] }
 0xfcb   : > { %4465 = vrcp.f32 %v2873_v42 }
 0xfcc   : > { %v2422_v40 = vadd.f32 %v2419_v56, %v2418_v29 }
 0xfce   : > { %4093 = vmatmul.msk.f32.gmra.mxu2 %vm606_vm1, %v2422_v40 }
 0xfd1   : > { %v4466_v43 = vpop.eup %4465 }
 0xfd2   : > { %v2875_v25 = vmul.f32 %v4466_v43, %v5772_v59  ;;  %v4109_v59 = vld [vmem:[%s6383_s5 + $0xf8] sm:$0xff] }
 0xfd3   : > { %2596 = vmatpush.msra.mxu1 %v4109_v59 }
 0xfd5   : > { %2597 = vmatpush.msra.mxu1 %v4108_v49 }
 0xfd6   : > { %4123 = vmatmul.msk.f32.vlgmr.msrb.gmra.mxu2 %vm734_vm13, %v2875_v25 }
 0xfde   : > { %4128 = vmatmul.msk.f32.vlgmr.msra.gmra.mxu2 %vm734_vm13, %v2968_v9 }
 0xfe2   : > { %v3033_v3 = vpop.permute.xlu1 %3032 }
 0xfef   : > { %v2938_v14 = vpop.xlane.xlu0 %2937 }
 0xff0   : > { %4467 = vrcp.f32 %v2938_v14 }
 0xff6   : > { %v4468_v61 = vpop.eup %4467 }
 0xff7   : > { %v2940_v2 = vmul.f32 %v4468_v61, %v5780_v31  ;;  %v4107_v31 = vld [vmem:[%s6383_s5 + $0xe8] sm:$0xff]  ;;  %s6401_s5 = sld [smem:[#allocation24_spill]] }
 0xff8   : > { %2598 = vmatpush.msra.mxu1 %v4107_v31 }
 0xff9   : > { %4126 = vmatmul.msk.f32.vlgmr.msrb.gmra.mxu0 %vm734_vm13, %v2940_v2 }
 0xffa   : > { %2599 = vmatpush.msra.mxu1 %v4106_v53 }
 0xffc   : > { %2600 = vmatpush.msra.mxu1 %v4105_v63 }
 0xffe   : > { %2601 = vmatpush.msra.mxu1 %v4104_v57 }
0x1000   : > { %2602 = vmatpush.msra.mxu1 %v4103_v21 }
0x1002   : > { %v3035_v34 = vpop.permute.xlu0 %3034  ;;  %2603 = vmatpush.msra.mxu1 %v4102_v23 }
0x1003   : > { %4130 = vmatpush.xpose.msk.msra.mxu0 %vm734_vm13, %v3035_v34 }
0x1004   : > { %2604 = vmatpush.msra.mxu1 %v4101_v35 }
0x1006   : > { %4131 = vmatmul.msk.f32.vlgmr.msra.gmra.mxu0 %vm734_vm13, %v3033_v3  ;;  %2605 = vmatpush.msra.mxu1 %v4100_v5 }
0x1008   : > { %2606 = vmatpush.msra.mxu1 %v4099_v4 }
0x100a   : > { %2607 = vmatpush.msra.mxu1 %v4098_v39 }
0x100c   : > { %2608 = vmatpush.msra.mxu1 %v4097_v44 }
0x100e   : > { %2609 = vmatpush.msra.mxu1 %v4096_v58 }
0x1010   : > { %2610 = vmatpush.msra.mxu1 %v4095_v27 }
0x1012   : > { %2611 = vmatpush.msra.mxu1 %v4094_v1 }
0x1040   : > { %v2450_v11 = vpop.f32.mrf.mxu2 }
0x1041   : > { %v5827_v12 = vadd.f32 %v2450_v11, %v2423_v10 }
0x1043   : > { %v5833_v60 = vmul.f32 0.70710677, %v5827_v12 }
0x1045   : > { %v2465_v18 = vand.u32 2147483647, %v5833_v60  ;;  %v2546_v14 = vmul.f32 %v5833_v60, %v5833_v60 }
0x1047   : > { %v2468_v20 = vmul.f32 0.3275911, %v2465_v18  ;;  %v2549_v49 = vsub.f32 0.0, %v2546_v14 }
0x1049   : > { %v2471_v22 = vadd.f32 1.0, %v2468_v20  ;;  %v2453_v62 = vpop.f32.mrf.mxu2 }
0x104a   : > { %v5848_v24 = vadd.f32 %v2453_v62, %v2423_v10  ;;  %v2552_v62 = vmul.f32 1.442695, %v2549_v49 }
0x104b   : > { %4469 = vrcp.f32 %v2471_v22  ;;  %v2485_v47 = vand.u32 2147483648, %v2471_v22  ;;  %v2483_v52 = vand.u32 2147483647, %v2471_v22  ;;  %vm2479_vm8 = vweird.f32 %v2471_v22 }
0x104c   : > { %v5854_v37 = vmul.f32 0.70710677, %v5848_v24 }
0x104d   : > { %v2486_v42 = vor.u32 1.1754944e-38, %v2485_v47  ;;  %vm2484_vm0 = vcmp.eq.f32.partialorder %v2483_v52, 8.507059e+37 }
0x104e   : > { %v2466_v56 = vand.u32 2147483647, %v5854_v37  ;;  %v2547_v23 = vmul.f32 %v5854_v37, %v5854_v37 }
0x1050   : > { %v2469_v32 = vmul.f32 0.3275911, %v2466_v56 }
0x1051   : > { %v4470_v36 = vpop.eup %4469  ;;  %v2456_v33 = vpop.f32.mrf.mxu2 }
0x1052   : > { %v2475_v45 = vmul.f32 %v4470_v36, %v2471_v22  ;;  %v2472_v48 = vadd.f32 1.0, %v2469_v32  ;;  %v5866_v16 = vadd.f32 %v2456_v33, %v2423_v10  ;;  %vm2480_vm14 = vweird.f32 %v4470_v36 }
0x1053   : > { %vm2481_vm9 = vmor %vm2479_vm8, %vm2480_vm14  ;;  %vm2564_vm14 = vcmp.ge.f32.partialorder %v5833_v60, 0.0  ;;  %vm2565_vm8 = vcmp.ge.f32.partialorder %v5854_v37, 0.0 }
0x1054   : > { %v2476_v38 = vsub.f32 1.0, %v2475_v45  ;;  %4471 = vrcp.f32 %v2472_v48  ;;  %v5872_v55 = vmul.f32 0.70710677, %v5866_v16  ;;  %v2500_v10 = vand.u32 2147483648, %v2472_v48 }
0x1055   : > { %v2498_v11 = vand.u32 2147483647, %v2472_v48  ;;  %vm2494_vm15 = vweird.f32 %v2472_v48  ;;  %v2550_v45 = vsub.f32 0.0, %v2547_v23 }
0x1056   : > { %v2477_v19 = vmul.f32 %v4470_v36, %v2476_v38  ;;  %v2467_v26 = vand.u32 2147483647, %v5872_v55  ;;  %v2501_v20 = vor.u32 1.1754944e-38, %v2500_v10 }
0x1057   : > { %vm2499_vm10 = vcmp.eq.f32.partialorder %v2498_v11, 8.507059e+37 }
0x1058   : > { %v2478_v28 = vadd.f32 %v4470_v36, %v2477_v19  ;;  %v2470_v29 = vmul.f32 0.3275911, %v2467_v26 }
0x1059   : > { %v5884_v40 = vpop.f32.mrf.mxu2 }
0x105a   : > { %v4472_v43 = vpop.eup %4471  ;;  %v2482_v25 = vsel %vm2481_vm9, %v4470_v36, %v2478_v28  ;;  %v2473_v2 = vadd.f32 1.0, %v2470_v29  ;;  %vm2566_vm9 = vcmp.ge.f32.partialorder %v5872_v55, 0.0 }
0x105b   : > { %v2487_v9 = vsel %vm2484_vm0, %v2486_v42, %v2482_v25  ;;  %v2490_v61 = vmul.f32 %v4472_v43, %v2472_v48  ;;  %vm2495_vm2 = vweird.f32 %v4472_v43  ;;  %v2554_v42 = vmul.f32 1.442695, %v2550_v45 }
0x105c   : > { %v2519_v34 = vmul.f32 1.0614054, %v2487_v9  ;;  %4473 = vrcp.f32 %v2473_v2  ;;  %vm2496_vm3 = vmor %vm2494_vm15, %vm2495_vm2  ;;  %v2515_v48 = vand.u32 2147483648, %v2473_v2  ;;  %v2513_v58 = vand.u32 2147483647, %v2473_v2 }
0x105d   : > { %v2491_v3 = vsub.f32 1.0, %v2490_v61  ;;  %4475 = vpow2.f32 %v2552_v62  ;;  %vm2509_vm12 = vweird.f32 %v2473_v2  ;;  %v2548_v25 = vmul.f32 %v5872_v55, %v5872_v55 }
0x105e   : > { %v2522_v59 = vadd.f32 -1.4531521, %v2519_v34  ;;  %v2516_v27 = vor.u32 1.1754944e-38, %v2515_v48  ;;  %vm2514_vm7 = vcmp.eq.f32.partialorder %v2513_v58, 8.507059e+37  ;;  %4477 = vpow2.f32 %v2554_v42 }
0x105f   : > { %v2492_v31 = vmul.f32 %v4472_v43, %v2491_v3  ;;  %v2551_v49 = vsub.f32 0.0, %v2548_v25 }
0x1060   : > { %v2525_v53 = vmul.f32 %v2522_v59, %v2487_v9 }
0x1061   : > { %v2992_v63 = vpop.f32.mrf.mxu2  ;;  %v2493_v18 = vadd.f32 %v4472_v43, %v2492_v31 }
0x1062   : > { %v2528_v57 = vadd.f32 1.4214138, %v2525_v53  ;;  %v5889_v21 = vadd.f32 %v2992_v63, %v5630_v41  ;;  %v4474_v22 = vpop.eup %4473 }
0x1063   : > { %v2497_v35 = vsel %vm2496_vm3, %v4472_v43, %v2493_v18  ;;  %v2505_v56 = vmul.f32 %v4474_v22, %v2473_v2  ;;  %vm2510_vm11 = vweird.f32 %v4474_v22  ;;  %v4476_v43 = vpop.eup %4475 }
0x1064   : > { %v2531_v5 = vmul.f32 %v2528_v57, %v2487_v9  ;;  %v2995_v4 = vsel %vm734_vm13, %v5889_v21, -inf  ;;  %v2502_v32 = vsel %vm2499_vm10, %v2501_v20, %v2497_v35  ;;  %vm2511_vm6 = vmor %vm2509_vm12, %vm2510_vm11  ;;  %v2459_v57 = vmul.f32 0.5, %v5827_v12  ;;  %v4478_v23 = vpop.eup %4477 }
0x1065   : > { %2996 = vmax.xlane.f32.xlu2 %v2995_v4  ;;  %v2520_v36 = vmul.f32 1.0614054, %v2502_v32  ;;  %v2506_v39 = vsub.f32 1.0, %v2505_v56  ;;  %v2460_v12 = vmul.f32 0.5, %v5848_v24 }
0x1066   : > { %v2534_v33 = vadd.f32 -0.28449672, %v2531_v5 }
0x1067   : > { %v2523_v44 = vadd.f32 -1.4531521, %v2520_v36  ;;  %v2507_v47 = vmul.f32 %v4474_v22, %v2506_v39 }
0x1068   : > { %v2537_v38 = vmul.f32 %v2534_v33, %v2487_v9 }
0x1069   : > { %v2526_v19 = vmul.f32 %v2523_v44, %v2502_v32  ;;  %v2508_v26 = vadd.f32 %v4474_v22, %v2507_v47 }
0x106a   : > { %v2540_v52 = vadd.f32 0.2548296, %v2537_v38 }
0x106b   : > { %v2529_v1 = vadd.f32 1.4214138, %v2526_v19  ;;  %v2512_v29 = vsel %vm2511_vm6, %v4474_v22, %v2508_v26  ;;  %v2556_v22 = vmul.f32 1.442695, %v2551_v49 }
0x106c   : > { %v2543_v28 = vmul.f32 %v2540_v52, %v2487_v9  ;;  %v2517_v61 = vsel %vm2514_vm7, %v2516_v27, %v2512_v29 }
0x106d   : > { %v2532_v14 = vmul.f32 %v2529_v1, %v2502_v32  ;;  %v2521_v3 = vmul.f32 1.0614054, %v2517_v61  ;;  %4479 = vpow2.f32 %v2556_v22 }
0x106e   : > { %v2558_v34 = vmul.f32 %v4476_v43, %v2543_v28  ;;  %v2461_v28 = vmul.f32 0.5, %v5866_v16 }
0x106f   : > { %v2535_v59 = vadd.f32 -0.28449672, %v2532_v14  ;;  %v2524_v2 = vadd.f32 -1.4531521, %v2521_v3 }
0x1070   : > { %v2561_v10 = vsub.f32 1.0, %v2558_v34 }
0x1071   : > { %v2538_v31 = vmul.f32 %v2535_v59, %v2502_v32  ;;  %v2527_v53 = vmul.f32 %v2524_v2, %v2517_v61 }
0x1072   : > { %v2567_v11 = vsub.f32 0.0, %v2561_v10 }
0x1073   : > { %v2541_v9 = vadd.f32 0.2548296, %v2538_v31  ;;  %v2530_v18 = vadd.f32 1.4214138, %v2527_v53  ;;  %v2621_v31 = vperm.slane %v5731_v8, 7 }
0x1074   : > { %v2570_v63 = vsel %vm2564_vm14, %v2561_v10, %v2567_v11 }
0x1075   : > { %v2573_v20 = vadd.f32 1.0, %v2570_v63  ;;  %v2544_v62 = vmul.f32 %v2541_v9, %v2502_v32  ;;  %v2533_v35 = vmul.f32 %v2530_v18, %v2517_v61  ;;  %v4480_v32 = vpop.eup %4479 }
0x1076   : > { %v2964_v39 = vpop.f32.mrf.mxu0 }
0x1077   : > { %v2576_v5 = vmul.f32 %v2573_v20, %v2459_v57  ;;  %v2559_v56 = vmul.f32 %v4478_v23, %v2544_v62  ;;  %v2536_v4 = vadd.f32 -0.28449672, %v2533_v35 }
0x1079   : > { %2612 = vmatmul.f32.vlgmr.msra.gmra.mxu1 %v2576_v5  ;;  %v2562_v36 = vsub.f32 1.0, %v2559_v56  ;;  %v2539_v33 = vmul.f32 %v2536_v4, %v2517_v61 }
0x107b   : > { %v2568_v45 = vsub.f32 0.0, %v2562_v36  ;;  %v2542_v60 = vadd.f32 0.2548296, %v2539_v33 }
0x107d   : > { %v2571_v48 = vsel %vm2565_vm8, %v2562_v36, %v2568_v45  ;;  %v2545_v38 = vmul.f32 %v2542_v60, %v2517_v61 }
0x107e   : > { %v2574_v44 = vadd.f32 1.0, %v2571_v48  ;;  %v2811_v48 = vld [vmem:[%s6304_s10 + $0x58] sm:$0xff] }
0x107f   : > { %v2560_v58 = vmul.f32 %v4480_v32, %v2545_v38  ;;  %v2802_v38 = vld [vmem:[%s6304_s10 + $0x10] sm:$0xff] }
0x1080   : > { %v2577_v47 = vmul.f32 %v2574_v44, %v2460_v12  ;;  %v2808_v44 = vld [vmem:[%s6304_s10 + $0x40] sm:$0xff] }
0x1081   : > { %v2563_v19 = vsub.f32 1.0, %v2560_v58 }
0x1082   : > { %2615 = vmatmul.f32.gmra.mxu1 %v2577_v47 }
0x1083   : > { %v3057_v52 = vpop.f32.mrf.mxu0  ;;  %v2569_v27 = vsub.f32 0.0, %v2563_v19 }
0x1084   : > { %v3058_v26 = vadd.f32 %v3057_v52, %v5630_v41 }
0x1085   : > { %v2572_v37 = vsel %vm2566_vm9, %v2563_v19, %v2569_v27 }
0x1086   : > { %v3060_v1 = vsel %vm734_vm13, %v3058_v26, -inf  ;;  %v2575_v24 = vadd.f32 1.0, %v2572_v37 }
0x1087   : > { %3061 = vmax.xlane.f32.xlu0 %v3060_v1  ;;  %v2623_v1 = vld [vmem:[%s6400_s14] sm:$0x3]  ;;  %s6407_s14 = sld [smem:[#allocation28_spill]] }
0x1088   : > { %v2578_v42 = vmul.f32 %v2575_v24, %v2461_v28  ;;  %v2646_v24 = vperm.slane %v2623_v1, 0 }
0x108a   : > { %2617 = vmatmul.f32.gmra.mxu1 %v2578_v42 }
0x109b   : > { %3006 = vrot.lane.b32.xlu0 %v5703_v7, %s6390_s20 }
0x10a3   : > { %3098 = vrot.lane.b32.xlu0 %v2964_v39, %s6392_s1 }
0x10d8   : > { %v2997_v29 = vpop.xlane.xlu2 %2996 }
0x10d9   : > { %v2998_v43 = vsub.f32 %v5889_v21, %v2997_v29 }
0x10db   : > { %v2999_v25 = vmul.f32 1.442695, %v2998_v43  ;;  %v2648_v43 = vperm.slane %v2623_v1, 1 }
0x10dd   : > { %4481 = vpow2.f32 %v2999_v25 }
0x10e3   : > { %v4482_v55 = vpop.eup %4481 }
0x10e4   : > { %v3001_v14 = vsel %vm734_vm13, %v4482_v55, 0.0 }
0x10e5   : > { %3002 = vadd.xlane.f32.xlu1 %v3001_v14  ;;  %v3112_v14 = vperm.slane %v5700_v50, 1 }
0x10f6   : > { %v2613_v61 = vpop.f32.mrf.mxu1 }
0x10fa   : > { %v3062_v16 = vpop.xlane.xlu0 %3061 }
0x10fb   : > { %v3063_v34 = vsub.f32 %v3058_v26, %v3062_v16 }
0x10fd   : > { %v3064_v3 = vmul.f32 1.442695, %v3063_v34 }
0x10fe   : > { %3071 = vrot.lane.b32.xlu1 %v5703_v7, %s6388_s27  ;;  %v2620_v7 = vadd.f32 %v2613_v61, %v5735_v0 }
0x10ff   : > { %4483 = vpow2.f32 %v3064_v3  ;;  %v2616_v59 = vpop.f32.mrf.mxu1 }
0x1100   : > { %v2622_v11 = vadd.f32 %v2621_v31, %v2620_v7 }
0x1102   : > { %v2624_v53 = vsel %vm606_vm1, %v2622_v11, 0.0 }
0x1105   : > { %v4484_v10 = vpop.eup %4483 }
0x1106   : > { %v3066_v2 = vsel %vm734_vm13, %v4484_v10, 0.0 }
0x1107   : > { %3067 = vadd.xlane.f32.xlu2 %v3066_v2  ;;  %v2618_v21 = vpop.f32.mrf.mxu1 }
0x110d   : > { %v3007_v49 = vpop.permute.xlu0 %3006 }
0x110e   : > { %3027 = vmatpush.msrb.mxu3 %v3007_v49 }
0x1115   : > { %v3099_v36 = vpop.permute.xlu0 %3098 }
0x1116   : > { %v3109_v39 = vsel %vm734_vm13, %v5884_v40, %v3099_v36  ;;  %v2805_v40 = vld [vmem:[%s6304_s10 + $0x28] sm:$0xff] }
0x111f   : > { %4307 = vrot.lane.b32.xlu2 %v4306_v15, %s6399_s24 }
0x1127   : > { %4312 = vrot.lane.b32.xlu2 %v4311_v17, %s6399_s24 }
0x1150   : > { %2625 = vadd.xlane.f32.xlu2 %v2624_v53 }
0x1158   : > { %v3003_v9 = vpop.xlane.xlu1 %3002 }
0x1159   : > { %4485 = vrcp.f32 %v3003_v9 }
0x115f   : > { %v4486_v63 = vpop.eup %4485 }
0x1160   : > { %v3005_v18 = vmul.f32 %v4486_v63, %v4482_v55 }
0x1162   : > { %4129 = vmatmul.msk.f32.vlgmr.msrb.gmra.mxu3 %vm734_vm13, %v3005_v18 }
0x1170   : > { %v3072_v6 = vpop.permute.xlu1 %3071 }
0x1171   : > { %3092 = vmatpush.msra.mxu3 %v3072_v6  ;;  %v3180_v6 = vrot.slane %v5700_v50, 2 }
0x1173   : > { %3197 = vmatpush.msrb.mxu3 %v2811_v48  ;;  %v3272_v48 = vld [vmem:[%s6401_s5 + $0x70] sm:$0xff] }
0x1175   : > { %3198 = vmatpush.msrb.mxu3 %v2808_v44 }
0x1177   : > { %3199 = vmatpush.msrb.mxu3 %v2805_v40 }
0x1179   : > { %3200 = vmatpush.msrb.mxu3 %v2802_v38  ;;  %v3270_v38 = vld [vmem:[%s6401_s5 + $0x60] sm:$0xff] }
0x117a   : > { %v3068_v13 = vpop.xlane.xlu2 %3067 }
0x117b   : > { %4487 = vrcp.f32 %v3068_v13 }
0x1181   : > { %v4488_v51 = vpop.eup %4487 }
0x1182   : > { %v3070_v15 = vmul.f32 %v4488_v51, %v4484_v10  ;;  %v4308_v46 = vpop.permute.xlu2 %4307 }
0x1183   : > { %v4310_v17 = vunpack.i.h.bf16 %v4308_v46  ;;  %v4309_v0 = vunpack.i.l.bf16 %v4308_v46 }
0x1184   : > { %4132 = vmatmul.msk.f32.vlgmr.msra.gmra.mxu3 %vm734_vm13, %v3070_v15  ;;  %v3175_v15 = vperm.slane %v5700_v50, 3 }
0x1185   : > { %3144 = vmatpush.msrb.mxu2 %v4309_v0 }
0x1187   : > { %3145 = vmatpush.msrb.mxu2 %v4310_v17 }
0x118a   : > { %v4313_v8 = vpop.permute.xlu2 %4312 }
0x118b   : > { %v4315_v57 = vunpack.i.h.bf16 %v4313_v8  ;;  %v4314_v20 = vunpack.i.l.bf16 %v4313_v8  ;;  %v3177_v8 = vperm.slane %v5700_v50, 4  ;;  %v2806_v50 = vld [vmem:[%s6304_s10 + $0x30] sm:$0xff] }
0x118d   : > { %3146 = vmatpush.msrb.mxu2 %v4314_v20 }
0x118f   : > { %3147 = vmatpush.msrb.mxu2 %v4315_v57 }
0x11c3   : > { %v2626_v62 = vpop.xlane.xlu2 %2625 }
0x11c4   : > { %v2627_v23 = vmul.f32 %v2626_v62, %v4858_v54 }
0x11c6   : > { %v2628_v35 = vsub.f32 %v2622_v11, %v2627_v23 }
0x11c8   : > { %v2629_v56 = vmul.f32 %v2628_v35, %v2628_v35 }
0x11ca   : > { %v2630_v4 = vsel %vm606_vm1, %v2629_v56, 0.0 }
0x11e5   : > { %v3029_v22 = vpop.f32.mrf.mxu3 }
0x11e6   : > { %3102 = vrot.lane.b32.xlu1 %v3029_v22, %s6394_s16 }
0x1207   : > { %v3094_v5 = vpop.f32.mrf.mxu3 }
0x1208   : > { %3106 = vrot.lane.b32.xlu0 %v3094_v5, %s6393_s3 }
0x1210   : > { %2631 = vadd.xlane.f32.xlu1 %v2630_v4 }
0x1258   : > { %v3103_v33 = vpop.permute.xlu1 %3102 }
0x1259   : > { %v3110_v45 = vsel %vm1277_vm4, %v3109_v39, %v3103_v33  ;;  %v2809_v33 = vld [vmem:[%s6304_s10 + $0x48] sm:$0xff]  ;;  %v2803_v39 = vld [vmem:[%s6304_s10 + $0x18] sm:$0xff] }
0x125a   : > { %3249 = vmatpush.msrb.mxu0 %v2809_v33 }
0x125c   : > { %3250 = vmatpush.msrb.mxu0 %v2806_v50 }
0x125e   : > { %3251 = vmatpush.msrb.mxu0 %v2803_v39 }
0x127a   : > { %v3107_v60 = vpop.permute.xlu0 %3106 }
0x127b   : > { %v3111_v12 = vsel %vm1281_vm5, %v3110_v45, %v3107_v60  ;;  %v2800_v45 = vld [vmem:[%s6304_s10] sm:$0xff]  ;;  %v3273_v60 = vld [vmem:[%s6401_s5 + $0x78] sm:$0xff] }
0x127c   : > { %4133 = vmatmul.msk.f32.vlgmr.msrb.gmra.mxu2 %vm606_vm1, %v3111_v12  ;;  %3252 = vmatpush.msrb.mxu0 %v2800_v45  ;;  %v3271_v12 = vld [vmem:[%s6401_s5 + $0x68] sm:$0xff] }
0x127d   : > { %3275 = vmatpush.msrb.mxu1 %v3273_v60 }
0x127f   : > { %3276 = vmatpush.msrb.mxu1 %v3272_v48 }
0x1281   : > { %3277 = vmatpush.msrb.mxu1 %v3271_v12 }
0x1283   : > { %v2632_v32 = vpop.xlane.xlu1 %2631  ;;  %3278 = vmatpush.msrb.mxu1 %v3270_v38 }
0x1284   : > { %v2633_v47 = vmul.f32 %v2632_v32, %v4858_v54 }
0x1286   : > { %v2634_v58 = vadd.f32 1e-05, %v2633_v47  ;;  %v3269_v47 = vld [vmem:[%s6401_s5 + $0x58] sm:$0xff] }
0x1287   : > { %3279 = vmatpush.msrb.mxu1 %v3269_v47  ;;  %v6074_v47 = vld [vmem:[%s6306_s12 + $0x10] sm:$0xff] }
0x1288   : > { %4489 = vrsqrt.f32 %v2634_v58  ;;  %vm2641_vm2 = vweird.f32 %v2634_v58 }
0x128e   : > { %v4490_v19 = vpop.eup %4489 }
0x128f   : > { %v2636_v52 = vmul.f32 %v4490_v19, %v2634_v58  ;;  %vm2642_vm0 = vweird.f32 %v4490_v19  ;;  %v3268_v58 = vld [vmem:[%s6401_s5 + $0x50] sm:$0xff] }
0x1290   : > { %vm2643_vm15 = vmor %vm2641_vm2, %vm2642_vm0  ;;  %3280 = vmatpush.msrb.mxu1 %v3268_v58  ;;  %v3338_v58 = vperm.slane %v6074_v47, 0 }
0x1291   : > { %v2637_v26 = vmul.f32 %v4490_v19, %v2636_v52  ;;  %v3266_v52 = vld [vmem:[%s6401_s5 + $0x40] sm:$0xff] }
0x1293   : > { %v2638_v27 = vmul.f32 0.5, %v2637_v26 }
0x1295   : > { %v2639_v37 = vsub.f32 1.5, %v2638_v27  ;;  %v3265_v27 = vld [vmem:[%s6401_s5 + $0x38] sm:$0xff] }
0x1297   : > { %v2640_v28 = vmul.f32 %v4490_v19, %v2639_v37  ;;  %v3264_v37 = vld [vmem:[%s6401_s5 + $0x30] sm:$0xff] }
0x1299   : > { %v2644_v42 = vsel %vm2643_vm15, %v4490_v19, %v2640_v28  ;;  %v3267_v19 = vld [vmem:[%s6401_s5 + $0x48] sm:$0xff] }
0x129a   : > { %v2645_v29 = vmul.f32 %v2644_v42, %v2628_v35  ;;  %3281 = vmatpush.msrb.mxu1 %v3267_v19 }
0x129c   : > { %v2647_v25 = vmul.f32 %v2646_v24, %v2645_v29  ;;  %3282 = vmatpush.msrb.mxu1 %v3266_v52  ;;  %v3263_v24 = vld [vmem:[%s6401_s5 + $0x28] sm:$0xff]  ;;  %v3262_v29 = vld [vmem:[%s6401_s5 + $0x20] sm:$0xff] }
0x129e   : > { %v5951_v55 = vadd.f32 %v2648_v43, %v2647_v25  ;;  %3283 = vmatpush.msrb.mxu1 %v3265_v27  ;;  %v3261_v25 = vld [vmem:[%s6401_s5 + $0x18] sm:$0xff] }
0x12a0   : > { %4134 = vmatmul.msk.f32.vlgmr.msrb.gmra.mxu3 %vm606_vm1, %v5951_v55  ;;  %3284 = vmatpush.msrb.mxu1 %v3264_v37 }
0x12a2   : > { %3285 = vmatpush.msrb.mxu1 %v3263_v24 }
0x12a4   : > { %3286 = vmatpush.msrb.mxu1 %v3262_v29 }
0x12a6   : > { %3287 = vmatpush.msrb.mxu1 %v3261_v25 }
0x12ff   : > { %v3149_v61 = vpop.f32.mrf.mxu2 }
0x1300   : > { %v3150_v16 = vadd.f32 %v3149_v61, %v3112_v14  ;;  %v4523_v61 = vld [vmem:[%s6306_s12] sm:$0xff] }
0x1302   : > { %v3152_v34 = vadd.f32 %v3150_v16, %v5689_v30  ;;  %v3229_v16 = vperm.slane %v4523_v61, 5 }
0x1304   : > { %v3153_v3 = vsel %vm606_vm1, %v3152_v34, 0.0 }
0x1305   : > { %3154 = vadd.xlane.f32.xlu0 %v3153_v3 }
0x1323   : > { %v3202_v13 = vpop.f32.mrf.mxu3 }
0x1324   : > { %v3203_v17 = vadd.f32 %v3202_v13, %v3180_v6 }
0x1326   : > { %v3205_v20 = vperm.slane %v3203_v17, 0 }
0x1378   : > { %v3155_v59 = vpop.xlane.xlu0 %3154 }
0x1379   : > { %v3156_v10 = vmul.f32 %v3155_v59, %v4858_v54  ;;  %v3231_v59 = vperm.slane %v4523_v61, 6 }
0x137b   : > { %v3157_v2 = vsub.f32 %v3152_v34, %v3156_v10 }
0x137d   : > { %v3158_v21 = vmul.f32 %v3157_v2, %v3157_v2 }
0x137f   : > { %v3159_v49 = vsel %vm606_vm1, %v3158_v21, 0.0  ;;  %v3260_v21 = vld [vmem:[%s6401_s5 + $0x10] sm:$0xff] }
0x1380   : > { %3160 = vadd.xlane.f32.xlu2 %v3159_v49  ;;  %3288 = vmatpush.msrb.mxu1 %v3260_v21  ;;  %v3259_v49 = vld [vmem:[%s6401_s5 + $0x8] sm:$0xff] }
0x1382   : > { %3289 = vmatpush.msrb.mxu1 %v3259_v49 }
0x13f3   : > { %v3161_v7 = vpop.xlane.xlu2 %3160 }
0x13f4   : > { %v3162_v31 = vmul.f32 %v3161_v7, %v4858_v54  ;;  %v3258_v7 = vld [vmem:[%s6401_s5] sm:$0xff] }
0x13f5   : > { %3290 = vmatpush.msrb.mxu1 %v3258_v7 }
0x13f6   : > { %v3163_v11 = vadd.f32 1e-05, %v3162_v31  ;;  %v3233_v31 = vperm.slane %v4523_v61, 7 }
0x13f8   : > { %4491 = vrsqrt.f32 %v3163_v11  ;;  %vm3170_vm10 = vweird.f32 %v3163_v11 }
0x13fe   : > { %v4492_v53 = vpop.eup %4491 }
0x13ff   : > { %v3165_v9 = vmul.f32 %v4492_v53, %v3163_v11  ;;  %vm3171_vm3 = vweird.f32 %v4492_v53 }
0x1400   : > { %vm3172_vm11 = vmor %vm3170_vm10, %vm3171_vm3 }
0x1401   : > { %v3166_v63 = vmul.f32 %v4492_v53, %v3165_v9 }
0x1403   : > { %v3167_v30 = vmul.f32 0.5, %v3166_v63  ;;  %v2813_v63 = vld [vmem:[%s6306_s12 + $0x8] sm:$0xff] }
0x1404   : > { %v3318_v48 = vperm.slane %v2813_v63, 1 }
0x1405   : > { %v3168_v18 = vsub.f32 1.5, %v3167_v30  ;;  %v3274_v30 = vperm.slane %v2813_v63, 0 }
0x1407   : > { %v3169_v51 = vmul.f32 %v4492_v53, %v3168_v18 }
0x1409   : > { %v3173_v46 = vsel %vm3172_vm11, %v4492_v53, %v3169_v51 }
0x140a   : > { %v3174_v0 = vmul.f32 %v3173_v46, %v3157_v2 }
0x140c   : > { %v3176_v57 = vmul.f32 %v3175_v15, %v3174_v0 }
0x140e   : > { %v3178_v22 = vadd.f32 %v3177_v8, %v3176_v57  ;;  %v6041_v57 = vld [vmem:[%s6304_s10 + $0xb0] sm:$0xff] }
0x140f   : > { %3354 = vmatpush.msra.mxu2 %v6041_v57 }
0x1410   : > { %v3206_v62 = vadd.f32 %v3205_v20, %v3178_v22  ;;  %v6047_v20 = vld [vmem:[%s6304_s10 + $0x98] sm:$0xff] }
0x1411   : > { %3355 = vmatpush.msra.mxu2 %v6047_v20  ;;  %v4316_v22 = vpack.i.bf16 %v6047_v20, %v6041_v57 }
0x1412   : > { %v3207_v23 = vsel %vm606_vm1, %v3206_v62, 0.0 }
0x1413   : > { %3208 = vadd.xlane.f32.xlu1 %v3207_v23  ;;  %v6060_v23 = vld [vmem:[%s6304_s10 + $0x68] sm:$0xff] }
0x1486   : > { %v3209_v35 = vpop.xlane.xlu1 %3208 }
0x1487   : > { %v3210_v5 = vmul.f32 %v3209_v35, %v4858_v54 }
0x1489   : > { %v3211_v56 = vsub.f32 %v3206_v62, %v3210_v5  ;;  %v6055_v62 = vld [vmem:[%s6304_s10 + $0x80] sm:$0xff] }
0x148a   : > { %3356 = vmatpush.msra.mxu2 %v6055_v62  ;;  %v4321_v35 = vpack.i.bf16 %v6060_v23, %v6055_v62 }
0x148b   : > { %v3212_v4 = vmul.f32 %v3211_v56, %v3211_v56 }
0x148c   : > { %3357 = vmatpush.msra.mxu2 %v6060_v23 }
0x148d   : > { %v3213_v36 = vsel %vm606_vm1, %v3212_v4, 0.0 }
0x148e   : > { %3214 = vadd.xlane.f32.xlu0 %v3213_v36 }
0x1501   : > { %v3215_v44 = vpop.xlane.xlu0 %3214 }
0x1502   : > { %v3216_v40 = vmul.f32 %v3215_v44, %v4858_v54  ;;  %v3320_v44 = vperm.slane %v2813_v63, 2 }
0x1504   : > { %v3217_v32 = vadd.f32 1e-05, %v3216_v40 }
0x1506   : > { %4493 = vrsqrt.f32 %v3217_v32  ;;  %vm3224_vm6 = vweird.f32 %v3217_v32 }
0x150c   : > { %v4494_v26 = vpop.eup %4493 }
0x150d   : > { %v3219_v1 = vmul.f32 %v4494_v26, %v3217_v32  ;;  %vm3225_vm12 = vweird.f32 %v4494_v26 }
0x150e   : > { %vm3226_vm7 = vmor %vm3224_vm6, %vm3225_vm12 }
0x150f   : > { %v3220_v28 = vmul.f32 %v4494_v26, %v3219_v1 }
0x1511   : > { %v3221_v42 = vmul.f32 0.5, %v3220_v28 }
0x1513   : > { %v3222_v43 = vsub.f32 1.5, %v3221_v42 }
0x1515   : > { %v3223_v14 = vmul.f32 %v4494_v26, %v3222_v43 }
0x1517   : > { %v3227_v34 = vsel %vm3226_vm7, %v4494_v26, %v3223_v14 }
0x1518   : > { %v3228_v3 = vmul.f32 %v3227_v34, %v3211_v56 }
0x151a   : > { %v3230_v10 = vmul.f32 %v3229_v16, %v3228_v3 }
0x151c   : > { %v3232_v2 = vadd.f32 %v3231_v59, %v3230_v10 }
0x151e   : > { %4135 = vmatmul.msk.f32.vlgmr.msrb.gmra.mxu0 %vm606_vm1, %v3232_v2 }
0x159b   : > { %v3254_v11 = vpop.f32.mrf.mxu0 }
0x159c   : > { %v3255_v53 = vadd.f32 %v3254_v11, %v3233_v31 }
0x159e   : > { %v3257_v9 = vmax.f32 %v3255_v53, 0.0 }
0x15a0   : > { %3291 = vmatmul.f32.vlgmr.msrb.gmra.mxu1 %v3257_v9 }
0x161d   : > { %v3292_v18 = vpop.f32.mrf.mxu1 }
0x161e   : > { %v3293_v6 = vadd.f32 %v3292_v18, %v3274_v30  ;;  %v4147_v30 = vld [vmem:[%s6304_s10 + $0xb8] sm:$0xff]  ;;  %v4144_v18 = vld [vmem:[%s6304_s10 + $0xa0] sm:$0xff] }
0x1620   : > { %v3295_v13 = vadd.f32 %v3293_v6, %v3232_v2 }
0x1622   : > { %v3296_v51 = vsel %vm606_vm1, %v3295_v13, 0.0 }
0x1623   : > { %3297 = vadd.xlane.f32.xlu2 %v3296_v51  ;;  %v4141_v51 = vld [vmem:[%s6304_s10 + $0x88] sm:$0xff] }
0x1696   : > { %v3298_v15 = vpop.xlane.xlu2 %3297 }
0x1697   : > { %v3299_v46 = vmul.f32 %v3298_v15, %v4858_v54  ;;  %v4138_v15 = vld [vmem:[%s6304_s10 + $0x70] sm:$0xff] }
0x1699   : > { %v3300_v17 = vsub.f32 %v3295_v13, %v3299_v46 }
0x169b   : > { %v3301_v0 = vmul.f32 %v3300_v17, %v3300_v17 }
0x169d   : > { %v3302_v8 = vsel %vm606_vm1, %v3301_v0, 0.0 }
0x169e   : > { %3303 = vadd.xlane.f32.xlu1 %v3302_v8 }
0x1711   : > { %v3304_v5 = vpop.xlane.xlu1 %3303 }
0x1712   : > { %v3305_v56 = vmul.f32 %v3304_v5, %v4858_v54 }
0x1714   : > { %v3306_v4 = vadd.f32 1e-05, %v3305_v56 }
0x1716   : > { %4495 = vrsqrt.f32 %v3306_v4  ;;  %vm3313_vm8 = vweird.f32 %v3306_v4 }
0x171c   : > { %v4496_v36 = vpop.eup %4495 }
0x171d   : > { %v3308_v33 = vmul.f32 %v4496_v36, %v3306_v4  ;;  %vm3314_vm14 = vweird.f32 %v4496_v36 }
0x171e   : > { %vm3315_vm9 = vmor %vm3313_vm8, %vm3314_vm14 }
0x171f   : > { %v3309_v50 = vmul.f32 %v4496_v36, %v3308_v33 }
0x1721   : > { %v3310_v39 = vmul.f32 0.5, %v3309_v50 }
0x1723   : > { %v3311_v45 = vsub.f32 1.5, %v3310_v39 }
0x1725   : > { %v3312_v60 = vmul.f32 %v4496_v36, %v3311_v45 }
0x1727   : > { %v3316_v12 = vsel %vm3315_vm9, %v4496_v36, %v3312_v60 }
0x1728   : > { %v3317_v40 = vmul.f32 %v3316_v12, %v3300_v17 }
0x172a   : > { %v3319_v38 = vmul.f32 %v3318_v48, %v3317_v40 }
0x172c   : > { %v6067_v32 = vadd.f32 %v3320_v44, %v3319_v38 }
0x172e   : > { %4150 = vmatmul.msk.f32.vlgmr.msra.gmra.mxu2 %vm606_vm1, %v6067_v32 }
0x17b1   : > { %v3359_v19 = vpop.f32.mrf.mxu2 }
0x17b2   : > { %v6077_v52 = vadd.f32 %v3359_v19, %v3338_v58 }
0x17b4   : > { %3426 = vrot.lane.b32.xlu1 %v6077_v52, %s6396_s17  ;;  %3428 = vrot.lane.b32.xlu2 %v6077_v52, %s6395_s21 }
0x17b5   : > { %3363 = vrot.lane.b32.xlu0 %v6077_v52, %s6384_s22  ;;  %s6409_s22 = sld [smem:[#allocation27_spill]] }
0x180e   : > { %v3429_v26 = vpop.permute.xlu2 %3428 }
0x180f   : > { %4154 = vmatpush.xpose.msk.msrb.mxu2 %vm734_vm13, %v3429_v26 }
0x1826   : > { %v3427_v27 = vpop.permute.xlu1 %3426 }
0x1827   : > { %v3364_v1 = vpop.permute.xlu0 %3363  ;;  %4155 = vmatmul.msk.f32.vlgmr.msrb.gmra.mxu2 %vm734_vm13, %v3427_v27 }
0x1828   : > { %4151 = vmatpush.xpose.msk.msra.mxu3 %vm734_vm13, %v3364_v1 }
0x182b   : > { %4152 = vmatmul.msk.f32.vlgmr.msra.gmra.mxu3 %vm734_vm13, %v6077_v52 }
0x18aa   : > { %v3451_v37 = vpop.f32.mrf.mxu2 }
0x18ab   : > { %v3452_v28 = vadd.f32 %v3451_v37, %v5630_v41 }
0x18ad   : > { %v3454_v24 = vsel %vm734_vm13, %v3452_v28, -inf }
0x18ae   : > { %v3386_v42 = vpop.f32.mrf.mxu3  ;;  %3455 = vmax.xlane.f32.xlu2 %v3454_v24 }
0x18af   : > { %v3387_v29 = vadd.f32 %v3386_v42, %v5630_v41 }
0x18b1   : > { %v3389_v43 = vsel %vm734_vm13, %v3387_v29, -inf }
0x18b2   : > { %3390 = vmax.xlane.f32.xlu0 %v3389_v43 }
0x18c6   : > { %3400 = vrot.lane.b32.xlu0 %v6077_v52, %s6389_s29  ;;  %3465 = vrot.lane.b32.xlu2 %v6077_v52, %s6387_s25  ;;  %s6402_s25 = sld [smem:[#allocation26_spill]] }
0x18cc   : > { %s6403_s29 = smov %s6402_s25 }
0x18ce   : > { %3558 = vrot.lane.b32.xlu0 %v6077_v52, %s6398_s7  ;;  %3491 = vrot.lane.b32.xlu2 %v6077_v52, %s6386_s30  ;;  %s6405_s7 = sld [smem:[#allocation25_spill]] }
0x1921   : > { %v3456_v25 = vpop.xlane.xlu2 %3455 }
0x1922   : > { %v3457_v14 = vsub.f32 %v3452_v28, %v3456_v25 }
0x1924   : > { %v3458_v61 = vmul.f32 1.442695, %v3457_v14 }
0x1925   : > { %v3391_v16 = vpop.xlane.xlu0 %3390 }
0x1926   : > { %4497 = vpow2.f32 %v3458_v61  ;;  %v3392_v34 = vsub.f32 %v3387_v29, %v3391_v16 }
0x1928   : > { %v3393_v3 = vmul.f32 1.442695, %v3392_v34 }
0x1929   : > { %v3466_v59 = vpop.permute.xlu2 %3465 }
0x192a   : > { %4499 = vpow2.f32 %v3393_v3  ;;  %3486 = vmatpush.msrb.mxu3 %v3466_v59  ;;  %v3636_v3 = vperm.slane %v6074_v47, 1 }
0x192c   : > { %v4498_v10 = vpop.eup %4497 }
0x192d   : > { %v3460_v2 = vsel %vm734_vm13, %v4498_v10, 0.0 }
0x192e   : > { %3461 = vadd.xlane.f32.xlu0 %v3460_v2 }
0x1930   : > { %v4500_v21 = vpop.eup %4499 }
0x1931   : > { %v3395_v49 = vsel %vm734_vm13, %v4500_v21, 0.0  ;;  %v3492_v0 = vpop.permute.xlu2 %3491 }
0x1932   : > { %3396 = vadd.xlane.f32.xlu1 %v3395_v49 }
0x1938   : > { %v3401_v7 = vpop.permute.xlu0 %3400 }
0x1939   : > { %3421 = vmatpush.msra.mxu0 %v3401_v7 }
0x1940   : > { %v3559_v31 = vpop.permute.xlu0 %3558 }
0x1941   : > { %4160 = vmatpush.xpose.msk.msra.mxu3 %vm734_vm13, %v3559_v31 }
0x1942   : > { %3556 = vrot.lane.b32.xlu0 %v6077_v52, %s6397_s26 }
0x194b   : > { %3493 = vrot.lane.b32.xlu1 %v6077_v52, %s6385_s18 }
0x19a1   : > { %v3462_v11 = vpop.xlane.xlu0 %3461 }
0x19a2   : > { %4501 = vrcp.f32 %v3462_v11 }
0x19a5   : > { %v3397_v53 = vpop.xlane.xlu1 %3396 }
0x19a6   : > { %4503 = vrcp.f32 %v3397_v53 }
0x19a8   : > { %v4502_v9 = vpop.eup %4501 }
0x19a9   : > { %v3464_v63 = vmul.f32 %v4502_v9, %v4498_v10 }
0x19ab   : > { %4156 = vmatmul.msk.f32.vlgmr.msrb.gmra.mxu3 %vm734_vm13, %v3464_v63 }
0x19ac   : > { %v4504_v6 = vpop.eup %4503  ;;  %3718 = vmatpush.msrb.mxu3 %v4147_v30 }
0x19ad   : > { %v3399_v13 = vmul.f32 %v4504_v6, %v4500_v21 }
0x19ae   : > { %3719 = vmatpush.msrb.mxu3 %v4144_v18 }
0x19af   : > { %4153 = vmatmul.msk.f32.vlgmr.msra.gmra.mxu0 %vm734_vm13, %v3399_v13 }
0x19b0   : > { %3720 = vmatpush.msrb.mxu3 %v4141_v51 }
0x19b2   : > { %3721 = vmatpush.msrb.mxu3 %v4138_v15  ;;  %v3704_v15 = vrot.slane %v6074_v47, 2 }
0x19b4   : > { %v3557_v46 = vpop.permute.xlu0 %3556 }
0x19b5   : > { %4161 = vmatmul.msk.f32.vlgmr.msra.gmra.mxu3 %vm734_vm13, %v3557_v46 }
0x19bd   : > { %v3494_v17 = vpop.permute.xlu1 %3493  ;;  %4164 = vmatmul.msk.f32.vlgmr.msrb.gmra.mxu3 %vm606_vm1, %v5951_v55 }
0x19be   : > { %4157 = vmatpush.xpose.msk.msrb.mxu0 %vm734_vm13, %v3494_v17 }
0x19c1   : > { %4158 = vmatmul.msk.f32.vlgmr.msrb.gmra.mxu0 %vm734_vm13, %v3492_v0  ;;  %v3699_v0 = vperm.slane %v6074_v47, 3 }
0x1a2c   : > { %v3423_v5 = vpop.f32.mrf.mxu0 }
0x1a2e   : > { %v3488_v8 = vpop.f32.mrf.mxu3 }
0x1a38   : > { %v3581_v56 = vpop.f32.mrf.mxu3 }
0x1a39   : > { %v3582_v4 = vadd.f32 %v3581_v56, %v5630_v41 }
0x1a3b   : > { %v3584_v36 = vsel %vm734_vm13, %v3582_v4, -inf }
0x1a3c   : > { %3585 = vmax.xlane.f32.xlu2 %v3584_v36 }
0x1a3e   : > { %v3516_v33 = vpop.f32.mrf.mxu0 }
0x1a3f   : > { %v3517_v50 = vadd.f32 %v3516_v33, %v5630_v41 }
0x1a40   : > { %v3723_v46 = vpop.f32.mrf.mxu3 }
0x1a41   : > { %v3519_v39 = vsel %vm734_vm13, %v3517_v50, -inf }
0x1a42   : > { %3520 = vmax.xlane.f32.xlu1 %v3519_v39 }
0x1a54   : > { %3530 = vrot.lane.b32.xlu2 %v6077_v52, %s6390_s20 }
0x1a5c   : > { %3622 = vrot.lane.b32.xlu2 %v3488_v8, %s6392_s1  ;;  %s6404_s1 = sld [smem:[#allocation9_spill]] }
0x1a62   : > { %s494_s11 = sand.u32 1, %s6404_s1   ;;  %s4556_s1 = scalar_lea.hbm %s6407_s14, 16 }
0x1a63   : > { %s3982_s13 = sshll.u32 %s494_s11, 3  ;;  %s3904_s21 = scalar_lea.sflag [#allocation5], %s494_s11 }
0x1a64   : > { %s496_s30 = scalar_lea.vmem [#allocation4], %s3982_s13 }
0x1aaf   : > { %v3586_v55 = vpop.xlane.xlu2 %3585 }
0x1ab0   : > { %v3587_v45 = vsub.f32 %v3582_v4, %v3586_v55  ;;  %v3701_v4 = vperm.slane %v6074_v47, 4 }
0x1ab2   : > { %v3588_v60 = vmul.f32 1.442695, %v3587_v45 }
0x1ab4   : > { %4505 = vpow2.f32 %v3588_v60 }
0x1ab5   : > { %v3521_v48 = vpop.xlane.xlu1 %3520 }
0x1ab6   : > { %v3522_v12 = vsub.f32 %v3517_v50, %v3521_v48 }
0x1ab7   : > { %v3531_v44 = vpop.permute.xlu2 %3530 }
0x1ab8   : > { %v3523_v40 = vmul.f32 1.442695, %v3522_v12  ;;  %3551 = vmatpush.msra.mxu2 %v3531_v44 }
0x1aba   : > { %v4506_v38 = vpop.eup %4505  ;;  %4507 = vpow2.f32 %v3523_v40  ;;  %v4145_v40 = vld [vmem:[%s6304_s10 + $0xa8] sm:$0xff] }
0x1abb   : > { %v3590_v41 = vsel %vm734_vm13, %v4506_v38, 0.0 }
0x1abc   : > { %3591 = vadd.xlane.f32.xlu1 %v3590_v41  ;;  %v4139_v41 = vld [vmem:[%s6304_s10 + $0x78] sm:$0xff] }
0x1abf   : > { %v3623_v43 = vpop.permute.xlu2 %3622 }
0x1ac0   : > { %v4508_v58 = vpop.eup %4507  ;;  %v3633_v25 = vsel %vm734_vm13, %v3423_v5, %v3623_v43  ;;  %v3724_v5 = vadd.f32 %v3723_v46, %v3704_v15  ;;  %v4171_v43 = vld [vmem:[%s6401_s5 + $0xa8] sm:$0xff] }
0x1ac1   : > { %v3525_v19 = vsel %vm734_vm13, %v4508_v58, 0.0 }
0x1ac2   : > { %3526 = vadd.xlane.f32.xlu0 %v3525_v19  ;;  %v3726_v33 = vperm.slane %v3724_v5, 0  ;;  %v4181_v19 = vld [vmem:[%s6401_s5 + $0xf8] sm:$0xff] }
0x1ac3   : > { %3797 = vmatpush.msra.mxu1 %v4181_v19 }
0x1ad5   : > { %4317 = vrot.lane.b32.xlu1 %v4316_v22, %s6399_s24 }
0x1ad6   : > { %3595 = vrot.lane.b32.xlu0 %v6077_v52, %s6388_s27 }
0x1ade   : > { %4322 = vrot.lane.b32.xlu0 %v4321_v35, %s6399_s24  ;;  %s6406_s24 = sld [smem:[#allocation12_spill]] }
0x1ae4   : > { %s4184_s4 = sshll.u32 %s6406_s24, 3 }
0x1ae5   : > { %s3914_s2 = scalar_lea.hbm %s6407_s14, %s4184_s4 }
0x1ae6   : > { %s3918_s18 = sshll.u32 %s3914_s2, 4  ;;  %s3919_s18 = int_to_ptr.hbm [resolvable:$true] %s3918_s18 }
0x1ae7   : > { %s4550_s17 = sshra.s32 %s3919_s18, 4  ;;  %s4551_s17 = int_to_ptr.hbm [resolvable:$true] %s4550_s17 }
0x1ae8   : > { %s4552_s26 = scalar_lea.hbm %s4551_s17, 8  ;;  %p4557_p10 = scmp.lt.s32.totalorder %s4551_s17, %s6407_s14 }
0x1ae9   : > { %p4553_p7 = scmp.ne.s32.totalorder %s4551_s17, %s4552_s26  ;;  %p4558_p11 = scmp.lt.s32.totalorder %s4556_s1, %s4552_s26 }
0x1aeb   : > { %p4554_p8 = pnand %p4553_p7, %p4747_p5  ;;  %p4559_p12 = por %p4558_p11, %p4557_p10 }
0x1aed   : > { %p4555_p9 = pneg %p4554_p8 }
0x1aef   : > { %p4560_p13 = pnand %p4559_p12, %p4555_p9 }
0x1b2f   : > { %v3592_v1 = vpop.xlane.xlu1 %3591 }
0x1b35   : > { %v3527_v26 = vpop.xlane.xlu0 %3526 }
0x1b36   : > { %4509 = vrcp.f32 %v3527_v26  ;;  %v4180_v26 = vld [vmem:[%s6401_s5 + $0xf0] sm:$0xff] }
0x1b37   : > { %4511 = vrcp.f32 %v3592_v1  ;;  %3798 = vmatpush.msra.mxu1 %v4180_v26 }
0x1b3c   : > { %v4510_v27 = vpop.eup %4509 }
0x1b3d   : > { %v3529_v37 = vmul.f32 %v4510_v27, %v4508_v58  ;;  %v4512_v28 = vpop.eup %4511  ;;  %v4136_v58 = vld [vmem:[%s6304_s10 + $0x60] sm:$0xff]  ;;  %v4179_v27 = vld [vmem:[%s6401_s5 + $0xe8] sm:$0xff] }
0x1b3e   : > { %v3594_v24 = vmul.f32 %v4512_v28, %v4506_v38  ;;  %v4142_v38 = vld [vmem:[%s6304_s10 + $0x90] sm:$0xff]  ;;  %v4178_v28 = vld [vmem:[%s6401_s5 + $0xe0] sm:$0xff]  ;;  %3799 = vmatpush.msra.mxu1 %v4179_v27 }
0x1b3f   : > { %4159 = vmatmul.msk.f32.vlgmr.msra.gmra.mxu2 %vm734_vm13, %v3529_v37 }
0x1b40   : > { %3800 = vmatpush.msra.mxu1 %v4178_v28  ;;  %v3873_v28 = vld [vmem:[%s6403_s29 + $0x10] sm:$0xff] }
0x1b47   : > { %v4318_v62 = vpop.permute.xlu1 %4317 }
0x1b48   : > { %v3596_v57 = vpop.permute.xlu0 %3595  ;;  %v4320_v35 = vunpack.i.h.bf16 %v4318_v62  ;;  %v4319_v52 = vunpack.i.l.bf16 %v4318_v62  ;;  %v4174_v62 = vld [vmem:[%s6401_s5 + $0xc0] sm:$0xff] }
0x1b49   : > { %3616 = vmatpush.msra.mxu0 %v3596_v57  ;;  %v4177_v57 = vld [vmem:[%s6401_s5 + $0xd8] sm:$0xff] }
0x1b4a   : > { %4162 = vmatmul.msk.f32.vlgmr.msra.gmra.mxu0 %vm734_vm13, %v3594_v24  ;;  %3668 = vmatpush.msrb.mxu2 %v4319_v52 }
0x1b4b   : > { %3770 = vmatpush.msrb.mxu0 %v4145_v40  ;;  %3801 = vmatpush.msra.mxu1 %v4177_v57  ;;  %v3871_v57 = vld [vmem:[%s6403_s29] sm:$0xff] }
0x1b4c   : > { %3669 = vmatpush.msrb.mxu2 %v4320_v35  ;;  %v4173_v35 = vld [vmem:[%s6401_s5 + $0xb8] sm:$0xff] }
0x1b4d   : > { %3771 = vmatpush.msrb.mxu0 %v4142_v38 }
0x1b4f   : > { %3772 = vmatpush.msrb.mxu0 %v4139_v41 }
0x1b50   : > { %v4323_v23 = vpop.permute.xlu0 %4322 }
0x1b51   : > { %v4324_v42 = vunpack.i.l.bf16 %v4323_v23  ;;  %v4325_v29 = vunpack.i.h.bf16 %v4323_v23  ;;  %3773 = vmatpush.msrb.mxu0 %v4136_v58 }
0x1b53   : > { %3670 = vmatpush.msrb.mxu2 %v4324_v42  ;;  %v4172_v42 = vld [vmem:[%s6401_s5 + $0xb0] sm:$0xff] }
0x1b55   : > { %3671 = vmatpush.msrb.mxu2 %v4325_v29 }
0x1bc2   : > { %v3553_v20 = vpop.f32.mrf.mxu2 }
0x1bc3   : > { %3626 = vrot.lane.b32.xlu1 %v3553_v20, %s6394_s16  ;;  %v4176_v20 = vld [vmem:[%s6401_s5 + $0xd0] sm:$0xff] }
0x1bc4   : > { %3802 = vmatpush.msra.mxu1 %v4176_v20 }
0x1bc7   : > { %v3618_v22 = vpop.f32.mrf.mxu0 }
0x1bc8   : > { %3630 = vrot.lane.b32.xlu2 %v3618_v22, %s6393_s3  ;;  %v4175_v22 = vld [vmem:[%s6401_s5 + $0xc8] sm:$0xff] }
0x1bc9   : > { %3803 = vmatpush.msra.mxu1 %v4175_v22 }
0x1bcb   : > { %3804 = vmatpush.msra.mxu1 %v4174_v62 }
0x1bcd   : > { %3805 = vmatpush.msra.mxu1 %v4173_v35 }
0x1bcf   : > { %3806 = vmatpush.msra.mxu1 %v4172_v42 }
0x1bd1   : > { %3807 = vmatpush.msra.mxu1 %v4171_v43 }
0x1c22   : > { %v3631_v61 = vpop.permute.xlu2 %3630 }
0x1c35   : > { %v3627_v14 = vpop.permute.xlu1 %3626 }
0x1c36   : > { %v3634_v16 = vsel %vm1277_vm4, %v3633_v25, %v3627_v14  ;;  %v4170_v14 = vld [vmem:[%s6401_s5 + $0xa0] sm:$0xff] }
0x1c37   : > { %v3635_v34 = vsel %vm1281_vm5, %v3634_v16, %v3631_v61  ;;  %v4169_v16 = vld [vmem:[%s6401_s5 + $0x98] sm:$0xff]  ;;  %3808 = vmatpush.msra.mxu1 %v4170_v14 }
0x1c38   : > { %4163 = vmatmul.msk.f32.vlgmr.msrb.gmra.mxu2 %vm606_vm1, %v3635_v34 }
0x1c39   : > { %3809 = vmatpush.msra.mxu1 %v4169_v16 }
0x1cbb   : > { %v3673_v59 = vpop.f32.mrf.mxu2 }
0x1cbc   : > { %v3674_v10 = vadd.f32 %v3673_v59, %v3636_v3  ;;  %v3750_v3 = vperm.slane %v6074_v47, 5 }
0x1cbe   : > { %v3676_v2 = vadd.f32 %v3674_v10, %v6067_v32  ;;  %v3752_v10 = vperm.slane %v6074_v47, 6 }
0x1cc0   : > { %v3677_v21 = vsel %vm606_vm1, %v3676_v2, 0.0 }
0x1cc1   : > { %3678 = vadd.xlane.f32.xlu0 %v3677_v21 }
0x1d34   : > { %v3679_v49 = vpop.xlane.xlu0 %3678 }
0x1d35   : > { %v3680_v7 = vmul.f32 %v3679_v49, %v4858_v54 }
0x1d37   : > { %v3681_v31 = vsub.f32 %v3676_v2, %v3680_v7  ;;  %v4168_v7 = vld [vmem:[%s6401_s5 + $0x90] sm:$0xff] }
0x1d38   : > { %3810 = vmatpush.msra.mxu1 %v4168_v7 }
0x1d39   : > { %v3682_v11 = vmul.f32 %v3681_v31, %v3681_v31 }
0x1d3b   : > { %v3683_v53 = vsel %vm606_vm1, %v3682_v11, 0.0  ;;  %v4166_v11 = vld [vmem:[%s6401_s5 + $0x80] sm:$0xff] }
0x1d3c   : > { %3684 = vadd.xlane.f32.xlu1 %v3683_v53  ;;  %v3754_v53 = vperm.slane %v6074_v47, 7 }
0x1daf   : > { %v3685_v9 = vpop.xlane.xlu1 %3684 }
0x1db0   : > { %v3686_v63 = vmul.f32 %v3685_v9, %v4858_v54 }
0x1db2   : > { %v3687_v30 = vadd.f32 1e-05, %v3686_v63 }
0x1db4   : > { %4513 = vrsqrt.f32 %v3687_v30  ;;  %vm3694_vm4 = vweird.f32 %v3687_v30 }
0x1dba   : > { %v4514_v18 = vpop.eup %4513 }
0x1dbb   : > { %v3689_v6 = vmul.f32 %v4514_v18, %v3687_v30  ;;  %vm3695_vm13 = vweird.f32 %v4514_v18 }
0x1dbc   : > { %vm3696_vm5 = vmor %vm3694_vm4, %vm3695_vm13 }
0x1dbd   : > { %v3690_v13 = vmul.f32 %v4514_v18, %v3689_v6 }
0x1dbf   : > { %v3691_v32 = vmul.f32 0.5, %v3690_v13 }
0x1dc1   : > { %v3692_v51 = vsub.f32 1.5, %v3691_v32 }
0x1dc3   : > { %v3693_v17 = vmul.f32 %v4514_v18, %v3692_v51 }
0x1dc5   : > { %v3697_v8 = vsel %vm3696_vm5, %v4514_v18, %v3693_v17  ;;  %v4149_v18 = vld [vmem:[%s6306_s12 + $0x18] sm:$0xff] }
0x1dc6   : > { %v3698_v56 = vmul.f32 %v3697_v8, %v3681_v31  ;;  %v4167_v31 = vld [vmem:[%s6401_s5 + $0x88] sm:$0xff]  ;;  %v3796_v6 = vperm.slane %v4149_v18, 0 }
0x1dc7   : > { %3811 = vmatpush.msra.mxu1 %v4167_v31 }
0x1dc8   : > { %v3700_v36 = vmul.f32 %v3699_v0, %v3698_v56 }
0x1dc9   : > { %3812 = vmatpush.msra.mxu1 %v4166_v11 }
0x1dca   : > { %v3702_v50 = vadd.f32 %v3701_v4, %v3700_v36 }
0x1dcc   : > { %v3727_v39 = vadd.f32 %v3726_v33, %v3702_v50 }
0x1dce   : > { %v3728_v55 = vsel %vm606_vm1, %v3727_v39, 0.0 }
0x1dcf   : > { %3729 = vadd.xlane.f32.xlu2 %v3728_v55 }
0x1e42   : > { %v3730_v45 = vpop.xlane.xlu2 %3729 }
0x1e43   : > { %v3731_v60 = vmul.f32 %v3730_v45, %v4858_v54 }
0x1e45   : > { %v3732_v48 = vsub.f32 %v3727_v39, %v3731_v60  ;;  %v3840_v60 = vperm.slane %v4149_v18, 1 }
0x1e47   : > { %v3733_v12 = vmul.f32 %v3732_v48, %v3732_v48 }
0x1e49   : > { %v3734_v44 = vsel %vm606_vm1, %v3733_v12, 0.0 }
0x1e4a   : > { %3735 = vadd.xlane.f32.xlu0 %v3734_v44  ;;  %v3842_v44 = vperm.slane %v4149_v18, 2 }
0x1ebd   : > { %v3736_v1 = vpop.xlane.xlu0 %3735 }
0x1ebe   : > { %v3737_v37 = vmul.f32 %v3736_v1, %v4858_v54 }
0x1ec0   : > { %v3738_v24 = vadd.f32 1e-05, %v3737_v37  ;;  %v3874_v37 = vld [vmem:[%s6402_s25 + $0x18] sm:$0xff]  ;;  %s3916_s25 = sshll.u32 %s496_s30, 4  ;;  %s3917_s25 = int_to_ptr.vmem [resolvable:$true] %s3916_s25 }
0x1ec1   : > { %3894 = vmatpush.msra.mxu2 %v3874_v37 }
0x1ec2   : > { %4515 = vrsqrt.f32 %v3738_v24  ;;  %vm3745_vm2 = vweird.f32 %v3738_v24 }
0x1ec3   : > { %3895 = vmatpush.msra.mxu2 %v3873_v28 }
0x1ec8   : > { %v4516_v23 = vpop.eup %4515 }
0x1ec9   : > { %v3740_v52 = vmul.f32 %v4516_v23, %v3738_v24  ;;  %vm3746_vm0 = vweird.f32 %v4516_v23  ;;  %v3872_v24 = vld [vmem:[%s6403_s29 + $0x8] sm:$0xff] }
0x1eca   : > { %vm3747_vm15 = vmor %vm3745_vm2, %vm3746_vm0  ;;  %3896 = vmatpush.msra.mxu2 %v3872_v24 }
0x1ecb   : > { %v3741_v29 = vmul.f32 %v4516_v23, %v3740_v52 }
0x1ecc   : > { %3897 = vmatpush.msra.mxu2 %v3871_v57 }
0x1ecd   : > { %v3742_v25 = vmul.f32 0.5, %v3741_v29  ;;  %v3844_v29 = vld [vmem:[%s6405_s7] sm:$0x3] }
0x1ece   : > { %v3867_v14 = vperm.slane %v3844_v29, 0 }
0x1ecf   : > { %v3743_v61 = vsub.f32 1.5, %v3742_v25 }
0x1ed1   : > { %v3744_v34 = vmul.f32 %v4516_v23, %v3743_v61 }
0x1ed3   : > { %v3748_v59 = vsel %vm3747_vm15, %v4516_v23, %v3744_v34 }
0x1ed4   : > { %v3749_v2 = vmul.f32 %v3748_v59, %v3732_v48  ;;  %v4326_v59 = vld [vmem:[%s6409_s22] ss:$0 sm:$0xff] }
0x1ed6   : > { %v3751_v21 = vmul.f32 %v3750_v3, %v3749_v2 }
0x1ed8   : > { %v3753_v49 = vadd.f32 %v3752_v10, %v3751_v21 }
0x1eda   : > { %4165 = vmatmul.msk.f32.vlgmr.msrb.gmra.mxu0 %vm606_vm1, %v3753_v49 }
0x1f57   : > { %v3775_v9 = vpop.f32.mrf.mxu0 }
0x1f58   : > { %v3776_v63 = vadd.f32 %v3775_v9, %v3754_v53 }
0x1f5a   : > { %v3778_v30 = vmax.f32 %v3776_v63, 0.0 }
0x1f5c   : > { %3813 = vmatmul.f32.vlgmr.msra.gmra.mxu1 %v3778_v30 }
0x1fd9   : > { %v3814_v13 = vpop.f32.mrf.mxu1 }
0x1fda   : > { %v3815_v32 = vadd.f32 %v3814_v13, %v3796_v6 }
0x1fdc   : > { %v3817_v51 = vadd.f32 %v3815_v32, %v3753_v49 }
0x1fde   : > { %v3818_v15 = vsel %vm606_vm1, %v3817_v51, 0.0 }
0x1fdf   : > { %3819 = vadd.xlane.f32.xlu1 %v3818_v15 }
0x2052   : > { %v3820_v46 = vpop.xlane.xlu1 %3819 }
0x2053   : > { %v3821_v17 = vmul.f32 %v3820_v46, %v4858_v54 }
0x2055   : > { %v3822_v0 = vsub.f32 %v3817_v51, %v3821_v17 }
0x2057   : > { %v3823_v47 = vmul.f32 %v3822_v0, %v3822_v0 }
0x2059   : > { %v3824_v8 = vsel %vm606_vm1, %v3823_v47, 0.0 }
0x205a   : > { %3825 = vadd.xlane.f32.xlu2 %v3824_v8 }
0x20cd   : > { %v3826_v5 = vpop.xlane.xlu2 %3825 }
0x20ce   : > { %v3827_v56 = vmul.f32 %v3826_v5, %v4858_v54 }
0x20d0   : > { %v3828_v4 = vadd.f32 1e-05, %v3827_v56 }
0x20d2   : > { %4517 = vrsqrt.f32 %v3828_v4  ;;  %vm3835_vm10 = vweird.f32 %v3828_v4 }
0x20d8   : > { %v4518_v36 = vpop.eup %4517 }
0x20d9   : > { %v3830_v33 = vmul.f32 %v4518_v36, %v3828_v4  ;;  %vm3836_vm3 = vweird.f32 %v4518_v36 }
0x20da   : > { %vm3837_vm11 = vmor %vm3835_vm10, %vm3836_vm3 }
0x20db   : > { %v3831_v50 = vmul.f32 %v4518_v36, %v3830_v33 }
0x20dd   : > { %v3832_v39 = vmul.f32 0.5, %v3831_v50 }
0x20df   : > { %v3833_v55 = vsub.f32 1.5, %v3832_v39 }
0x20e1   : > { %v3834_v45 = vmul.f32 %v4518_v36, %v3833_v55 }
0x20e3   : > { %v3838_v48 = vsel %vm3837_vm11, %v4518_v36, %v3834_v45 }
0x20e4   : > { %v3839_v12 = vmul.f32 %v3838_v48, %v3822_v0 }
0x20e6   : > { %v3841_v40 = vmul.f32 %v3840_v60, %v3839_v12 }
0x20e8   : > { %v3843_v38 = vadd.f32 %v3842_v44, %v3841_v40 }
0x20ea   : > { %v3845_v41 = vsel %vm606_vm1, %v3843_v38, 0.0 }
0x20eb   : > { %3846 = vadd.xlane.f32.xlu0 %v3845_v41 }
0x215e   : > { %v3847_v58 = vpop.xlane.xlu0 %3846 }
0x215f   : > { %v3848_v19 = vmul.f32 %v3847_v58, %v4858_v54 }
0x2161   : > { %v3849_v26 = vsub.f32 %v3843_v38, %v3848_v19 }
0x2163   : > { %v3850_v27 = vmul.f32 %v3849_v26, %v3849_v26 }
0x2165   : > { %v3851_v1 = vsel %vm606_vm1, %v3850_v27, 0.0 }
0x2166   : > { %3852 = vadd.xlane.f32.xlu1 %v3851_v1 }
0x21d9   : > { %v3853_v20 = vpop.xlane.xlu1 %3852 }
0x21da   : > { %v3854_v22 = vmul.f32 %v3853_v20, %v4858_v54  ;;  %v3869_v54 = vperm.slane %v3844_v29, 1 }
0x21dc   : > { %v3855_v62 = vadd.f32 1e-05, %v3854_v22 }
0x21de   : > { %4519 = vrsqrt.f32 %v3855_v62  ;;  %vm3862_vm6 = vweird.f32 %v3855_v62 }
0x21e4   : > { %v4520_v23 = vpop.eup %4519 }
0x21e5   : > { %v3857_v35 = vmul.f32 %v4520_v23, %v3855_v62  ;;  %vm3863_vm12 = vweird.f32 %v4520_v23 }
0x21e6   : > { %vm3864_vm7 = vmor %vm3862_vm6, %vm3863_vm12 }
0x21e7   : > { %v3858_v52 = vmul.f32 %v4520_v23, %v3857_v35 }
0x21e9   : > { %v3859_v42 = vmul.f32 0.5, %v3858_v52 }
0x21eb   : > { %v3860_v43 = vsub.f32 1.5, %v3859_v42 }
0x21ed   : > { %v3861_v25 = vmul.f32 %v4520_v23, %v3860_v43 }
0x21ef   : > { %v3865_v61 = vsel %vm3864_vm7, %v4520_v23, %v3861_v25 }
0x21f0   : > { %v3866_v16 = vmul.f32 %v3865_v61, %v3849_v26 }
0x21f2   : > { %v3868_v34 = vmul.f32 %v3867_v14, %v3866_v16 }
0x21f4   : > { %v3870_v3 = vadd.f32 %v3869_v54, %v3868_v34 }
0x21f6   : > { %4182 = vmatmul.msk.f32.vlgmr.msra.gmra.mxu2 %vm606_vm1, %v3870_v3 }
0x2279   : > { %v3899_v10 = vpop.f32.mrf.mxu2 }
0x227a   : > { %v3900_v2 = vadd.f32 %v4326_v59, %v3899_v10 }
0x227c   : > { %3902 = vst [vmem:[%s496_s30] sm:$0xff] %v3900_v2 }
0x227d   : > { %4563 = shalt.err (!%p4560_p13)
}
0x227e   : > { %4188 = dma.vmem_to_hbm [thread:$0]  (%p4747_p5), %s3917_s25, 128, %s3919_s18, %s3904_s21  }
0x227f PF: > { %s6410_s7 = sld [smem:[#allocation11_spill]] }
0x2280   : > { %s6411_s24 = sld [smem:[#allocation8_spill]] }
0x2285   : > { %p4194_p0 = scmp.ge.s32.totalorder %s6410_s7, 2 }
0x2286   : > { %s3930_s13 = sand.u32 1, %s6411_s24  }
0x2287   : > { %p4191_p1 = pnand %p4194_p0, %p4751_p6  ;;  %s3931_s4 = scalar_lea.sflag [#allocation5], %s3930_s13 }
0x2289   : > { %p4192_p2 = pneg %p4191_p1 }
0x228b   : > { %4583 = dma.done.wait (%p4192_p2), %s3931_s4, 128  }
0x228c   : > { %4585 = vsyncadd (%p4192_p2), %s3931_s4, 4294967168  ;;  %s6413_s28 = sld [smem:[#allocation13_spill]] }
0x228d   : > { %s6414_s25 = sld [smem:[#allocation9_spill]] }
0x228e   : > { %s6415_s26 = sld [smem:[#allocation10_spill]] }
0x228f   : > { %s6416_s27 = sld [smem:[#allocation14_spill]] }
0x2292   : > { %p34_p3 = scmp.ge.s32.totalorder %s6413_s28, 4  }
0x2294   :  { %36 = sbr.rel (!%p34_p3) target bundleno = 27 (0x1b), region = 121 }
0x2299   :  { %3937 = vsyncpa [#allocation5], 1 }
0x229a   :  { %3939 = vsyncpa [#allocation5 + $0x1], 1 }

</bundles_post_ra>
